<compile_context>
chip_gen: v6e
topology: v6e:2x2x1
jax: 0.10.0
libtpu: 0.0.40
codegen_flags: <defaults>
</compile_context>

<pallas_src>
import jax
import jax.numpy as jnp
import numpy as np
from jax.experimental import pallas as pl
from jax.experimental.pallas import tpu as pltpu


def _make_kernel(N, H, n_active, norm, tm_length, n_steps):
    inv_n = 1.0 / float(N)
    inv_norm = 1.0 / float(norm)
    apply_norm = (norm != 1.0)

    def kernel(data_ref, sat_ref, edges_ref, send_ref, recv_ref, recvT_ref,
               w1_ref, b1_ref, w2_ref, b2_ref, wgru_ref, win_ref,
               o1w_ref, o1b_ref, o2w_ref, o2b_ref, o3w_ref, o3b_ref,
               out_ref):
        # ---- step-invariant values, hoisted out of the time loop -----------
        a_pha = sat_ref[:, 0:1]                                    # [1,1]
        ga = sat_ref[:, 1:2]                                       # [1,1]
        last_row = jax.lax.broadcasted_iota(jnp.int32, (N, 1), 0) == (N - 1)

        def step_fn(step, hidden, prev):
            # --- input: teacher forcing vs previous prediction --------------
            x_gt = data_ref[step]                                  # [N,1]
            x = jnp.where(step <= tm_length, x_gt, prev)           # [N,1]

            # --- message passing (re-associated: node-axis W1 first) --------
            msg = None
            for j in range(n_active):                              # static unroll
                hw = jnp.dot(hidden, w1_ref[j],
                             preferred_element_type=jnp.float32)   # [N,2H]
                e_pre = (jnp.dot(send_ref[...], hw[:, :H],
                                 preferred_element_type=jnp.float32)
                         + jnp.dot(recv_ref[...], hw[:, H:],
                                   preferred_element_type=jnp.float32)
                         + b1_ref[j])                              # [E,H]
                m = jnp.tanh(e_pre)
                m = jnp.tanh(jnp.dot(m, w2_ref[j],
                                     preferred_element_type=jnp.float32)
                             + b2_ref[j])
                m = m * edges_ref[:, j:j + 1]
                if apply_norm:
                    m = m * inv_norm
                msg = m if msg is None else msg + m                # [E,H]

            # MSGAgg = recv^T @ MSG / N
            msg_agg = jnp.dot(recvT_ref[...], msg,
                              preferred_element_type=jnp.float32) * inv_n  # [N,H]

            # --- fused GRU-style update (same op order as torch) ------------
            gru = jnp.dot(msg_agg, wgru_ref[...],
                          preferred_element_type=jnp.float32)      # [N,3H]
            xin = x * win_ref[...]                                 # [N,3H]
            h_r = jax.nn.sigmoid(xin[:, :H] + gru[:, :H])
            h_i = jax.nn.sigmoid(xin[:, H:2 * H] + gru[:, H:2 * H])
            h_n = jax.nn.sigmoid(xin[:, 2 * H:] + h_r * gru[:, 2 * H:])
            new_hidden = (1.0 - h_i) * h_n + h_i * hidden          # [N,H]

            # --- output MLP (dropout p=0 -> identity) -----------------------
            p = jax.nn.relu(jnp.dot(new_hidden, o1w_ref[...],
                                    preferred_element_type=jnp.float32)
                            + o1b_ref[...])
            p = jax.nn.relu(jnp.dot(p, o2w_ref[...],
                                    preferred_element_type=jnp.float32)
                            + o2b_ref[...])
            pred = (jnp.sum(p * o3w_ref[...], axis=-1, keepdims=True)
                    + o3b_ref[...])                                # [N,1]

            # --- saturation applied to the last node only -------------------
            force = jnp.maximum(pred, 0.1)
            fa = jnp.exp(a_pha * jnp.log(force))   # force ** a_pha (force > 0)
            sat = fa / (fa + ga) * pred
            pred_res = jnp.where(last_row, sat, pred)              # [N,1]

            out_ref[step] = pred_res
            return new_hidden, pred_res

        hidden0 = jnp.zeros((N, H), jnp.float32)
        prev0 = jnp.zeros((N, 1), jnp.float32)
        if n_steps <= 64:
            # short sequence: static full unroll (static indices, best LLO
            # scheduling visibility)
            hidden, prev = hidden0, prev0
            for s in range(n_steps):
                hidden, prev = step_fn(s, hidden, prev)
        else:
            jax.lax.fori_loop(
                0, n_steps,
                lambda s, carry: step_fn(s, carry[0], carry[1]),
                (hidden0, prev0))

    return kernel


def mr_decoder_s_forward(data, cont, edges, recv, send, params, tm_length,
                         edge_types=2, pre_skip=True):
    """Pallas implementation of MRDecoderS.forward (dropOut=0, nodeDim=1)."""
    B, N, T = data.shape
    assert B == 1, "torch module's satPred concat is only shape-consistent for B=1"
    E = recv.shape[0]
    H = params["hidR_w"].shape[0]
    start_idx = 1 if pre_skip else 0
    norm = float(edge_types - 1) if pre_skip else float(edge_types)
    n_active = edge_types - start_idx
    f32 = jnp.float32

    # ---- glue, runs once per call (outside the time loop) -------------------
    data_steps = jnp.transpose(data[0], (1, 0))[:, :, None].astype(f32)  # [T,N,1]

    # step-invariant saturation scalars (torch recomputes them every step)
    cont1 = cont.astype(f32)
    a = jnp.sum(cont1 * params["alpha_w"]) + params["alpha_b"][0]
    g = jnp.sum(cont1 * params["gamma_w"]) + params["gamma_b"][0]
    a_pha = jnp.maximum(a, 0.1)
    g_pha = jnp.maximum(g, 0.1)
    ga = jnp.exp(a_pha * jnp.log(g_pha))          # g_pha ** a_pha
    sat_params = jnp.stack([a_pha, ga]).reshape(1, 2).astype(f32)    # [1,2]

    # only the active edge-type columns
    edges_act = edges[0, :, start_idx:].astype(f32)                  # [E,n_act]

    # message weights, re-associated: W1cat = [W1_send | W1_recv]  ([H, 2H])
    w1_l, b1_l, w2_l, b2_l = [], [], [], []
    for i in range(start_idx, edge_types):
        w1t = params["msg1_w"][i].T.astype(f32)                      # [2H,H]
        w1_l.append(jnp.concatenate([w1t[:H], w1t[H:]], axis=1))     # [H,2H]
        b1_l.append(params["msg1_b"][i][None, :].astype(f32))        # [1,H]
        w2_l.append(params["msg2_w"][i].T.astype(f32))               # [H,H]
        b2_l.append(params["msg2_b"][i][None, :].astype(f32))        # [1,H]
    w1_all = jnp.stack(w1_l)
    b1_all = jnp.stack(b1_l)
    w2_all = jnp.stack(w2_l)
    b2_all = jnp.stack(b2_l)

    # fused GRU weights
    wgru = jnp.concatenate([params["hidR_w"].T, params["hidI_w"].T,
                            params["hidN_w"].T], axis=1).astype(f32)  # [H,3H]
    win = jnp.concatenate([params["inR_w"].T, params["inI_w"].T,
                           params["inN_w"].T], axis=1).astype(f32)    # [1,3H]

    inputs = (
        data_steps, sat_params, edges_act,
        send.astype(f32), recv.astype(f32), recv.T.astype(f32),
        w1_all, b1_all, w2_all, b2_all,
        wgru, win,
        params["o1_w"].T.astype(f32), params["o1_b"][None, :].astype(f32),
        params["o2_w"].T.astype(f32), params["o2_b"][None, :].astype(f32),
        params["o3_w"].astype(f32), params["o3_b"][None, :].astype(f32),
    )

    kernel = _make_kernel(N=N, H=H, n_active=n_active, norm=norm,
                          tm_length=int(tm_length), n_steps=T - 1)

    vmem = pl.BlockSpec(memory_space=pltpu.MemorySpace.VMEM)
    out = pl.pallas_call(
        kernel,
        out_shape=jax.ShapeDtypeStruct((T - 1, N, 1), f32),
        in_specs=[vmem] * len(inputs),
        out_specs=vmem,
    )(*inputs)

    # [T-1, N, 1] -> [1, N, T-1]   (torch: stack(dim=1).transpose(1,2))
    return jnp.transpose(out[:, :, 0], (1, 0))[None]


def init_params(key, H, node_dim=1, edge_types=2, dec_con_dim=2):
    """Deterministic nn.Linear-style init (uniform +-1/sqrt(fan_in))."""
    keys = iter(jax.random.split(key, 24))

    def lin_w(out_d, in_d):
        b = 1.0 / np.sqrt(in_d)
        return jax.random.uniform(next(keys), (out_d, in_d), jnp.float32, -b, b)

    def lin_b(out_d, in_d):
        b = 1.0 / np.sqrt(in_d)
        return jax.random.uniform(next(keys), (out_d,), jnp.float32, -b, b)

    P = {}
    P["msg1_w"] = jnp.stack([lin_w(H, 2 * H) for _ in range(edge_types)])
    P["msg1_b"] = jnp.stack([lin_b(H, 2 * H) for _ in range(edge_types)])
    P["msg2_w"] = jnp.stack([lin_w(H, H) for _ in range(edge_types)])
    P["msg2_b"] = jnp.stack([lin_b(H, H) for _ in range(edge_types)])
    P["hidR_w"], P["hidI_w"], P["hidN_w"] = (lin_w(H, H) for _ in range(3))
    P["inR_w"], P["inI_w"], P["inN_w"] = (lin_w(H, node_dim) for _ in range(3))
    P["o1_w"], P["o1_b"] = lin_w(H, H), lin_b(H, H)
    P["o2_w"], P["o2_b"] = lin_w(H, H), lin_b(H, H)
    P["o3_w"], P["o3_b"] = lin_w(node_dim, H), lin_b(node_dim, H)
    P["alpha_w"], P["alpha_b"] = lin_w(1, dec_con_dim), lin_b(1, dec_con_dim)
    P["gamma_w"], P["gamma_b"] = lin_w(1, dec_con_dim), lin_b(1, dec_con_dim)
    return P


def ref_forward(data, cont, edges, recv, send, P, tm_length,
                edge_types=2, pre_skip=True):
    """Pure-JAX reference mirroring the torch forward (B=1)."""
    B, N, T = data.shape
    H = P["hidR_w"].shape[0]
    E = recv.shape[0]
    start_idx = 1 if pre_skip else 0
    norm = float(edge_types - 1) if pre_skip else float(edge_types)
    edges1 = edges[0]
    x_seq = data[0].T                                    # [T, N]
    hidden = jnp.zeros((N, H), jnp.float32)
    a = jnp.sum(cont * P["alpha_w"]) + P["alpha_b"][0]
    g = jnp.sum(cont * P["gamma_w"]) + P["gamma_b"][0]
    a_pha = jnp.maximum(a, 0.1)
    g_pha = jnp.maximum(g, 0.1)
    preds = []
    for step in range(T - 1):
        x = x_seq[step] if step <= tm_length else preds[-1]
        msg_rec = recv @ hidden
        msg_send = send @ hidden
        msg_pre = jnp.concatenate([msg_send, msg_rec], axis=-1)
        msg_cont = jnp.zeros((E, H), jnp.float32)
        for i in range(start_idx, edge_types):
            m = jnp.tanh(msg_pre @ P["msg1_w"][i].T + P["msg1_b"][i])
            m = jnp.tanh(m @ P["msg2_w"][i].T + P["msg2_b"][i])
            m = m * edges1[:, i:i + 1]
            msg_cont = msg_cont + m / norm
        msg_agg = recv.T @ msg_cont / N
        xc = x[:, None]
        h_r = jax.nn.sigmoid(xc @ P["inR_w"].T + msg_agg @ P["hidR_w"].T)
        h_i = jax.nn.sigmoid(xc @ P["inI_w"].T + msg_agg @ P["hidI_w"].T)
        h_n = jax.nn.sigmoid(xc @ P["inN_w"].T + h_r * (msg_agg @ P["hidN_w"].T))
        hidden = (1 - h_i) * h_n + h_i * hidden
        p = jax.nn.relu(hidden @ P["o1_w"].T + P["o1_b"])
        p = jax.nn.relu(p @ P["o2_w"].T + P["o2_b"])
        pred = p @ P["o3_w"].T + P["o3_b"]               # [N, 1]
        force = jnp.maximum(pred[-1, 0], 0.1)
        fa = jnp.exp(a_pha * jnp.log(force))
        ga = jnp.exp(a_pha * jnp.log(g_pha))
        sat = fa / (fa + ga) * pred[-1, 0]
        pred_res = pred.at[N - 1, 0].set(sat)
        preds.append(pred_res[:, 0])
    out = jnp.stack(preds, axis=0)                       # [T-1, N]
    return out.T[None]                                   # [1, N, T-1]


if __name__ == "__main__":
    key = jax.random.PRNGKey(0)
    B, N, T, H = 1, 8, 8, 32
    edge_types, dec_con_dim, node_dim = 2, 2, 1
    E = N * (N - 1)

    k_param, k_data, k_cont, k_edges = jax.random.split(key, 4)
    P = init_params(k_param, H, node_dim, edge_types, dec_con_dim)
    data = jax.random.normal(k_data, (B, N, T), jnp.float32)
    cont = jax.random.uniform(k_cont, (B, dec_con_dim), jnp.float32)
    edges = jax.random.uniform(k_edges, (B, E, edge_types), jnp.float32)

    # NRI-style receiver / sender one-hot relation matrices
    recv_np = np.zeros((E, N), np.float32)
    send_np = np.zeros((E, N), np.float32)
    idx = 0
    for i in range(N):
        for j in range(N):
            if i != j:
                send_np[idx, i] = 1.0
                recv_np[idx, j] = 1.0
                idx += 1
    recv = jnp.asarray(recv_np)
    send = jnp.asarray(send_np)

    TMLength = 3  # teacher forcing for steps 0..3, autoregressive afterwards

    out = jax.block_until_ready(
        mr_decoder_s_forward(data, cont, edges, recv, send, P, TMLength,
                             edge_types=edge_types, pre_skip=True))
    ref = jax.block_until_ready(
        ref_forward(data, cont, edges, recv, send, P, TMLength,
                    edge_types=edge_types, pre_skip=True))

    assert out.shape == (B, N, T - 1), out.shape
    assert np.isfinite(np.asarray(out)).all()
    max_err = float(jnp.max(jnp.abs(out - ref)))
    assert max_err < 1e-2, f"max abs err vs reference: {max_err}"
    print("KERNEL_OK")
</pallas_src>

<mosaic_0001>
module attributes {stable_mosaic.version = 11 : i64} {
  func.func @kernel(%arg0: memref<8x8x1xf32, #tpu.memory_space<vmem>>, %arg1: memref<1x2xf32, #tpu.memory_space<vmem>>, %arg2: memref<56x1xf32, #tpu.memory_space<vmem>>, %arg3: memref<56x8xf32, #tpu.memory_space<vmem>>, %arg4: memref<56x8xf32, #tpu.memory_space<vmem>>, %arg5: memref<8x56xf32, #tpu.memory_space<vmem>>, %arg6: memref<1x32x64xf32, #tpu.memory_space<vmem>>, %arg7: memref<1x1x32xf32, #tpu.memory_space<vmem>>, %arg8: memref<1x32x32xf32, #tpu.memory_space<vmem>>, %arg9: memref<1x1x32xf32, #tpu.memory_space<vmem>>, %arg10: memref<32x96xf32, #tpu.memory_space<vmem>>, %arg11: memref<1x96xf32, #tpu.memory_space<vmem>>, %arg12: memref<32x32xf32, #tpu.memory_space<vmem>>, %arg13: memref<1x32xf32, #tpu.memory_space<vmem>>, %arg14: memref<32x32xf32, #tpu.memory_space<vmem>>, %arg15: memref<1x32xf32, #tpu.memory_space<vmem>>, %arg16: memref<1x32xf32, #tpu.memory_space<vmem>>, %arg17: memref<1x1xf32, #tpu.memory_space<vmem>>, %arg18: memref<7x8x1xf32, #tpu.memory_space<vmem>>) attributes {dimension_semantics = [], scalar_prefetch = 0 : i64, scratch_operands = 0 : i64, tpu.core_type = #tpu.core_type<tc>} {
    %c0 = arith.constant 0 : index
    %c0_0 = arith.constant 0 : index
    %0 = vector.load %arg1[%c0, %c0_0] : memref<1x2xf32, #tpu.memory_space<vmem>>, vector<1x1xf32>
    %c0_1 = arith.constant 0 : index
    %c1 = arith.constant 1 : index
    %1 = vector.load %arg1[%c0_1, %c1] : memref<1x2xf32, #tpu.memory_space<vmem>>, vector<1x1xf32>
    %2 = tpu.iota {dimensions = array<i32: 0>} : vector<8x1xi32>
    %c7_i32 = arith.constant 7 : i32
    %3 = vector.broadcast %c7_i32 : i32 to vector<8x1xi32>
    %4 = arith.cmpi eq, %2, %3 : vector<8x1xi32>
    %cst = arith.constant 0.000000e+00 : f32
    %5 = vector.broadcast %cst : f32 to vector<8x32xf32>
    %cst_2 = arith.constant 0.000000e+00 : f32
    %6 = vector.broadcast %cst_2 : f32 to vector<8x1xf32>
    %c0_3 = arith.constant 0 : index
    %c0_4 = arith.constant 0 : index
    %c0_5 = arith.constant 0 : index
    %7 = vector.load %arg0[%c0_3, %c0_4, %c0_5] : memref<8x8x1xf32, #tpu.memory_space<vmem>>, vector<1x8x1xf32>
    %8 = vector.shape_cast %7 : vector<1x8x1xf32> to vector<8x1xf32>
    %true = arith.constant true
    %9 = arith.select %true, %8, %6 : vector<8x1xf32>
    %c0_6 = arith.constant 0 : index
    %c0_7 = arith.constant 0 : index
    %c0_8 = arith.constant 0 : index
    %10 = vector.load %arg6[%c0_6, %c0_7, %c0_8] : memref<1x32x64xf32, #tpu.memory_space<vmem>>, vector<1x32x64xf32>
    %11 = vector.shape_cast %10 : vector<1x32x64xf32> to vector<32x64xf32>
    %cst_9 = arith.constant dense<0.000000e+00> : vector<8x64xf32>
    %12 = tpu.matmul %5, %11, %cst_9 {dimension_numbers = #tpu.dot_dimension_numbers<[1], [0], [0], [1], [0, 0, 1, 1], [], []>} : vector<8x32xf32>, vector<32x64xf32>, vector<8x64xf32> -> vector<8x64xf32>
    %c0_10 = arith.constant 0 : index
    %c0_11 = arith.constant 0 : index
    %13 = vector.load %arg3[%c0_10, %c0_11] : memref<56x8xf32, #tpu.memory_space<vmem>>, vector<56x8xf32>
    %14 = vector.extract_strided_slice %12 {offsets = [0, 0], sizes = [8, 32], strides = [1, 1]} : vector<8x64xf32> to vector<8x32xf32>
    %cst_12 = arith.constant dense<0.000000e+00> : vector<56x32xf32>
    %15 = tpu.matmul %13, %14, %cst_12 {dimension_numbers = #tpu.dot_dimension_numbers<[1], [0], [0], [1], [0, 0, 1, 1], [], []>} : vector<56x8xf32>, vector<8x32xf32>, vector<56x32xf32> -> vector<56x32xf32>
    %c0_13 = arith.constant 0 : index
    %c0_14 = arith.constant 0 : index
    %16 = vector.load %arg4[%c0_13, %c0_14] : memref<56x8xf32, #tpu.memory_space<vmem>>, vector<56x8xf32>
    %17 = vector.extract_strided_slice %12 {offsets = [0, 32], sizes = [8, 32], strides = [1, 1]} : vector<8x64xf32> to vector<8x32xf32>
    %cst_15 = arith.constant dense<0.000000e+00> : vector<56x32xf32>
    %18 = tpu.matmul %16, %17, %cst_15 {dimension_numbers = #tpu.dot_dimension_numbers<[1], [0], [0], [1], [0, 0, 1, 1], [], []>} : vector<56x8xf32>, vector<8x32xf32>, vector<56x32xf32> -> vector<56x32xf32>
    %19 = arith.addf %15, %18 : vector<56x32xf32>
    %c0_16 = arith.constant 0 : index
    %c0_17 = arith.constant 0 : index
    %c0_18 = arith.constant 0 : index
    %20 = vector.load %arg7[%c0_16, %c0_17, %c0_18] : memref<1x1x32xf32, #tpu.memory_space<vmem>>, vector<1x1x32xf32>
    %21 = vector.shape_cast %20 : vector<1x1x32xf32> to vector<1x32xf32>
    %22 = vector.broadcast %21 : vector<1x32xf32> to vector<56x32xf32>
    %23 = arith.addf %19, %22 : vector<56x32xf32>
    %24 = math.tanh %23 : vector<56x32xf32>
    %c0_19 = arith.constant 0 : index
    %c0_20 = arith.constant 0 : index
    %c0_21 = arith.constant 0 : index
    %25 = vector.load %arg8[%c0_19, %c0_20, %c0_21] : memref<1x32x32xf32, #tpu.memory_space<vmem>>, vector<1x32x32xf32>
    %26 = vector.shape_cast %25 : vector<1x32x32xf32> to vector<32x32xf32>
    %cst_22 = arith.constant dense<0.000000e+00> : vector<56x32xf32>
    %27 = tpu.matmul %24, %26, %cst_22 {dimension_numbers = #tpu.dot_dimension_numbers<[1], [0], [0], [1], [0, 0, 1, 1], [], []>} : vector<56x32xf32>, vector<32x32xf32>, vector<56x32xf32> -> vector<56x32xf32>
    %c0_23 = arith.constant 0 : index
    %c0_24 = arith.constant 0 : index
    %c0_25 = arith.constant 0 : index
    %28 = vector.load %arg9[%c0_23, %c0_24, %c0_25] : memref<1x1x32xf32, #tpu.memory_space<vmem>>, vector<1x1x32xf32>
    %29 = vector.shape_cast %28 : vector<1x1x32xf32> to vector<1x32xf32>
    %30 = vector.broadcast %29 : vector<1x32xf32> to vector<56x32xf32>
    %31 = arith.addf %27, %30 : vector<56x32xf32>
    %32 = math.tanh %31 : vector<56x32xf32>
    %c0_26 = arith.constant 0 : index
    %c0_27 = arith.constant 0 : index
    %33 = vector.load %arg2[%c0_26, %c0_27] : memref<56x1xf32, #tpu.memory_space<vmem>>, vector<56x1xf32>
    %34 = vector.broadcast %33 : vector<56x1xf32> to vector<56x32xf32>
    %35 = arith.mulf %32, %34 : vector<56x32xf32>
    %c0_28 = arith.constant 0 : index
    %c0_29 = arith.constant 0 : index
    %36 = vector.load %arg5[%c0_28, %c0_29] : memref<8x56xf32, #tpu.memory_space<vmem>>, vector<8x56xf32>
    %cst_30 = arith.constant dense<0.000000e+00> : vector<8x32xf32>
    %37 = tpu.matmul %36, %35, %cst_30 {dimension_numbers = #tpu.dot_dimension_numbers<[1], [0], [0], [1], [0, 0, 1, 1], [], []>} : vector<8x56xf32>, vector<56x32xf32>, vector<8x32xf32> -> vector<8x32xf32>
    %cst_31 = arith.constant 1.250000e-01 : f32
    %38 = vector.broadcast %cst_31 : f32 to vector<8x32xf32>
    %39 = arith.mulf %37, %38 : vector<8x32xf32>
    %c0_32 = arith.constant 0 : index
    %c0_33 = arith.constant 0 : index
    %40 = vector.load %arg10[%c0_32, %c0_33] : memref<32x96xf32, #tpu.memory_space<vmem>>, vector<32x96xf32>
    %cst_34 = arith.constant dense<0.000000e+00> : vector<8x96xf32>
    %41 = tpu.matmul %39, %40, %cst_34 {dimension_numbers = #tpu.dot_dimension_numbers<[1], [0], [0], [1], [0, 0, 1, 1], [], []>} : vector<8x32xf32>, vector<32x96xf32>, vector<8x96xf32> -> vector<8x96xf32>
    %c0_35 = arith.constant 0 : index
    %c0_36 = arith.constant 0 : index
    %42 = vector.load %arg11[%c0_35, %c0_36] : memref<1x96xf32, #tpu.memory_space<vmem>>, vector<1x96xf32>
    %43 = vector.broadcast %9 : vector<8x1xf32> to vector<8x96xf32>
    %44 = vector.broadcast %42 : vector<1x96xf32> to vector<8x96xf32>
    %45 = arith.mulf %43, %44 : vector<8x96xf32>
    %46 = vector.extract_strided_slice %45 {offsets = [0, 0], sizes = [8, 32], strides = [1, 1]} : vector<8x96xf32> to vector<8x32xf32>
    %47 = vector.extract_strided_slice %41 {offsets = [0, 0], sizes = [8, 32], strides = [1, 1]} : vector<8x96xf32> to vector<8x32xf32>
    %48 = arith.addf %46, %47 : vector<8x32xf32>
    %49 = arith.negf %48 : vector<8x32xf32>
    %50 = math.exp %49 : vector<8x32xf32>
    %cst_37 = arith.constant 1.000000e+00 : f32
    %51 = vector.broadcast %cst_37 : f32 to vector<8x32xf32>
    %52 = arith.addf %51, %50 : vector<8x32xf32>
    %53 = arith.divf %51, %52 : vector<8x32xf32>
    %54 = vector.extract_strided_slice %45 {offsets = [0, 32], sizes = [8, 32], strides = [1, 1]} : vector<8x96xf32> to vector<8x32xf32>
    %55 = vector.extract_strided_slice %41 {offsets = [0, 32], sizes = [8, 32], strides = [1, 1]} : vector<8x96xf32> to vector<8x32xf32>
    %56 = arith.addf %54, %55 : vector<8x32xf32>
    %57 = arith.negf %56 : vector<8x32xf32>
    %58 = math.exp %57 : vector<8x32xf32>
    %cst_38 = arith.constant 1.000000e+00 : f32
    %59 = vector.broadcast %cst_38 : f32 to vector<8x32xf32>
    %60 = arith.addf %59, %58 : vector<8x32xf32>
    %61 = arith.divf %59, %60 : vector<8x32xf32>
    %62 = vector.extract_strided_slice %45 {offsets = [0, 64], sizes = [8, 32], strides = [1, 1]} : vector<8x96xf32> to vector<8x32xf32>
    %63 = vector.extract_strided_slice %41 {offsets = [0, 64], sizes = [8, 32], strides = [1, 1]} : vector<8x96xf32> to vector<8x32xf32>
    %64 = arith.mulf %53, %63 : vector<8x32xf32>
    %65 = arith.addf %62, %64 : vector<8x32xf32>
    %66 = arith.negf %65 : vector<8x32xf32>
    %67 = math.exp %66 : vector<8x32xf32>
    %cst_39 = arith.constant 1.000000e+00 : f32
    %68 = vector.broadcast %cst_39 : f32 to vector<8x32xf32>
    %69 = arith.addf %68, %67 : vector<8x32xf32>
    %70 = arith.divf %68, %69 : vector<8x32xf32>
    %cst_40 = arith.constant 1.000000e+00 : f32
    %71 = vector.broadcast %cst_40 : f32 to vector<8x32xf32>
    %72 = arith.subf %71, %61 : vector<8x32xf32>
    %73 = arith.mulf %72, %70 : vector<8x32xf32>
    %74 = arith.mulf %61, %5 : vector<8x32xf32>
    %75 = arith.addf %73, %74 : vector<8x32xf32>
    %c0_41 = arith.constant 0 : index
    %c0_42 = arith.constant 0 : index
    %76 = vector.load %arg12[%c0_41, %c0_42] : memref<32x32xf32, #tpu.memory_space<vmem>>, vector<32x32xf32>
    %cst_43 = arith.constant dense<0.000000e+00> : vector<8x32xf32>
    %77 = tpu.matmul %75, %76, %cst_43 {dimension_numbers = #tpu.dot_dimension_numbers<[1], [0], [0], [1], [0, 0, 1, 1], [], []>} : vector<8x32xf32>, vector<32x32xf32>, vector<8x32xf32> -> vector<8x32xf32>
    %c0_44 = arith.constant 0 : index
    %c0_45 = arith.constant 0 : index
    %78 = vector.load %arg13[%c0_44, %c0_45] : memref<1x32xf32, #tpu.memory_space<vmem>>, vector<1x32xf32>
    %79 = vector.broadcast %78 : vector<1x32xf32> to vector<8x32xf32>
    %80 = arith.addf %77, %79 : vector<8x32xf32>
    %cst_46 = arith.constant 0.000000e+00 : f32
    %81 = vector.broadcast %cst_46 : f32 to vector<8x32xf32>
    %82 = arith.maximumf %80, %81 : vector<8x32xf32>
    %c0_47 = arith.constant 0 : index
    %c0_48 = arith.constant 0 : index
    %83 = vector.load %arg14[%c0_47, %c0_48] : memref<32x32xf32, #tpu.memory_space<vmem>>, vector<32x32xf32>
    %cst_49 = arith.constant dense<0.000000e+00> : vector<8x32xf32>
    %84 = tpu.matmul %82, %83, %cst_49 {dimension_numbers = #tpu.dot_dimension_numbers<[1], [0], [0], [1], [0, 0, 1, 1], [], []>} : vector<8x32xf32>, vector<32x32xf32>, vector<8x32xf32> -> vector<8x32xf32>
    %c0_50 = arith.constant 0 : index
    %c0_51 = arith.constant 0 : index
    %85 = vector.load %arg15[%c0_50, %c0_51] : memref<1x32xf32, #tpu.memory_space<vmem>>, vector<1x32xf32>
    %86 = vector.broadcast %85 : vector<1x32xf32> to vector<8x32xf32>
    %87 = arith.addf %84, %86 : vector<8x32xf32>
    %cst_52 = arith.constant 0.000000e+00 : f32
    %88 = vector.broadcast %cst_52 : f32 to vector<8x32xf32>
    %89 = arith.maximumf %87, %88 : vector<8x32xf32>
    %c0_53 = arith.constant 0 : index
    %c0_54 = arith.constant 0 : index
    %90 = vector.load %arg16[%c0_53, %c0_54] : memref<1x32xf32, #tpu.memory_space<vmem>>, vector<1x32xf32>
    %91 = vector.broadcast %90 : vector<1x32xf32> to vector<8x32xf32>
    %92 = arith.mulf %89, %91 : vector<8x32xf32>
    %cst_55 = arith.constant dense<0.000000e+00> : vector<8xf32>
    %93 = vector.multi_reduction <add>, %92, %cst_55 [1] : vector<8x32xf32> to vector<8xf32>
    %94 = vector.shape_cast %93 : vector<8xf32> to vector<8x1xf32>
    %c0_56 = arith.constant 0 : index
    %c0_57 = arith.constant 0 : index
    %95 = vector.load %arg17[%c0_56, %c0_57] : memref<1x1xf32, #tpu.memory_space<vmem>>, vector<1x1xf32>
    %96 = vector.broadcast %95 : vector<1x1xf32> to vector<8x1xf32>
    %97 = arith.addf %94, %96 : vector<8x1xf32>
    %cst_58 = arith.constant 1.000000e-01 : f32
    %98 = vector.broadcast %cst_58 : f32 to vector<8x1xf32>
    %99 = arith.maximumf %97, %98 : vector<8x1xf32>
    %100 = math.log %99 : vector<8x1xf32>
    %101 = vector.broadcast %0 : vector<1x1xf32> to vector<8x1xf32>
    %102 = arith.mulf %101, %100 : vector<8x1xf32>
    %103 = math.exp %102 : vector<8x1xf32>
    %104 = vector.broadcast %1 : vector<1x1xf32> to vector<8x1xf32>
    %105 = arith.addf %103, %104 : vector<8x1xf32>
    %106 = arith.divf %103, %105 : vector<8x1xf32>
    %107 = arith.mulf %106, %97 : vector<8x1xf32>
    %108 = arith.select %4, %107, %97 : vector<8x1xi1>, vector<8x1xf32>
    %c0_59 = arith.constant 0 : index
    %c0_60 = arith.constant 0 : index
    %c0_61 = arith.constant 0 : index
    %109 = vector.load %arg18[%c0_59, %c0_60, %c0_61] : memref<7x8x1xf32, #tpu.memory_space<vmem>>, vector<1x8x1xf32>
    %110 = vector.shape_cast %109 : vector<1x8x1xf32> to vector<8x1xf32>
    %111 = vector.shape_cast %108 : vector<8x1xf32> to vector<1x8x1xf32>
    tpu.vector_store %arg18[%c0_59, %c0_60, %c0_61], %111 {strides = array<i32>} : memref<7x8x1xf32, #tpu.memory_space<vmem>>, vector<1x8x1xf32>,
    %c1_62 = arith.constant 1 : index
    %c0_63 = arith.constant 0 : index
    %c0_64 = arith.constant 0 : index
    %112 = vector.load %arg0[%c1_62, %c0_63, %c0_64] : memref<8x8x1xf32, #tpu.memory_space<vmem>>, vector<1x8x1xf32>
    %113 = vector.shape_cast %112 : vector<1x8x1xf32> to vector<8x1xf32>
    %true_65 = arith.constant true
    %114 = arith.select %true_65, %113, %108 : vector<8x1xf32>
    %c0_66 = arith.constant 0 : index
    %c0_67 = arith.constant 0 : index
    %c0_68 = arith.constant 0 : index
    %115 = vector.load %arg6[%c0_66, %c0_67, %c0_68] : memref<1x32x64xf32, #tpu.memory_space<vmem>>, vector<1x32x64xf32>
    %116 = vector.shape_cast %115 : vector<1x32x64xf32> to vector<32x64xf32>
    %cst_69 = arith.constant dense<0.000000e+00> : vector<8x64xf32>
    %117 = tpu.matmul %75, %116, %cst_69 {dimension_numbers = #tpu.dot_dimension_numbers<[1], [0], [0], [1], [0, 0, 1, 1], [], []>} : vector<8x32xf32>, vector<32x64xf32>, vector<8x64xf32> -> vector<8x64xf32>
    %c0_70 = arith.constant 0 : index
    %c0_71 = arith.constant 0 : index
    %118 = vector.load %arg3[%c0_70, %c0_71] : memref<56x8xf32, #tpu.memory_space<vmem>>, vector<56x8xf32>
    %119 = vector.extract_strided_slice %117 {offsets = [0, 0], sizes = [8, 32], strides = [1, 1]} : vector<8x64xf32> to vector<8x32xf32>
    %cst_72 = arith.constant dense<0.000000e+00> : vector<56x32xf32>
    %120 = tpu.matmul %118, %119, %cst_72 {dimension_numbers = #tpu.dot_dimension_numbers<[1], [0], [0], [1], [0, 0, 1, 1], [], []>} : vector<56x8xf32>, vector<8x32xf32>, vector<56x32xf32> -> vector<56x32xf32>
    %c0_73 = arith.constant 0 : index
    %c0_74 = arith.constant 0 : index
    %121 = vector.load %arg4[%c0_73, %c0_74] : memref<56x8xf32, #tpu.memory_space<vmem>>, vector<56x8xf32>
    %122 = vector.extract_strided_slice %117 {offsets = [0, 32], sizes = [8, 32], strides = [1, 1]} : vector<8x64xf32> to vector<8x32xf32>
    %cst_75 = arith.constant dense<0.000000e+00> : vector<56x32xf32>
    %123 = tpu.matmul %121, %122, %cst_75 {dimension_numbers = #tpu.dot_dimension_numbers<[1], [0], [0], [1], [0, 0, 1, 1], [], []>} : vector<56x8xf32>, vector<8x32xf32>, vector<56x32xf32> -> vector<56x32xf32>
    %124 = arith.addf %120, %123 : vector<56x32xf32>
    %c0_76 = arith.constant 0 : index
    %c0_77 = arith.constant 0 : index
    %c0_78 = arith.constant 0 : index
    %125 = vector.load %arg7[%c0_76, %c0_77, %c0_78] : memref<1x1x32xf32, #tpu.memory_space<vmem>>, vector<1x1x32xf32>
    %126 = vector.shape_cast %125 : vector<1x1x32xf32> to vector<1x32xf32>
    %127 = vector.broadcast %126 : vector<1x32xf32> to vector<56x32xf32>
    %128 = arith.addf %124, %127 : vector<56x32xf32>
    %129 = math.tanh %128 : vector<56x32xf32>
    %c0_79 = arith.constant 0 : index
    %c0_80 = arith.constant 0 : index
    %c0_81 = arith.constant 0 : index
    %130 = vector.load %arg8[%c0_79, %c0_80, %c0_81] : memref<1x32x32xf32, #tpu.memory_space<vmem>>, vector<1x32x32xf32>
    %131 = vector.shape_cast %130 : vector<1x32x32xf32> to vector<32x32xf32>
    %cst_82 = arith.constant dense<0.000000e+00> : vector<56x32xf32>
    %132 = tpu.matmul %129, %131, %cst_82 {dimension_numbers = #tpu.dot_dimension_numbers<[1], [0], [0], [1], [0, 0, 1, 1], [], []>} : vector<56x32xf32>, vector<32x32xf32>, vector<56x32xf32> -> vector<56x32xf32>
    %c0_83 = arith.constant 0 : index
    %c0_84 = arith.constant 0 : index
    %c0_85 = arith.constant 0 : index
    %133 = vector.load %arg9[%c0_83, %c0_84, %c0_85] : memref<1x1x32xf32, #tpu.memory_space<vmem>>, vector<1x1x32xf32>
    %134 = vector.shape_cast %133 : vector<1x1x32xf32> to vector<1x32xf32>
    %135 = vector.broadcast %134 : vector<1x32xf32> to vector<56x32xf32>
    %136 = arith.addf %132, %135 : vector<56x32xf32>
    %137 = math.tanh %136 : vector<56x32xf32>
    %c0_86 = arith.constant 0 : index
    %c0_87 = arith.constant 0 : index
    %138 = vector.load %arg2[%c0_86, %c0_87] : memref<56x1xf32, #tpu.memory_space<vmem>>, vector<56x1xf32>
    %139 = vector.broadcast %138 : vector<56x1xf32> to vector<56x32xf32>
    %140 = arith.mulf %137, %139 : vector<56x32xf32>
    %c0_88 = arith.constant 0 : index
    %c0_89 = arith.constant 0 : index
    %141 = vector.load %arg5[%c0_88, %c0_89] : memref<8x56xf32, #tpu.memory_space<vmem>>, vector<8x56xf32>
    %cst_90 = arith.constant dense<0.000000e+00> : vector<8x32xf32>
    %142 = tpu.matmul %141, %140, %cst_90 {dimension_numbers = #tpu.dot_dimension_numbers<[1], [0], [0], [1], [0, 0, 1, 1], [], []>} : vector<8x56xf32>, vector<56x32xf32>, vector<8x32xf32> -> vector<8x32xf32>
    %cst_91 = arith.constant 1.250000e-01 : f32
    %143 = vector.broadcast %cst_91 : f32 to vector<8x32xf32>
    %144 = arith.mulf %142, %143 : vector<8x32xf32>
    %c0_92 = arith.constant 0 : index
    %c0_93 = arith.constant 0 : index
    %145 = vector.load %arg10[%c0_92, %c0_93] : memref<32x96xf32, #tpu.memory_space<vmem>>, vector<32x96xf32>
    %cst_94 = arith.constant dense<0.000000e+00> : vector<8x96xf32>
    %146 = tpu.matmul %144, %145, %cst_94 {dimension_numbers = #tpu.dot_dimension_numbers<[1], [0], [0], [1], [0, 0, 1, 1], [], []>} : vector<8x32xf32>, vector<32x96xf32>, vector<8x96xf32> -> vector<8x96xf32>
    %c0_95 = arith.constant 0 : index
    %c0_96 = arith.constant 0 : index
    %147 = vector.load %arg11[%c0_95, %c0_96] : memref<1x96xf32, #tpu.memory_space<vmem>>, vector<1x96xf32>
    %148 = vector.broadcast %114 : vector<8x1xf32> to vector<8x96xf32>
    %149 = vector.broadcast %147 : vector<1x96xf32> to vector<8x96xf32>
    %150 = arith.mulf %148, %149 : vector<8x96xf32>
    %151 = vector.extract_strided_slice %150 {offsets = [0, 0], sizes = [8, 32], strides = [1, 1]} : vector<8x96xf32> to vector<8x32xf32>
    %152 = vector.extract_strided_slice %146 {offsets = [0, 0], sizes = [8, 32], strides = [1, 1]} : vector<8x96xf32> to vector<8x32xf32>
    %153 = arith.addf %151, %152 : vector<8x32xf32>
    %154 = arith.negf %153 : vector<8x32xf32>
    %155 = math.exp %154 : vector<8x32xf32>
    %cst_97 = arith.constant 1.000000e+00 : f32
    %156 = vector.broadcast %cst_97 : f32 to vector<8x32xf32>
    %157 = arith.addf %156, %155 : vector<8x32xf32>
    %158 = arith.divf %156, %157 : vector<8x32xf32>
    %159 = vector.extract_strided_slice %150 {offsets = [0, 32], sizes = [8, 32], strides = [1, 1]} : vector<8x96xf32> to vector<8x32xf32>
    %160 = vector.extract_strided_slice %146 {offsets = [0, 32], sizes = [8, 32], strides = [1, 1]} : vector<8x96xf32> to vector<8x32xf32>
    %161 = arith.addf %159, %160 : vector<8x32xf32>
    %162 = arith.negf %161 : vector<8x32xf32>
    %163 = math.exp %162 : vector<8x32xf32>
    %cst_98 = arith.constant 1.000000e+00 : f32
    %164 = vector.broadcast %cst_98 : f32 to vector<8x32xf32>
    %165 = arith.addf %164, %163 : vector<8x32xf32>
    %166 = arith.divf %164, %165 : vector<8x32xf32>
    %167 = vector.extract_strided_slice %150 {offsets = [0, 64], sizes = [8, 32], strides = [1, 1]} : vector<8x96xf32> to vector<8x32xf32>
    %168 = vector.extract_strided_slice %146 {offsets = [0, 64], sizes = [8, 32], strides = [1, 1]} : vector<8x96xf32> to vector<8x32xf32>
    %169 = arith.mulf %158, %168 : vector<8x32xf32>
    %170 = arith.addf %167, %169 : vector<8x32xf32>
    %171 = arith.negf %170 : vector<8x32xf32>
    %172 = math.exp %171 : vector<8x32xf32>
    %cst_99 = arith.constant 1.000000e+00 : f32
    %173 = vector.broadcast %cst_99 : f32 to vector<8x32xf32>
    %174 = arith.addf %173, %172 : vector<8x32xf32>
    %175 = arith.divf %173, %174 : vector<8x32xf32>
    %cst_100 = arith.constant 1.000000e+00 : f32
    %176 = vector.broadcast %cst_100 : f32 to vector<8x32xf32>
    %177 = arith.subf %176, %166 : vector<8x32xf32>
    %178 = arith.mulf %177, %175 : vector<8x32xf32>
    %179 = arith.mulf %166, %75 : vector<8x32xf32>
    %180 = arith.addf %178, %179 : vector<8x32xf32>
    %c0_101 = arith.constant 0 : index
    %c0_102 = arith.constant 0 : index
    %181 = vector.load %arg12[%c0_101, %c0_102] : memref<32x32xf32, #tpu.memory_space<vmem>>, vector<32x32xf32>
    %cst_103 = arith.constant dense<0.000000e+00> : vector<8x32xf32>
    %182 = tpu.matmul %180, %181, %cst_103 {dimension_numbers = #tpu.dot_dimension_numbers<[1], [0], [0], [1], [0, 0, 1, 1], [], []>} : vector<8x32xf32>, vector<32x32xf32>, vector<8x32xf32> -> vector<8x32xf32>
    %c0_104 = arith.constant 0 : index
    %c0_105 = arith.constant 0 : index
    %183 = vector.load %arg13[%c0_104, %c0_105] : memref<1x32xf32, #tpu.memory_space<vmem>>, vector<1x32xf32>
    %184 = vector.broadcast %183 : vector<1x32xf32> to vector<8x32xf32>
    %185 = arith.addf %182, %184 : vector<8x32xf32>
    %cst_106 = arith.constant 0.000000e+00 : f32
    %186 = vector.broadcast %cst_106 : f32 to vector<8x32xf32>
    %187 = arith.maximumf %185, %186 : vector<8x32xf32>
    %c0_107 = arith.constant 0 : index
    %c0_108 = arith.constant 0 : index
    %188 = vector.load %arg14[%c0_107, %c0_108] : memref<32x32xf32, #tpu.memory_space<vmem>>, vector<32x32xf32>
    %cst_109 = arith.constant dense<0.000000e+00> : vector<8x32xf32>
    %189 = tpu.matmul %187, %188, %cst_109 {dimension_numbers = #tpu.dot_dimension_numbers<[1], [0], [0], [1], [0, 0, 1, 1], [], []>} : vector<8x32xf32>, vector<32x32xf32>, vector<8x32xf32> -> vector<8x32xf32>
    %c0_110 = arith.constant 0 : index
    %c0_111 = arith.constant 0 : index
    %190 = vector.load %arg15[%c0_110, %c0_111] : memref<1x32xf32, #tpu.memory_space<vmem>>, vector<1x32xf32>
    %191 = vector.broadcast %190 : vector<1x32xf32> to vector<8x32xf32>
    %192 = arith.addf %189, %191 : vector<8x32xf32>
    %cst_112 = arith.constant 0.000000e+00 : f32
    %193 = vector.broadcast %cst_112 : f32 to vector<8x32xf32>
    %194 = arith.maximumf %192, %193 : vector<8x32xf32>
    %c0_113 = arith.constant 0 : index
    %c0_114 = arith.constant 0 : index
    %195 = vector.load %arg16[%c0_113, %c0_114] : memref<1x32xf32, #tpu.memory_space<vmem>>, vector<1x32xf32>
    %196 = vector.broadcast %195 : vector<1x32xf32> to vector<8x32xf32>
    %197 = arith.mulf %194, %196 : vector<8x32xf32>
    %cst_115 = arith.constant dense<0.000000e+00> : vector<8xf32>
    %198 = vector.multi_reduction <add>, %197, %cst_115 [1] : vector<8x32xf32> to vector<8xf32>
    %199 = vector.shape_cast %198 : vector<8xf32> to vector<8x1xf32>
    %c0_116 = arith.constant 0 : index
    %c0_117 = arith.constant 0 : index
    %200 = vector.load %arg17[%c0_116, %c0_117] : memref<1x1xf32, #tpu.memory_space<vmem>>, vector<1x1xf32>
    %201 = vector.broadcast %200 : vector<1x1xf32> to vector<8x1xf32>
    %202 = arith.addf %199, %201 : vector<8x1xf32>
    %cst_118 = arith.constant 1.000000e-01 : f32
    %203 = vector.broadcast %cst_118 : f32 to vector<8x1xf32>
    %204 = arith.maximumf %202, %203 : vector<8x1xf32>
    %205 = math.log %204 : vector<8x1xf32>
    %206 = vector.broadcast %0 : vector<1x1xf32> to vector<8x1xf32>
    %207 = arith.mulf %206, %205 : vector<8x1xf32>
    %208 = math.exp %207 : vector<8x1xf32>
    %209 = vector.broadcast %1 : vector<1x1xf32> to vector<8x1xf32>
    %210 = arith.addf %208, %209 : vector<8x1xf32>
    %211 = arith.divf %208, %210 : vector<8x1xf32>
    %212 = arith.mulf %211, %202 : vector<8x1xf32>
    %213 = arith.select %4, %212, %202 : vector<8x1xi1>, vector<8x1xf32>
    %c1_119 = arith.constant 1 : index
    %c0_120 = arith.constant 0 : index
    %c0_121 = arith.constant 0 : index
    %214 = vector.load %arg18[%c1_119, %c0_120, %c0_121] : memref<7x8x1xf32, #tpu.memory_space<vmem>>, vector<1x8x1xf32>
    %215 = vector.shape_cast %214 : vector<1x8x1xf32> to vector<8x1xf32>
    %216 = vector.shape_cast %213 : vector<8x1xf32> to vector<1x8x1xf32>
    tpu.vector_store %arg18[%c1_119, %c0_120, %c0_121], %216 {strides = array<i32>} : memref<7x8x1xf32, #tpu.memory_space<vmem>>, vector<1x8x1xf32>,
    %c2 = arith.constant 2 : index
    %c0_122 = arith.constant 0 : index
    %c0_123 = arith.constant 0 : index
    %217 = vector.load %arg0[%c2, %c0_122, %c0_123] : memref<8x8x1xf32, #tpu.memory_space<vmem>>, vector<1x8x1xf32>
    %218 = vector.shape_cast %217 : vector<1x8x1xf32> to vector<8x1xf32>
    %true_124 = arith.constant true
    %219 = arith.select %true_124, %218, %213 : vector<8x1xf32>
    %c0_125 = arith.constant 0 : index
    %c0_126 = arith.constant 0 : index
    %c0_127 = arith.constant 0 : index
    %220 = vector.load %arg6[%c0_125, %c0_126, %c0_127] : memref<1x32x64xf32, #tpu.memory_space<vmem>>, vector<1x32x64xf32>
    %221 = vector.shape_cast %220 : vector<1x32x64xf32> to vector<32x64xf32>
    %cst_128 = arith.constant dense<0.000000e+00> : vector<8x64xf32>
    %222 = tpu.matmul %180, %221, %cst_128 {dimension_numbers = #tpu.dot_dimension_numbers<[1], [0], [0], [1], [0, 0, 1, 1], [], []>} : vector<8x32xf32>, vector<32x64xf32>, vector<8x64xf32> -> vector<8x64xf32>
    %c0_129 = arith.constant 0 : index
    %c0_130 = arith.constant 0 : index
    %223 = vector.load %arg3[%c0_129, %c0_130] : memref<56x8xf32, #tpu.memory_space<vmem>>, vector<56x8xf32>
    %224 = vector.extract_strided_slice %222 {offsets = [0, 0], sizes = [8, 32], strides = [1, 1]} : vector<8x64xf32> to vector<8x32xf32>
    %cst_131 = arith.constant dense<0.000000e+00> : vector<56x32xf32>
    %225 = tpu.matmul %223, %224, %cst_131 {dimension_numbers = #tpu.dot_dimension_numbers<[1], [0], [0], [1], [0, 0, 1, 1], [], []>} : vector<56x8xf32>, vector<8x32xf32>, vector<56x32xf32> -> vector<56x32xf32>
    %c0_132 = arith.constant 0 : index
    %c0_133 = arith.constant 0 : index
    %226 = vector.load %arg4[%c0_132, %c0_133] : memref<56x8xf32, #tpu.memory_space<vmem>>, vector<56x8xf32>
    %227 = vector.extract_strided_slice %222 {offsets = [0, 32], sizes = [8, 32], strides = [1, 1]} : vector<8x64xf32> to vector<8x32xf32>
    %cst_134 = arith.constant dense<0.000000e+00> : vector<56x32xf32>
    %228 = tpu.matmul %226, %227, %cst_134 {dimension_numbers = #tpu.dot_dimension_numbers<[1], [0], [0], [1], [0, 0, 1, 1], [], []>} : vector<56x8xf32>, vector<8x32xf32>, vector<56x32xf32> -> vector<56x32xf32>
    %229 = arith.addf %225, %228 : vector<56x32xf32>
    %c0_135 = arith.constant 0 : index
    %c0_136 = arith.constant 0 : index
    %c0_137 = arith.constant 0 : index
    %230 = vector.load %arg7[%c0_135, %c0_136, %c0_137] : memref<1x1x32xf32, #tpu.memory_space<vmem>>, vector<1x1x32xf32>
    %231 = vector.shape_cast %230 : vector<1x1x32xf32> to vector<1x32xf32>
    %232 = vector.broadcast %231 : vector<1x32xf32> to vector<56x32xf32>
    %233 = arith.addf %229, %232 : vector<56x32xf32>
    %234 = math.tanh %233 : vector<56x32xf32>
    %c0_138 = arith.constant 0 : index
    %c0_139 = arith.constant 0 : index
    %c0_140 = arith.constant 0 : index
    %235 = vector.load %arg8[%c0_138, %c0_139, %c0_140] : memref<1x32x32xf32, #tpu.memory_space<vmem>>, vector<1x32x32xf32>
    %236 = vector.shape_cast %235 : vector<1x32x32xf32> to vector<32x32xf32>
    %cst_141 = arith.constant dense<0.000000e+00> : vector<56x32xf32>
    %237 = tpu.matmul %234, %236, %cst_141 {dimension_numbers = #tpu.dot_dimension_numbers<[1], [0], [0], [1], [0, 0, 1, 1], [], []>} : vector<56x32xf32>, vector<32x32xf32>, vector<56x32xf32> -> vector<56x32xf32>
    %c0_142 = arith.constant 0 : index
    %c0_143 = arith.constant 0 : index
    %c0_144 = arith.constant 0 : index
    %238 = vector.load %arg9[%c0_142, %c0_143, %c0_144] : memref<1x1x32xf32, #tpu.memory_space<vmem>>, vector<1x1x32xf32>
    %239 = vector.shape_cast %238 : vector<1x1x32xf32> to vector<1x32xf32>
    %240 = vector.broadcast %239 : vector<1x32xf32> to vector<56x32xf32>
    %241 = arith.addf %237, %240 : vector<56x32xf32>
    %242 = math.tanh %241 : vector<56x32xf32>
    %c0_145 = arith.constant 0 : index
    %c0_146 = arith.constant 0 : index
    %243 = vector.load %arg2[%c0_145, %c0_146] : memref<56x1xf32, #tpu.memory_space<vmem>>, vector<56x1xf32>
    %244 = vector.broadcast %243 : vector<56x1xf32> to vector<56x32xf32>
    %245 = arith.mulf %242, %244 : vector<56x32xf32>
    %c0_147 = arith.constant 0 : index
    %c0_148 = arith.constant 0 : index
    %246 = vector.load %arg5[%c0_147, %c0_148] : memref<8x56xf32, #tpu.memory_space<vmem>>, vector<8x56xf32>
    %cst_149 = arith.constant dense<0.000000e+00> : vector<8x32xf32>
    %247 = tpu.matmul %246, %245, %cst_149 {dimension_numbers = #tpu.dot_dimension_numbers<[1], [0], [0], [1], [0, 0, 1, 1], [], []>} : vector<8x56xf32>, vector<56x32xf32>, vector<8x32xf32> -> vector<8x32xf32>
    %cst_150 = arith.constant 1.250000e-01 : f32
    %248 = vector.broadcast %cst_150 : f32 to vector<8x32xf32>
    %249 = arith.mulf %247, %248 : vector<8x32xf32>
    %c0_151 = arith.constant 0 : index
    %c0_152 = arith.constant 0 : index
    %250 = vector.load %arg10[%c0_151, %c0_152] : memref<32x96xf32, #tpu.memory_space<vmem>>, vector<32x96xf32>
    %cst_153 = arith.constant dense<0.000000e+00> : vector<8x96xf32>
    %251 = tpu.matmul %249, %250, %cst_153 {dimension_numbers = #tpu.dot_dimension_numbers<[1], [0], [0], [1], [0, 0, 1, 1], [], []>} : vector<8x32xf32>, vector<32x96xf32>, vector<8x96xf32> -> vector<8x96xf32>
    %c0_154 = arith.constant 0 : index
    %c0_155 = arith.constant 0 : index
    %252 = vector.load %arg11[%c0_154, %c0_155] : memref<1x96xf32, #tpu.memory_space<vmem>>, vector<1x96xf32>
    %253 = vector.broadcast %219 : vector<8x1xf32> to vector<8x96xf32>
    %254 = vector.broadcast %252 : vector<1x96xf32> to vector<8x96xf32>
    %255 = arith.mulf %253, %254 : vector<8x96xf32>
    %256 = vector.extract_strided_slice %255 {offsets = [0, 0], sizes = [8, 32], strides = [1, 1]} : vector<8x96xf32> to vector<8x32xf32>
    %257 = vector.extract_strided_slice %251 {offsets = [0, 0], sizes = [8, 32], strides = [1, 1]} : vector<8x96xf32> to vector<8x32xf32>
    %258 = arith.addf %256, %257 : vector<8x32xf32>
    %259 = arith.negf %258 : vector<8x32xf32>
    %260 = math.exp %259 : vector<8x32xf32>
    %cst_156 = arith.constant 1.000000e+00 : f32
    %261 = vector.broadcast %cst_156 : f32 to vector<8x32xf32>
    %262 = arith.addf %261, %260 : vector<8x32xf32>
    %263 = arith.divf %261, %262 : vector<8x32xf32>
    %264 = vector.extract_strided_slice %255 {offsets = [0, 32], sizes = [8, 32], strides = [1, 1]} : vector<8x96xf32> to vector<8x32xf32>
    %265 = vector.extract_strided_slice %251 {offsets = [0, 32], sizes = [8, 32], strides = [1, 1]} : vector<8x96xf32> to vector<8x32xf32>
    %266 = arith.addf %264, %265 : vector<8x32xf32>
    %267 = arith.negf %266 : vector<8x32xf32>
    %268 = math.exp %267 : vector<8x32xf32>
    %cst_157 = arith.constant 1.000000e+00 : f32
    %269 = vector.broadcast %cst_157 : f32 to vector<8x32xf32>
    %270 = arith.addf %269, %268 : vector<8x32xf32>
    %271 = arith.divf %269, %270 : vector<8x32xf32>
    %272 = vector.extract_strided_slice %255 {offsets = [0, 64], sizes = [8, 32], strides = [1, 1]} : vector<8x96xf32> to vector<8x32xf32>
    %273 = vector.extract_strided_slice %251 {offsets = [0, 64], sizes = [8, 32], strides = [1, 1]} : vector<8x96xf32> to vector<8x32xf32>
    %274 = arith.mulf %263, %273 : vector<8x32xf32>
    %275 = arith.addf %272, %274 : vector<8x32xf32>
    %276 = arith.negf %275 : vector<8x32xf32>
    %277 = math.exp %276 : vector<8x32xf32>
    %cst_158 = arith.constant 1.000000e+00 : f32
    %278 = vector.broadcast %cst_158 : f32 to vector<8x32xf32>
    %279 = arith.addf %278, %277 : vector<8x32xf32>
    %280 = arith.divf %278, %279 : vector<8x32xf32>
    %cst_159 = arith.constant 1.000000e+00 : f32
    %281 = vector.broadcast %cst_159 : f32 to vector<8x32xf32>
    %282 = arith.subf %281, %271 : vector<8x32xf32>
    %283 = arith.mulf %282, %280 : vector<8x32xf32>
    %284 = arith.mulf %271, %180 : vector<8x32xf32>
    %285 = arith.addf %283, %284 : vector<8x32xf32>
    %c0_160 = arith.constant 0 : index
    %c0_161 = arith.constant 0 : index
    %286 = vector.load %arg12[%c0_160, %c0_161] : memref<32x32xf32, #tpu.memory_space<vmem>>, vector<32x32xf32>
    %cst_162 = arith.constant dense<0.000000e+00> : vector<8x32xf32>
    %287 = tpu.matmul %285, %286, %cst_162 {dimension_numbers = #tpu.dot_dimension_numbers<[1], [0], [0], [1], [0, 0, 1, 1], [], []>} : vector<8x32xf32>, vector<32x32xf32>, vector<8x32xf32> -> vector<8x32xf32>
    %c0_163 = arith.constant 0 : index
    %c0_164 = arith.constant 0 : index
    %288 = vector.load %arg13[%c0_163, %c0_164] : memref<1x32xf32, #tpu.memory_space<vmem>>, vector<1x32xf32>
    %289 = vector.broadcast %288 : vector<1x32xf32> to vector<8x32xf32>
    %290 = arith.addf %287, %289 : vector<8x32xf32>
    %cst_165 = arith.constant 0.000000e+00 : f32
    %291 = vector.broadcast %cst_165 : f32 to vector<8x32xf32>
    %292 = arith.maximumf %290, %291 : vector<8x32xf32>
    %c0_166 = arith.constant 0 : index
    %c0_167 = arith.constant 0 : index
    %293 = vector.load %arg14[%c0_166, %c0_167] : memref<32x32xf32, #tpu.memory_space<vmem>>, vector<32x32xf32>
    %cst_168 = arith.constant dense<0.000000e+00> : vector<8x32xf32>
    %294 = tpu.matmul %292, %293, %cst_168 {dimension_numbers = #tpu.dot_dimension_numbers<[1], [0], [0], [1], [0, 0, 1, 1], [], []>} : vector<8x32xf32>, vector<32x32xf32>, vector<8x32xf32> -> vector<8x32xf32>
    %c0_169 = arith.constant 0 : index
    %c0_170 = arith.constant 0 : index
    %295 = vector.load %arg15[%c0_169, %c0_170] : memref<1x32xf32, #tpu.memory_space<vmem>>, vector<1x32xf32>
    %296 = vector.broadcast %295 : vector<1x32xf32> to vector<8x32xf32>
    %297 = arith.addf %294, %296 : vector<8x32xf32>
    %cst_171 = arith.constant 0.000000e+00 : f32
    %298 = vector.broadcast %cst_171 : f32 to vector<8x32xf32>
    %299 = arith.maximumf %297, %298 : vector<8x32xf32>
    %c0_172 = arith.constant 0 : index
    %c0_173 = arith.constant 0 : index
    %300 = vector.load %arg16[%c0_172, %c0_173] : memref<1x32xf32, #tpu.memory_space<vmem>>, vector<1x32xf32>
    %301 = vector.broadcast %300 : vector<1x32xf32> to vector<8x32xf32>
    %302 = arith.mulf %299, %301 : vector<8x32xf32>
    %cst_174 = arith.constant dense<0.000000e+00> : vector<8xf32>
    %303 = vector.multi_reduction <add>, %302, %cst_174 [1] : vector<8x32xf32> to vector<8xf32>
    %304 = vector.shape_cast %303 : vector<8xf32> to vector<8x1xf32>
    %c0_175 = arith.constant 0 : index
    %c0_176 = arith.constant 0 : index
    %305 = vector.load %arg17[%c0_175, %c0_176] : memref<1x1xf32, #tpu.memory_space<vmem>>, vector<1x1xf32>
    %306 = vector.broadcast %305 : vector<1x1xf32> to vector<8x1xf32>
    %307 = arith.addf %304, %306 : vector<8x1xf32>
    %cst_177 = arith.constant 1.000000e-01 : f32
    %308 = vector.broadcast %cst_177 : f32 to vector<8x1xf32>
    %309 = arith.maximumf %307, %308 : vector<8x1xf32>
    %310 = math.log %309 : vector<8x1xf32>
    %311 = vector.broadcast %0 : vector<1x1xf32> to vector<8x1xf32>
    %312 = arith.mulf %311, %310 : vector<8x1xf32>
    %313 = math.exp %312 : vector<8x1xf32>
    %314 = vector.broadcast %1 : vector<1x1xf32> to vector<8x1xf32>
    %315 = arith.addf %313, %314 : vector<8x1xf32>
    %316 = arith.divf %313, %315 : vector<8x1xf32>
    %317 = arith.mulf %316, %307 : vector<8x1xf32>
    %318 = arith.select %4, %317, %307 : vector<8x1xi1>, vector<8x1xf32>
    %c2_178 = arith.constant 2 : index
    %c0_179 = arith.constant 0 : index
    %c0_180 = arith.constant 0 : index
    %319 = vector.load %arg18[%c2_178, %c0_179, %c0_180] : memref<7x8x1xf32, #tpu.memory_space<vmem>>, vector<1x8x1xf32>
    %320 = vector.shape_cast %319 : vector<1x8x1xf32> to vector<8x1xf32>
    %321 = vector.shape_cast %318 : vector<8x1xf32> to vector<1x8x1xf32>
    tpu.vector_store %arg18[%c2_178, %c0_179, %c0_180], %321 {strides = array<i32>} : memref<7x8x1xf32, #tpu.memory_space<vmem>>, vector<1x8x1xf32>,
    %c3 = arith.constant 3 : index
    %c0_181 = arith.constant 0 : index
    %c0_182 = arith.constant 0 : index
    %322 = vector.load %arg0[%c3, %c0_181, %c0_182] : memref<8x8x1xf32, #tpu.memory_space<vmem>>, vector<1x8x1xf32>
    %323 = vector.shape_cast %322 : vector<1x8x1xf32> to vector<8x1xf32>
    %true_183 = arith.constant true
    %324 = arith.select %true_183, %323, %318 : vector<8x1xf32>
    %c0_184 = arith.constant 0 : index
    %c0_185 = arith.constant 0 : index
    %c0_186 = arith.constant 0 : index
    %325 = vector.load %arg6[%c0_184, %c0_185, %c0_186] : memref<1x32x64xf32, #tpu.memory_space<vmem>>, vector<1x32x64xf32>
    %326 = vector.shape_cast %325 : vector<1x32x64xf32> to vector<32x64xf32>
    %cst_187 = arith.constant dense<0.000000e+00> : vector<8x64xf32>
    %327 = tpu.matmul %285, %326, %cst_187 {dimension_numbers = #tpu.dot_dimension_numbers<[1], [0], [0], [1], [0, 0, 1, 1], [], []>} : vector<8x32xf32>, vector<32x64xf32>, vector<8x64xf32> -> vector<8x64xf32>
    %c0_188 = arith.constant 0 : index
    %c0_189 = arith.constant 0 : index
    %328 = vector.load %arg3[%c0_188, %c0_189] : memref<56x8xf32, #tpu.memory_space<vmem>>, vector<56x8xf32>
    %329 = vector.extract_strided_slice %327 {offsets = [0, 0], sizes = [8, 32], strides = [1, 1]} : vector<8x64xf32> to vector<8x32xf32>
    %cst_190 = arith.constant dense<0.000000e+00> : vector<56x32xf32>
    %330 = tpu.matmul %328, %329, %cst_190 {dimension_numbers = #tpu.dot_dimension_numbers<[1], [0], [0], [1], [0, 0, 1, 1], [], []>} : vector<56x8xf32>, vector<8x32xf32>, vector<56x32xf32> -> vector<56x32xf32>
    %c0_191 = arith.constant 0 : index
    %c0_192 = arith.constant 0 : index
    %331 = vector.load %arg4[%c0_191, %c0_192] : memref<56x8xf32, #tpu.memory_space<vmem>>, vector<56x8xf32>
    %332 = vector.extract_strided_slice %327 {offsets = [0, 32], sizes = [8, 32], strides = [1, 1]} : vector<8x64xf32> to vector<8x32xf32>
    %cst_193 = arith.constant dense<0.000000e+00> : vector<56x32xf32>
    %333 = tpu.matmul %331, %332, %cst_193 {dimension_numbers = #tpu.dot_dimension_numbers<[1], [0], [0], [1], [0, 0, 1, 1], [], []>} : vector<56x8xf32>, vector<8x32xf32>, vector<56x32xf32> -> vector<56x32xf32>
    %334 = arith.addf %330, %333 : vector<56x32xf32>
    %c0_194 = arith.constant 0 : index
    %c0_195 = arith.constant 0 : index
    %c0_196 = arith.constant 0 : index
    %335 = vector.load %arg7[%c0_194, %c0_195, %c0_196] : memref<1x1x32xf32, #tpu.memory_space<vmem>>, vector<1x1x32xf32>
    %336 = vector.shape_cast %335 : vector<1x1x32xf32> to vector<1x32xf32>
    %337 = vector.broadcast %336 : vector<1x32xf32> to vector<56x32xf32>
    %338 = arith.addf %334, %337 : vector<56x32xf32>
    %339 = math.tanh %338 : vector<56x32xf32>
    %c0_197 = arith.constant 0 : index
    %c0_198 = arith.constant 0 : index
    %c0_199 = arith.constant 0 : index
    %340 = vector.load %arg8[%c0_197, %c0_198, %c0_199] : memref<1x32x32xf32, #tpu.memory_space<vmem>>, vector<1x32x32xf32>
    %341 = vector.shape_cast %340 : vector<1x32x32xf32> to vector<32x32xf32>
    %cst_200 = arith.constant dense<0.000000e+00> : vector<56x32xf32>
    %342 = tpu.matmul %339, %341, %cst_200 {dimension_numbers = #tpu.dot_dimension_numbers<[1], [0], [0], [1], [0, 0, 1, 1], [], []>} : vector<56x32xf32>, vector<32x32xf32>, vector<56x32xf32> -> vector<56x32xf32>
    %c0_201 = arith.constant 0 : index
    %c0_202 = arith.constant 0 : index
    %c0_203 = arith.constant 0 : index
    %343 = vector.load %arg9[%c0_201, %c0_202, %c0_203] : memref<1x1x32xf32, #tpu.memory_space<vmem>>, vector<1x1x32xf32>
    %344 = vector.shape_cast %343 : vector<1x1x32xf32> to vector<1x32xf32>
    %345 = vector.broadcast %344 : vector<1x32xf32> to vector<56x32xf32>
    %346 = arith.addf %342, %345 : vector<56x32xf32>
    %347 = math.tanh %346 : vector<56x32xf32>
    %c0_204 = arith.constant 0 : index
    %c0_205 = arith.constant 0 : index
    %348 = vector.load %arg2[%c0_204, %c0_205] : memref<56x1xf32, #tpu.memory_space<vmem>>, vector<56x1xf32>
    %349 = vector.broadcast %348 : vector<56x1xf32> to vector<56x32xf32>
    %350 = arith.mulf %347, %349 : vector<56x32xf32>
    %c0_206 = arith.constant 0 : index
    %c0_207 = arith.constant 0 : index
    %351 = vector.load %arg5[%c0_206, %c0_207] : memref<8x56xf32, #tpu.memory_space<vmem>>, vector<8x56xf32>
    %cst_208 = arith.constant dense<0.000000e+00> : vector<8x32xf32>
    %352 = tpu.matmul %351, %350, %cst_208 {dimension_numbers = #tpu.dot_dimension_numbers<[1], [0], [0], [1], [0, 0, 1, 1], [], []>} : vector<8x56xf32>, vector<56x32xf32>, vector<8x32xf32> -> vector<8x32xf32>
    %cst_209 = arith.constant 1.250000e-01 : f32
    %353 = vector.broadcast %cst_209 : f32 to vector<8x32xf32>
    %354 = arith.mulf %352, %353 : vector<8x32xf32>
    %c0_210 = arith.constant 0 : index
    %c0_211 = arith.constant 0 : index
    %355 = vector.load %arg10[%c0_210, %c0_211] : memref<32x96xf32, #tpu.memory_space<vmem>>, vector<32x96xf32>
    %cst_212 = arith.constant dense<0.000000e+00> : vector<8x96xf32>
    %356 = tpu.matmul %354, %355, %cst_212 {dimension_numbers = #tpu.dot_dimension_numbers<[1], [0], [0], [1], [0, 0, 1, 1], [], []>} : vector<8x32xf32>, vector<32x96xf32>, vector<8x96xf32> -> vector<8x96xf32>
    %c0_213 = arith.constant 0 : index
    %c0_214 = arith.constant 0 : index
    %357 = vector.load %arg11[%c0_213, %c0_214] : memref<1x96xf32, #tpu.memory_space<vmem>>, vector<1x96xf32>
    %358 = vector.broadcast %324 : vector<8x1xf32> to vector<8x96xf32>
    %359 = vector.broadcast %357 : vector<1x96xf32> to vector<8x96xf32>
    %360 = arith.mulf %358, %359 : vector<8x96xf32>
    %361 = vector.extract_strided_slice %360 {offsets = [0, 0], sizes = [8, 32], strides = [1, 1]} : vector<8x96xf32> to vector<8x32xf32>
    %362 = vector.extract_strided_slice %356 {offsets = [0, 0], sizes = [8, 32], strides = [1, 1]} : vector<8x96xf32> to vector<8x32xf32>
    %363 = arith.addf %361, %362 : vector<8x32xf32>
    %364 = arith.negf %363 : vector<8x32xf32>
    %365 = math.exp %364 : vector<8x32xf32>
    %cst_215 = arith.constant 1.000000e+00 : f32
    %366 = vector.broadcast %cst_215 : f32 to vector<8x32xf32>
    %367 = arith.addf %366, %365 : vector<8x32xf32>
    %368 = arith.divf %366, %367 : vector<8x32xf32>
    %369 = vector.extract_strided_slice %360 {offsets = [0, 32], sizes = [8, 32], strides = [1, 1]} : vector<8x96xf32> to vector<8x32xf32>
    %370 = vector.extract_strided_slice %356 {offsets = [0, 32], sizes = [8, 32], strides = [1, 1]} : vector<8x96xf32> to vector<8x32xf32>
    %371 = arith.addf %369, %370 : vector<8x32xf32>
    %372 = arith.negf %371 : vector<8x32xf32>
    %373 = math.exp %372 : vector<8x32xf32>
    %cst_216 = arith.constant 1.000000e+00 : f32
    %374 = vector.broadcast %cst_216 : f32 to vector<8x32xf32>
    %375 = arith.addf %374, %373 : vector<8x32xf32>
    %376 = arith.divf %374, %375 : vector<8x32xf32>
    %377 = vector.extract_strided_slice %360 {offsets = [0, 64], sizes = [8, 32], strides = [1, 1]} : vector<8x96xf32> to vector<8x32xf32>
    %378 = vector.extract_strided_slice %356 {offsets = [0, 64], sizes = [8, 32], strides = [1, 1]} : vector<8x96xf32> to vector<8x32xf32>
    %379 = arith.mulf %368, %378 : vector<8x32xf32>
    %380 = arith.addf %377, %379 : vector<8x32xf32>
    %381 = arith.negf %380 : vector<8x32xf32>
    %382 = math.exp %381 : vector<8x32xf32>
    %cst_217 = arith.constant 1.000000e+00 : f32
    %383 = vector.broadcast %cst_217 : f32 to vector<8x32xf32>
    %384 = arith.addf %383, %382 : vector<8x32xf32>
    %385 = arith.divf %383, %384 : vector<8x32xf32>
    %cst_218 = arith.constant 1.000000e+00 : f32
    %386 = vector.broadcast %cst_218 : f32 to vector<8x32xf32>
    %387 = arith.subf %386, %376 : vector<8x32xf32>
    %388 = arith.mulf %387, %385 : vector<8x32xf32>
    %389 = arith.mulf %376, %285 : vector<8x32xf32>
    %390 = arith.addf %388, %389 : vector<8x32xf32>
    %c0_219 = arith.constant 0 : index
    %c0_220 = arith.constant 0 : index
    %391 = vector.load %arg12[%c0_219, %c0_220] : memref<32x32xf32, #tpu.memory_space<vmem>>, vector<32x32xf32>
    %cst_221 = arith.constant dense<0.000000e+00> : vector<8x32xf32>
    %392 = tpu.matmul %390, %391, %cst_221 {dimension_numbers = #tpu.dot_dimension_numbers<[1], [0], [0], [1], [0, 0, 1, 1], [], []>} : vector<8x32xf32>, vector<32x32xf32>, vector<8x32xf32> -> vector<8x32xf32>
    %c0_222 = arith.constant 0 : index
    %c0_223 = arith.constant 0 : index
    %393 = vector.load %arg13[%c0_222, %c0_223] : memref<1x32xf32, #tpu.memory_space<vmem>>, vector<1x32xf32>
    %394 = vector.broadcast %393 : vector<1x32xf32> to vector<8x32xf32>
    %395 = arith.addf %392, %394 : vector<8x32xf32>
    %cst_224 = arith.constant 0.000000e+00 : f32
    %396 = vector.broadcast %cst_224 : f32 to vector<8x32xf32>
    %397 = arith.maximumf %395, %396 : vector<8x32xf32>
    %c0_225 = arith.constant 0 : index
    %c0_226 = arith.constant 0 : index
    %398 = vector.load %arg14[%c0_225, %c0_226] : memref<32x32xf32, #tpu.memory_space<vmem>>, vector<32x32xf32>
    %cst_227 = arith.constant dense<0.000000e+00> : vector<8x32xf32>
    %399 = tpu.matmul %397, %398, %cst_227 {dimension_numbers = #tpu.dot_dimension_numbers<[1], [0], [0], [1], [0, 0, 1, 1], [], []>} : vector<8x32xf32>, vector<32x32xf32>, vector<8x32xf32> -> vector<8x32xf32>
    %c0_228 = arith.constant 0 : index
    %c0_229 = arith.constant 0 : index
    %400 = vector.load %arg15[%c0_228, %c0_229] : memref<1x32xf32, #tpu.memory_space<vmem>>, vector<1x32xf32>
    %401 = vector.broadcast %400 : vector<1x32xf32> to vector<8x32xf32>
    %402 = arith.addf %399, %401 : vector<8x32xf32>
    %cst_230 = arith.constant 0.000000e+00 : f32
    %403 = vector.broadcast %cst_230 : f32 to vector<8x32xf32>
    %404 = arith.maximumf %402, %403 : vector<8x32xf32>
    %c0_231 = arith.constant 0 : index
    %c0_232 = arith.constant 0 : index
    %405 = vector.load %arg16[%c0_231, %c0_232] : memref<1x32xf32, #tpu.memory_space<vmem>>, vector<1x32xf32>
    %406 = vector.broadcast %405 : vector<1x32xf32> to vector<8x32xf32>
    %407 = arith.mulf %404, %406 : vector<8x32xf32>
    %cst_233 = arith.constant dense<0.000000e+00> : vector<8xf32>
    %408 = vector.multi_reduction <add>, %407, %cst_233 [1] : vector<8x32xf32> to vector<8xf32>
    %409 = vector.shape_cast %408 : vector<8xf32> to vector<8x1xf32>
    %c0_234 = arith.constant 0 : index
    %c0_235 = arith.constant 0 : index
    %410 = vector.load %arg17[%c0_234, %c0_235] : memref<1x1xf32, #tpu.memory_space<vmem>>, vector<1x1xf32>
    %411 = vector.broadcast %410 : vector<1x1xf32> to vector<8x1xf32>
    %412 = arith.addf %409, %411 : vector<8x1xf32>
    %cst_236 = arith.constant 1.000000e-01 : f32
    %413 = vector.broadcast %cst_236 : f32 to vector<8x1xf32>
    %414 = arith.maximumf %412, %413 : vector<8x1xf32>
    %415 = math.log %414 : vector<8x1xf32>
    %416 = vector.broadcast %0 : vector<1x1xf32> to vector<8x1xf32>
    %417 = arith.mulf %416, %415 : vector<8x1xf32>
    %418 = math.exp %417 : vector<8x1xf32>
    %419 = vector.broadcast %1 : vector<1x1xf32> to vector<8x1xf32>
    %420 = arith.addf %418, %419 : vector<8x1xf32>
    %421 = arith.divf %418, %420 : vector<8x1xf32>
    %422 = arith.mulf %421, %412 : vector<8x1xf32>
    %423 = arith.select %4, %422, %412 : vector<8x1xi1>, vector<8x1xf32>
    %c3_237 = arith.constant 3 : index
    %c0_238 = arith.constant 0 : index
    %c0_239 = arith.constant 0 : index
    %424 = vector.load %arg18[%c3_237, %c0_238, %c0_239] : memref<7x8x1xf32, #tpu.memory_space<vmem>>, vector<1x8x1xf32>
    %425 = vector.shape_cast %424 : vector<1x8x1xf32> to vector<8x1xf32>
    %426 = vector.shape_cast %423 : vector<8x1xf32> to vector<1x8x1xf32>
    tpu.vector_store %arg18[%c3_237, %c0_238, %c0_239], %426 {strides = array<i32>} : memref<7x8x1xf32, #tpu.memory_space<vmem>>, vector<1x8x1xf32>,
    %c4 = arith.constant 4 : index
    %c0_240 = arith.constant 0 : index
    %c0_241 = arith.constant 0 : index
    %427 = vector.load %arg0[%c4, %c0_240, %c0_241] : memref<8x8x1xf32, #tpu.memory_space<vmem>>, vector<1x8x1xf32>
    %428 = vector.shape_cast %427 : vector<1x8x1xf32> to vector<8x1xf32>
    %false = arith.constant false
    %429 = arith.select %false, %428, %423 : vector<8x1xf32>
    %c0_242 = arith.constant 0 : index
    %c0_243 = arith.constant 0 : index
    %c0_244 = arith.constant 0 : index
    %430 = vector.load %arg6[%c0_242, %c0_243, %c0_244] : memref<1x32x64xf32, #tpu.memory_space<vmem>>, vector<1x32x64xf32>
    %431 = vector.shape_cast %430 : vector<1x32x64xf32> to vector<32x64xf32>
    %cst_245 = arith.constant dense<0.000000e+00> : vector<8x64xf32>
    %432 = tpu.matmul %390, %431, %cst_245 {dimension_numbers = #tpu.dot_dimension_numbers<[1], [0], [0], [1], [0, 0, 1, 1], [], []>} : vector<8x32xf32>, vector<32x64xf32>, vector<8x64xf32> -> vector<8x64xf32>
    %c0_246 = arith.constant 0 : index
    %c0_247 = arith.constant 0 : index
    %433 = vector.load %arg3[%c0_246, %c0_247] : memref<56x8xf32, #tpu.memory_space<vmem>>, vector<56x8xf32>
    %434 = vector.extract_strided_slice %432 {offsets = [0, 0], sizes = [8, 32], strides = [1, 1]} : vector<8x64xf32> to vector<8x32xf32>
    %cst_248 = arith.constant dense<0.000000e+00> : vector<56x32xf32>
    %435 = tpu.matmul %433, %434, %cst_248 {dimension_numbers = #tpu.dot_dimension_numbers<[1], [0], [0], [1], [0, 0, 1, 1], [], []>} : vector<56x8xf32>, vector<8x32xf32>, vector<56x32xf32> -> vector<56x32xf32>
    %c0_249 = arith.constant 0 : index
    %c0_250 = arith.constant 0 : index
    %436 = vector.load %arg4[%c0_249, %c0_250] : memref<56x8xf32, #tpu.memory_space<vmem>>, vector<56x8xf32>
    %437 = vector.extract_strided_slice %432 {offsets = [0, 32], sizes = [8, 32], strides = [1, 1]} : vector<8x64xf32> to vector<8x32xf32>
    %cst_251 = arith.constant dense<0.000000e+00> : vector<56x32xf32>
    %438 = tpu.matmul %436, %437, %cst_251 {dimension_numbers = #tpu.dot_dimension_numbers<[1], [0], [0], [1], [0, 0, 1, 1], [], []>} : vector<56x8xf32>, vector<8x32xf32>, vector<56x32xf32> -> vector<56x32xf32>
    %439 = arith.addf %435, %438 : vector<56x32xf32>
    %c0_252 = arith.constant 0 : index
    %c0_253 = arith.constant 0 : index
    %c0_254 = arith.constant 0 : index
    %440 = vector.load %arg7[%c0_252, %c0_253, %c0_254] : memref<1x1x32xf32, #tpu.memory_space<vmem>>, vector<1x1x32xf32>
    %441 = vector.shape_cast %440 : vector<1x1x32xf32> to vector<1x32xf32>
    %442 = vector.broadcast %441 : vector<1x32xf32> to vector<56x32xf32>
    %443 = arith.addf %439, %442 : vector<56x32xf32>
    %444 = math.tanh %443 : vector<56x32xf32>
    %c0_255 = arith.constant 0 : index
    %c0_256 = arith.constant 0 : index
    %c0_257 = arith.constant 0 : index
    %445 = vector.load %arg8[%c0_255, %c0_256, %c0_257] : memref<1x32x32xf32, #tpu.memory_space<vmem>>, vector<1x32x32xf32>
    %446 = vector.shape_cast %445 : vector<1x32x32xf32> to vector<32x32xf32>
    %cst_258 = arith.constant dense<0.000000e+00> : vector<56x32xf32>
    %447 = tpu.matmul %444, %446, %cst_258 {dimension_numbers = #tpu.dot_dimension_numbers<[1], [0], [0], [1], [0, 0, 1, 1], [], []>} : vector<56x32xf32>, vector<32x32xf32>, vector<56x32xf32> -> vector<56x32xf32>
    %c0_259 = arith.constant 0 : index
    %c0_260 = arith.constant 0 : index
    %c0_261 = arith.constant 0 : index
    %448 = vector.load %arg9[%c0_259, %c0_260, %c0_261] : memref<1x1x32xf32, #tpu.memory_space<vmem>>, vector<1x1x32xf32>
    %449 = vector.shape_cast %448 : vector<1x1x32xf32> to vector<1x32xf32>
    %450 = vector.broadcast %449 : vector<1x32xf32> to vector<56x32xf32>
    %451 = arith.addf %447, %450 : vector<56x32xf32>
    %452 = math.tanh %451 : vector<56x32xf32>
    %c0_262 = arith.constant 0 : index
    %c0_263 = arith.constant 0 : index
    %453 = vector.load %arg2[%c0_262, %c0_263] : memref<56x1xf32, #tpu.memory_space<vmem>>, vector<56x1xf32>
    %454 = vector.broadcast %453 : vector<56x1xf32> to vector<56x32xf32>
    %455 = arith.mulf %452, %454 : vector<56x32xf32>
    %c0_264 = arith.constant 0 : index
    %c0_265 = arith.constant 0 : index
    %456 = vector.load %arg5[%c0_264, %c0_265] : memref<8x56xf32, #tpu.memory_space<vmem>>, vector<8x56xf32>
    %cst_266 = arith.constant dense<0.000000e+00> : vector<8x32xf32>
    %457 = tpu.matmul %456, %455, %cst_266 {dimension_numbers = #tpu.dot_dimension_numbers<[1], [0], [0], [1], [0, 0, 1, 1], [], []>} : vector<8x56xf32>, vector<56x32xf32>, vector<8x32xf32> -> vector<8x32xf32>
    %cst_267 = arith.constant 1.250000e-01 : f32
    %458 = vector.broadcast %cst_267 : f32 to vector<8x32xf32>
    %459 = arith.mulf %457, %458 : vector<8x32xf32>
    %c0_268 = arith.constant 0 : index
    %c0_269 = arith.constant 0 : index
    %460 = vector.load %arg10[%c0_268, %c0_269] : memref<32x96xf32, #tpu.memory_space<vmem>>, vector<32x96xf32>
    %cst_270 = arith.constant dense<0.000000e+00> : vector<8x96xf32>
    %461 = tpu.matmul %459, %460, %cst_270 {dimension_numbers = #tpu.dot_dimension_numbers<[1], [0], [0], [1], [0, 0, 1, 1], [], []>} : vector<8x32xf32>, vector<32x96xf32>, vector<8x96xf32> -> vector<8x96xf32>
    %c0_271 = arith.constant 0 : index
    %c0_272 = arith.constant 0 : index
    %462 = vector.load %arg11[%c0_271, %c0_272] : memref<1x96xf32, #tpu.memory_space<vmem>>, vector<1x96xf32>
    %463 = vector.broadcast %429 : vector<8x1xf32> to vector<8x96xf32>
    %464 = vector.broadcast %462 : vector<1x96xf32> to vector<8x96xf32>
    %465 = arith.mulf %463, %464 : vector<8x96xf32>
    %466 = vector.extract_strided_slice %465 {offsets = [0, 0], sizes = [8, 32], strides = [1, 1]} : vector<8x96xf32> to vector<8x32xf32>
    %467 = vector.extract_strided_slice %461 {offsets = [0, 0], sizes = [8, 32], strides = [1, 1]} : vector<8x96xf32> to vector<8x32xf32>
    %468 = arith.addf %466, %467 : vector<8x32xf32>
    %469 = arith.negf %468 : vector<8x32xf32>
    %470 = math.exp %469 : vector<8x32xf32>
    %cst_273 = arith.constant 1.000000e+00 : f32
    %471 = vector.broadcast %cst_273 : f32 to vector<8x32xf32>
    %472 = arith.addf %471, %470 : vector<8x32xf32>
    %473 = arith.divf %471, %472 : vector<8x32xf32>
    %474 = vector.extract_strided_slice %465 {offsets = [0, 32], sizes = [8, 32], strides = [1, 1]} : vector<8x96xf32> to vector<8x32xf32>
    %475 = vector.extract_strided_slice %461 {offsets = [0, 32], sizes = [8, 32], strides = [1, 1]} : vector<8x96xf32> to vector<8x32xf32>
    %476 = arith.addf %474, %475 : vector<8x32xf32>
    %477 = arith.negf %476 : vector<8x32xf32>
    %478 = math.exp %477 : vector<8x32xf32>
    %cst_274 = arith.constant 1.000000e+00 : f32
    %479 = vector.broadcast %cst_274 : f32 to vector<8x32xf32>
    %480 = arith.addf %479, %478 : vector<8x32xf32>
    %481 = arith.divf %479, %480 : vector<8x32xf32>
    %482 = vector.extract_strided_slice %465 {offsets = [0, 64], sizes = [8, 32], strides = [1, 1]} : vector<8x96xf32> to vector<8x32xf32>
    %483 = vector.extract_strided_slice %461 {offsets = [0, 64], sizes = [8, 32], strides = [1, 1]} : vector<8x96xf32> to vector<8x32xf32>
    %484 = arith.mulf %473, %483 : vector<8x32xf32>
    %485 = arith.addf %482, %484 : vector<8x32xf32>
    %486 = arith.negf %485 : vector<8x32xf32>
    %487 = math.exp %486 : vector<8x32xf32>
    %cst_275 = arith.constant 1.000000e+00 : f32
    %488 = vector.broadcast %cst_275 : f32 to vector<8x32xf32>
    %489 = arith.addf %488, %487 : vector<8x32xf32>
    %490 = arith.divf %488, %489 : vector<8x32xf32>
    %cst_276 = arith.constant 1.000000e+00 : f32
    %491 = vector.broadcast %cst_276 : f32 to vector<8x32xf32>
    %492 = arith.subf %491, %481 : vector<8x32xf32>
    %493 = arith.mulf %492, %490 : vector<8x32xf32>
    %494 = arith.mulf %481, %390 : vector<8x32xf32>
    %495 = arith.addf %493, %494 : vector<8x32xf32>
    %c0_277 = arith.constant 0 : index
    %c0_278 = arith.constant 0 : index
    %496 = vector.load %arg12[%c0_277, %c0_278] : memref<32x32xf32, #tpu.memory_space<vmem>>, vector<32x32xf32>
    %cst_279 = arith.constant dense<0.000000e+00> : vector<8x32xf32>
    %497 = tpu.matmul %495, %496, %cst_279 {dimension_numbers = #tpu.dot_dimension_numbers<[1], [0], [0], [1], [0, 0, 1, 1], [], []>} : vector<8x32xf32>, vector<32x32xf32>, vector<8x32xf32> -> vector<8x32xf32>
    %c0_280 = arith.constant 0 : index
    %c0_281 = arith.constant 0 : index
    %498 = vector.load %arg13[%c0_280, %c0_281] : memref<1x32xf32, #tpu.memory_space<vmem>>, vector<1x32xf32>
    %499 = vector.broadcast %498 : vector<1x32xf32> to vector<8x32xf32>
    %500 = arith.addf %497, %499 : vector<8x32xf32>
    %cst_282 = arith.constant 0.000000e+00 : f32
    %501 = vector.broadcast %cst_282 : f32 to vector<8x32xf32>
    %502 = arith.maximumf %500, %501 : vector<8x32xf32>
    %c0_283 = arith.constant 0 : index
    %c0_284 = arith.constant 0 : index
    %503 = vector.load %arg14[%c0_283, %c0_284] : memref<32x32xf32, #tpu.memory_space<vmem>>, vector<32x32xf32>
    %cst_285 = arith.constant dense<0.000000e+00> : vector<8x32xf32>
    %504 = tpu.matmul %502, %503, %cst_285 {dimension_numbers = #tpu.dot_dimension_numbers<[1], [0], [0], [1], [0, 0, 1, 1], [], []>} : vector<8x32xf32>, vector<32x32xf32>, vector<8x32xf32> -> vector<8x32xf32>
    %c0_286 = arith.constant 0 : index
    %c0_287 = arith.constant 0 : index
    %505 = vector.load %arg15[%c0_286, %c0_287] : memref<1x32xf32, #tpu.memory_space<vmem>>, vector<1x32xf32>
    %506 = vector.broadcast %505 : vector<1x32xf32> to vector<8x32xf32>
    %507 = arith.addf %504, %506 : vector<8x32xf32>
    %cst_288 = arith.constant 0.000000e+00 : f32
    %508 = vector.broadcast %cst_288 : f32 to vector<8x32xf32>
    %509 = arith.maximumf %507, %508 : vector<8x32xf32>
    %c0_289 = arith.constant 0 : index
    %c0_290 = arith.constant 0 : index
    %510 = vector.load %arg16[%c0_289, %c0_290] : memref<1x32xf32, #tpu.memory_space<vmem>>, vector<1x32xf32>
    %511 = vector.broadcast %510 : vector<1x32xf32> to vector<8x32xf32>
    %512 = arith.mulf %509, %511 : vector<8x32xf32>
    %cst_291 = arith.constant dense<0.000000e+00> : vector<8xf32>
    %513 = vector.multi_reduction <add>, %512, %cst_291 [1] : vector<8x32xf32> to vector<8xf32>
    %514 = vector.shape_cast %513 : vector<8xf32> to vector<8x1xf32>
    %c0_292 = arith.constant 0 : index
    %c0_293 = arith.constant 0 : index
    %515 = vector.load %arg17[%c0_292, %c0_293] : memref<1x1xf32, #tpu.memory_space<vmem>>, vector<1x1xf32>
    %516 = vector.broadcast %515 : vector<1x1xf32> to vector<8x1xf32>
    %517 = arith.addf %514, %516 : vector<8x1xf32>
    %cst_294 = arith.constant 1.000000e-01 : f32
    %518 = vector.broadcast %cst_294 : f32 to vector<8x1xf32>
    %519 = arith.maximumf %517, %518 : vector<8x1xf32>
    %520 = math.log %519 : vector<8x1xf32>
    %521 = vector.broadcast %0 : vector<1x1xf32> to vector<8x1xf32>
    %522 = arith.mulf %521, %520 : vector<8x1xf32>
    %523 = math.exp %522 : vector<8x1xf32>
    %524 = vector.broadcast %1 : vector<1x1xf32> to vector<8x1xf32>
    %525 = arith.addf %523, %524 : vector<8x1xf32>
    %526 = arith.divf %523, %525 : vector<8x1xf32>
    %527 = arith.mulf %526, %517 : vector<8x1xf32>
    %528 = arith.select %4, %527, %517 : vector<8x1xi1>, vector<8x1xf32>
    %c4_295 = arith.constant 4 : index
    %c0_296 = arith.constant 0 : index
    %c0_297 = arith.constant 0 : index
    %529 = vector.load %arg18[%c4_295, %c0_296, %c0_297] : memref<7x8x1xf32, #tpu.memory_space<vmem>>, vector<1x8x1xf32>
    %530 = vector.shape_cast %529 : vector<1x8x1xf32> to vector<8x1xf32>
    %531 = vector.shape_cast %528 : vector<8x1xf32> to vector<1x8x1xf32>
    tpu.vector_store %arg18[%c4_295, %c0_296, %c0_297], %531 {strides = array<i32>} : memref<7x8x1xf32, #tpu.memory_space<vmem>>, vector<1x8x1xf32>,
    %c5 = arith.constant 5 : index
    %c0_298 = arith.constant 0 : index
    %c0_299 = arith.constant 0 : index
    %532 = vector.load %arg0[%c5, %c0_298, %c0_299] : memref<8x8x1xf32, #tpu.memory_space<vmem>>, vector<1x8x1xf32>
    %533 = vector.shape_cast %532 : vector<1x8x1xf32> to vector<8x1xf32>
    %false_300 = arith.constant false
    %534 = arith.select %false_300, %533, %528 : vector<8x1xf32>
    %c0_301 = arith.constant 0 : index
    %c0_302 = arith.constant 0 : index
    %c0_303 = arith.constant 0 : index
    %535 = vector.load %arg6[%c0_301, %c0_302, %c0_303] : memref<1x32x64xf32, #tpu.memory_space<vmem>>, vector<1x32x64xf32>
    %536 = vector.shape_cast %535 : vector<1x32x64xf32> to vector<32x64xf32>
    %cst_304 = arith.constant dense<0.000000e+00> : vector<8x64xf32>
    %537 = tpu.matmul %495, %536, %cst_304 {dimension_numbers = #tpu.dot_dimension_numbers<[1], [0], [0], [1], [0, 0, 1, 1], [], []>} : vector<8x32xf32>, vector<32x64xf32>, vector<8x64xf32> -> vector<8x64xf32>
    %c0_305 = arith.constant 0 : index
    %c0_306 = arith.constant 0 : index
    %538 = vector.load %arg3[%c0_305, %c0_306] : memref<56x8xf32, #tpu.memory_space<vmem>>, vector<56x8xf32>
    %539 = vector.extract_strided_slice %537 {offsets = [0, 0], sizes = [8, 32], strides = [1, 1]} : vector<8x64xf32> to vector<8x32xf32>
    %cst_307 = arith.constant dense<0.000000e+00> : vector<56x32xf32>
    %540 = tpu.matmul %538, %539, %cst_307 {dimension_numbers = #tpu.dot_dimension_numbers<[1], [0], [0], [1], [0, 0, 1, 1], [], []>} : vector<56x8xf32>, vector<8x32xf32>, vector<56x32xf32> -> vector<56x32xf32>
    %c0_308 = arith.constant 0 : index
    %c0_309 = arith.constant 0 : index
    %541 = vector.load %arg4[%c0_308, %c0_309] : memref<56x8xf32, #tpu.memory_space<vmem>>, vector<56x8xf32>
    %542 = vector.extract_strided_slice %537 {offsets = [0, 32], sizes = [8, 32], strides = [1, 1]} : vector<8x64xf32> to vector<8x32xf32>
    %cst_310 = arith.constant dense<0.000000e+00> : vector<56x32xf32>
    %543 = tpu.matmul %541, %542, %cst_310 {dimension_numbers = #tpu.dot_dimension_numbers<[1], [0], [0], [1], [0, 0, 1, 1], [], []>} : vector<56x8xf32>, vector<8x32xf32>, vector<56x32xf32> -> vector<56x32xf32>
    %544 = arith.addf %540, %543 : vector<56x32xf32>
    %c0_311 = arith.constant 0 : index
    %c0_312 = arith.constant 0 : index
    %c0_313 = arith.constant 0 : index
    %545 = vector.load %arg7[%c0_311, %c0_312, %c0_313] : memref<1x1x32xf32, #tpu.memory_space<vmem>>, vector<1x1x32xf32>
    %546 = vector.shape_cast %545 : vector<1x1x32xf32> to vector<1x32xf32>
    %547 = vector.broadcast %546 : vector<1x32xf32> to vector<56x32xf32>
    %548 = arith.addf %544, %547 : vector<56x32xf32>
    %549 = math.tanh %548 : vector<56x32xf32>
    %c0_314 = arith.constant 0 : index
    %c0_315 = arith.constant 0 : index
    %c0_316 = arith.constant 0 : index
    %550 = vector.load %arg8[%c0_314, %c0_315, %c0_316] : memref<1x32x32xf32, #tpu.memory_space<vmem>>, vector<1x32x32xf32>
    %551 = vector.shape_cast %550 : vector<1x32x32xf32> to vector<32x32xf32>
    %cst_317 = arith.constant dense<0.000000e+00> : vector<56x32xf32>
    %552 = tpu.matmul %549, %551, %cst_317 {dimension_numbers = #tpu.dot_dimension_numbers<[1], [0], [0], [1], [0, 0, 1, 1], [], []>} : vector<56x32xf32>, vector<32x32xf32>, vector<56x32xf32> -> vector<56x32xf32>
    %c0_318 = arith.constant 0 : index
    %c0_319 = arith.constant 0 : index
    %c0_320 = arith.constant 0 : index
    %553 = vector.load %arg9[%c0_318, %c0_319, %c0_320] : memref<1x1x32xf32, #tpu.memory_space<vmem>>, vector<1x1x32xf32>
    %554 = vector.shape_cast %553 : vector<1x1x32xf32> to vector<1x32xf32>
    %555 = vector.broadcast %554 : vector<1x32xf32> to vector<56x32xf32>
    %556 = arith.addf %552, %555 : vector<56x32xf32>
    %557 = math.tanh %556 : vector<56x32xf32>
    %c0_321 = arith.constant 0 : index
    %c0_322 = arith.constant 0 : index
    %558 = vector.load %arg2[%c0_321, %c0_322] : memref<56x1xf32, #tpu.memory_space<vmem>>, vector<56x1xf32>
    %559 = vector.broadcast %558 : vector<56x1xf32> to vector<56x32xf32>
    %560 = arith.mulf %557, %559 : vector<56x32xf32>
    %c0_323 = arith.constant 0 : index
    %c0_324 = arith.constant 0 : index
    %561 = vector.load %arg5[%c0_323, %c0_324] : memref<8x56xf32, #tpu.memory_space<vmem>>, vector<8x56xf32>
    %cst_325 = arith.constant dense<0.000000e+00> : vector<8x32xf32>
    %562 = tpu.matmul %561, %560, %cst_325 {dimension_numbers = #tpu.dot_dimension_numbers<[1], [0], [0], [1], [0, 0, 1, 1], [], []>} : vector<8x56xf32>, vector<56x32xf32>, vector<8x32xf32> -> vector<8x32xf32>
    %cst_326 = arith.constant 1.250000e-01 : f32
    %563 = vector.broadcast %cst_326 : f32 to vector<8x32xf32>
    %564 = arith.mulf %562, %563 : vector<8x32xf32>
    %c0_327 = arith.constant 0 : index
    %c0_328 = arith.constant 0 : index
    %565 = vector.load %arg10[%c0_327, %c0_328] : memref<32x96xf32, #tpu.memory_space<vmem>>, vector<32x96xf32>
    %cst_329 = arith.constant dense<0.000000e+00> : vector<8x96xf32>
    %566 = tpu.matmul %564, %565, %cst_329 {dimension_numbers = #tpu.dot_dimension_numbers<[1], [0], [0], [1], [0, 0, 1, 1], [], []>} : vector<8x32xf32>, vector<32x96xf32>, vector<8x96xf32> -> vector<8x96xf32>
    %c0_330 = arith.constant 0 : index
    %c0_331 = arith.constant 0 : index
    %567 = vector.load %arg11[%c0_330, %c0_331] : memref<1x96xf32, #tpu.memory_space<vmem>>, vector<1x96xf32>
    %568 = vector.broadcast %534 : vector<8x1xf32> to vector<8x96xf32>
    %569 = vector.broadcast %567 : vector<1x96xf32> to vector<8x96xf32>
    %570 = arith.mulf %568, %569 : vector<8x96xf32>
    %571 = vector.extract_strided_slice %570 {offsets = [0, 0], sizes = [8, 32], strides = [1, 1]} : vector<8x96xf32> to vector<8x32xf32>
    %572 = vector.extract_strided_slice %566 {offsets = [0, 0], sizes = [8, 32], strides = [1, 1]} : vector<8x96xf32> to vector<8x32xf32>
    %573 = arith.addf %571, %572 : vector<8x32xf32>
    %574 = arith.negf %573 : vector<8x32xf32>
    %575 = math.exp %574 : vector<8x32xf32>
    %cst_332 = arith.constant 1.000000e+00 : f32
    %576 = vector.broadcast %cst_332 : f32 to vector<8x32xf32>
    %577 = arith.addf %576, %575 : vector<8x32xf32>
    %578 = arith.divf %576, %577 : vector<8x32xf32>
    %579 = vector.extract_strided_slice %570 {offsets = [0, 32], sizes = [8, 32], strides = [1, 1]} : vector<8x96xf32> to vector<8x32xf32>
    %580 = vector.extract_strided_slice %566 {offsets = [0, 32], sizes = [8, 32], strides = [1, 1]} : vector<8x96xf32> to vector<8x32xf32>
    %581 = arith.addf %579, %580 : vector<8x32xf32>
    %582 = arith.negf %581 : vector<8x32xf32>
    %583 = math.exp %582 : vector<8x32xf32>
    %cst_333 = arith.constant 1.000000e+00 : f32
    %584 = vector.broadcast %cst_333 : f32 to vector<8x32xf32>
    %585 = arith.addf %584, %583 : vector<8x32xf32>
    %586 = arith.divf %584, %585 : vector<8x32xf32>
    %587 = vector.extract_strided_slice %570 {offsets = [0, 64], sizes = [8, 32], strides = [1, 1]} : vector<8x96xf32> to vector<8x32xf32>
    %588 = vector.extract_strided_slice %566 {offsets = [0, 64], sizes = [8, 32], strides = [1, 1]} : vector<8x96xf32> to vector<8x32xf32>
    %589 = arith.mulf %578, %588 : vector<8x32xf32>
    %590 = arith.addf %587, %589 : vector<8x32xf32>
    %591 = arith.negf %590 : vector<8x32xf32>
    %592 = math.exp %591 : vector<8x32xf32>
    %cst_334 = arith.constant 1.000000e+00 : f32
    %593 = vector.broadcast %cst_334 : f32 to vector<8x32xf32>
    %594 = arith.addf %593, %592 : vector<8x32xf32>
    %595 = arith.divf %593, %594 : vector<8x32xf32>
    %cst_335 = arith.constant 1.000000e+00 : f32
    %596 = vector.broadcast %cst_335 : f32 to vector<8x32xf32>
    %597 = arith.subf %596, %586 : vector<8x32xf32>
    %598 = arith.mulf %597, %595 : vector<8x32xf32>
    %599 = arith.mulf %586, %495 : vector<8x32xf32>
    %600 = arith.addf %598, %599 : vector<8x32xf32>
    %c0_336 = arith.constant 0 : index
    %c0_337 = arith.constant 0 : index
    %601 = vector.load %arg12[%c0_336, %c0_337] : memref<32x32xf32, #tpu.memory_space<vmem>>, vector<32x32xf32>
    %cst_338 = arith.constant dense<0.000000e+00> : vector<8x32xf32>
    %602 = tpu.matmul %600, %601, %cst_338 {dimension_numbers = #tpu.dot_dimension_numbers<[1], [0], [0], [1], [0, 0, 1, 1], [], []>} : vector<8x32xf32>, vector<32x32xf32>, vector<8x32xf32> -> vector<8x32xf32>
    %c0_339 = arith.constant 0 : index
    %c0_340 = arith.constant 0 : index
    %603 = vector.load %arg13[%c0_339, %c0_340] : memref<1x32xf32, #tpu.memory_space<vmem>>, vector<1x32xf32>
    %604 = vector.broadcast %603 : vector<1x32xf32> to vector<8x32xf32>
    %605 = arith.addf %602, %604 : vector<8x32xf32>
    %cst_341 = arith.constant 0.000000e+00 : f32
    %606 = vector.broadcast %cst_341 : f32 to vector<8x32xf32>
    %607 = arith.maximumf %605, %606 : vector<8x32xf32>
    %c0_342 = arith.constant 0 : index
    %c0_343 = arith.constant 0 : index
    %608 = vector.load %arg14[%c0_342, %c0_343] : memref<32x32xf32, #tpu.memory_space<vmem>>, vector<32x32xf32>
    %cst_344 = arith.constant dense<0.000000e+00> : vector<8x32xf32>
    %609 = tpu.matmul %607, %608, %cst_344 {dimension_numbers = #tpu.dot_dimension_numbers<[1], [0], [0], [1], [0, 0, 1, 1], [], []>} : vector<8x32xf32>, vector<32x32xf32>, vector<8x32xf32> -> vector<8x32xf32>
    %c0_345 = arith.constant 0 : index
    %c0_346 = arith.constant 0 : index
    %610 = vector.load %arg15[%c0_345, %c0_346] : memref<1x32xf32, #tpu.memory_space<vmem>>, vector<1x32xf32>
    %611 = vector.broadcast %610 : vector<1x32xf32> to vector<8x32xf32>
    %612 = arith.addf %609, %611 : vector<8x32xf32>
    %cst_347 = arith.constant 0.000000e+00 : f32
    %613 = vector.broadcast %cst_347 : f32 to vector<8x32xf32>
    %614 = arith.maximumf %612, %613 : vector<8x32xf32>
    %c0_348 = arith.constant 0 : index
    %c0_349 = arith.constant 0 : index
    %615 = vector.load %arg16[%c0_348, %c0_349] : memref<1x32xf32, #tpu.memory_space<vmem>>, vector<1x32xf32>
    %616 = vector.broadcast %615 : vector<1x32xf32> to vector<8x32xf32>
    %617 = arith.mulf %614, %616 : vector<8x32xf32>
    %cst_350 = arith.constant dense<0.000000e+00> : vector<8xf32>
    %618 = vector.multi_reduction <add>, %617, %cst_350 [1] : vector<8x32xf32> to vector<8xf32>
    %619 = vector.shape_cast %618 : vector<8xf32> to vector<8x1xf32>
    %c0_351 = arith.constant 0 : index
    %c0_352 = arith.constant 0 : index
    %620 = vector.load %arg17[%c0_351, %c0_352] : memref<1x1xf32, #tpu.memory_space<vmem>>, vector<1x1xf32>
    %621 = vector.broadcast %620 : vector<1x1xf32> to vector<8x1xf32>
    %622 = arith.addf %619, %621 : vector<8x1xf32>
    %cst_353 = arith.constant 1.000000e-01 : f32
    %623 = vector.broadcast %cst_353 : f32 to vector<8x1xf32>
    %624 = arith.maximumf %622, %623 : vector<8x1xf32>
    %625 = math.log %624 : vector<8x1xf32>
    %626 = vector.broadcast %0 : vector<1x1xf32> to vector<8x1xf32>
    %627 = arith.mulf %626, %625 : vector<8x1xf32>
    %628 = math.exp %627 : vector<8x1xf32>
    %629 = vector.broadcast %1 : vector<1x1xf32> to vector<8x1xf32>
    %630 = arith.addf %628, %629 : vector<8x1xf32>
    %631 = arith.divf %628, %630 : vector<8x1xf32>
    %632 = arith.mulf %631, %622 : vector<8x1xf32>
    %633 = arith.select %4, %632, %622 : vector<8x1xi1>, vector<8x1xf32>
    %c5_354 = arith.constant 5 : index
    %c0_355 = arith.constant 0 : index
    %c0_356 = arith.constant 0 : index
    %634 = vector.load %arg18[%c5_354, %c0_355, %c0_356] : memref<7x8x1xf32, #tpu.memory_space<vmem>>, vector<1x8x1xf32>
    %635 = vector.shape_cast %634 : vector<1x8x1xf32> to vector<8x1xf32>
    %636 = vector.shape_cast %633 : vector<8x1xf32> to vector<1x8x1xf32>
    tpu.vector_store %arg18[%c5_354, %c0_355, %c0_356], %636 {strides = array<i32>} : memref<7x8x1xf32, #tpu.memory_space<vmem>>, vector<1x8x1xf32>,
    %c6 = arith.constant 6 : index
    %c0_357 = arith.constant 0 : index
    %c0_358 = arith.constant 0 : index
    %637 = vector.load %arg0[%c6, %c0_357, %c0_358] : memref<8x8x1xf32, #tpu.memory_space<vmem>>, vector<1x8x1xf32>
    %638 = vector.shape_cast %637 : vector<1x8x1xf32> to vector<8x1xf32>
    %false_359 = arith.constant false
    %639 = arith.select %false_359, %638, %633 : vector<8x1xf32>
    %c0_360 = arith.constant 0 : index
    %c0_361 = arith.constant 0 : index
    %c0_362 = arith.constant 0 : index
    %640 = vector.load %arg6[%c0_360, %c0_361, %c0_362] : memref<1x32x64xf32, #tpu.memory_space<vmem>>, vector<1x32x64xf32>
    %641 = vector.shape_cast %640 : vector<1x32x64xf32> to vector<32x64xf32>
    %cst_363 = arith.constant dense<0.000000e+00> : vector<8x64xf32>
    %642 = tpu.matmul %600, %641, %cst_363 {dimension_numbers = #tpu.dot_dimension_numbers<[1], [0], [0], [1], [0, 0, 1, 1], [], []>} : vector<8x32xf32>, vector<32x64xf32>, vector<8x64xf32> -> vector<8x64xf32>
    %c0_364 = arith.constant 0 : index
    %c0_365 = arith.constant 0 : index
    %643 = vector.load %arg3[%c0_364, %c0_365] : memref<56x8xf32, #tpu.memory_space<vmem>>, vector<56x8xf32>
    %644 = vector.extract_strided_slice %642 {offsets = [0, 0], sizes = [8, 32], strides = [1, 1]} : vector<8x64xf32> to vector<8x32xf32>
    %cst_366 = arith.constant dense<0.000000e+00> : vector<56x32xf32>
    %645 = tpu.matmul %643, %644, %cst_366 {dimension_numbers = #tpu.dot_dimension_numbers<[1], [0], [0], [1], [0, 0, 1, 1], [], []>} : vector<56x8xf32>, vector<8x32xf32>, vector<56x32xf32> -> vector<56x32xf32>
    %c0_367 = arith.constant 0 : index
    %c0_368 = arith.constant 0 : index
    %646 = vector.load %arg4[%c0_367, %c0_368] : memref<56x8xf32, #tpu.memory_space<vmem>>, vector<56x8xf32>
    %647 = vector.extract_strided_slice %642 {offsets = [0, 32], sizes = [8, 32], strides = [1, 1]} : vector<8x64xf32> to vector<8x32xf32>
    %cst_369 = arith.constant dense<0.000000e+00> : vector<56x32xf32>
    %648 = tpu.matmul %646, %647, %cst_369 {dimension_numbers = #tpu.dot_dimension_numbers<[1], [0], [0], [1], [0, 0, 1, 1], [], []>} : vector<56x8xf32>, vector<8x32xf32>, vector<56x32xf32> -> vector<56x32xf32>
    %649 = arith.addf %645, %648 : vector<56x32xf32>
    %c0_370 = arith.constant 0 : index
    %c0_371 = arith.constant 0 : index
    %c0_372 = arith.constant 0 : index
    %650 = vector.load %arg7[%c0_370, %c0_371, %c0_372] : memref<1x1x32xf32, #tpu.memory_space<vmem>>, vector<1x1x32xf32>
    %651 = vector.shape_cast %650 : vector<1x1x32xf32> to vector<1x32xf32>
    %652 = vector.broadcast %651 : vector<1x32xf32> to vector<56x32xf32>
    %653 = arith.addf %649, %652 : vector<56x32xf32>
    %654 = math.tanh %653 : vector<56x32xf32>
    %c0_373 = arith.constant 0 : index
    %c0_374 = arith.constant 0 : index
    %c0_375 = arith.constant 0 : index
    %655 = vector.load %arg8[%c0_373, %c0_374, %c0_375] : memref<1x32x32xf32, #tpu.memory_space<vmem>>, vector<1x32x32xf32>
    %656 = vector.shape_cast %655 : vector<1x32x32xf32> to vector<32x32xf32>
    %cst_376 = arith.constant dense<0.000000e+00> : vector<56x32xf32>
    %657 = tpu.matmul %654, %656, %cst_376 {dimension_numbers = #tpu.dot_dimension_numbers<[1], [0], [0], [1], [0, 0, 1, 1], [], []>} : vector<56x32xf32>, vector<32x32xf32>, vector<56x32xf32> -> vector<56x32xf32>
    %c0_377 = arith.constant 0 : index
    %c0_378 = arith.constant 0 : index
    %c0_379 = arith.constant 0 : index
    %658 = vector.load %arg9[%c0_377, %c0_378, %c0_379] : memref<1x1x32xf32, #tpu.memory_space<vmem>>, vector<1x1x32xf32>
    %659 = vector.shape_cast %658 : vector<1x1x32xf32> to vector<1x32xf32>
    %660 = vector.broadcast %659 : vector<1x32xf32> to vector<56x32xf32>
    %661 = arith.addf %657, %660 : vector<56x32xf32>
    %662 = math.tanh %661 : vector<56x32xf32>
    %c0_380 = arith.constant 0 : index
    %c0_381 = arith.constant 0 : index
    %663 = vector.load %arg2[%c0_380, %c0_381] : memref<56x1xf32, #tpu.memory_space<vmem>>, vector<56x1xf32>
    %664 = vector.broadcast %663 : vector<56x1xf32> to vector<56x32xf32>
    %665 = arith.mulf %662, %664 : vector<56x32xf32>
    %c0_382 = arith.constant 0 : index
    %c0_383 = arith.constant 0 : index
    %666 = vector.load %arg5[%c0_382, %c0_383] : memref<8x56xf32, #tpu.memory_space<vmem>>, vector<8x56xf32>
    %cst_384 = arith.constant dense<0.000000e+00> : vector<8x32xf32>
    %667 = tpu.matmul %666, %665, %cst_384 {dimension_numbers = #tpu.dot_dimension_numbers<[1], [0], [0], [1], [0, 0, 1, 1], [], []>} : vector<8x56xf32>, vector<56x32xf32>, vector<8x32xf32> -> vector<8x32xf32>
    %cst_385 = arith.constant 1.250000e-01 : f32
    %668 = vector.broadcast %cst_385 : f32 to vector<8x32xf32>
    %669 = arith.mulf %667, %668 : vector<8x32xf32>
    %c0_386 = arith.constant 0 : index
    %c0_387 = arith.constant 0 : index
    %670 = vector.load %arg10[%c0_386, %c0_387] : memref<32x96xf32, #tpu.memory_space<vmem>>, vector<32x96xf32>
    %cst_388 = arith.constant dense<0.000000e+00> : vector<8x96xf32>
    %671 = tpu.matmul %669, %670, %cst_388 {dimension_numbers = #tpu.dot_dimension_numbers<[1], [0], [0], [1], [0, 0, 1, 1], [], []>} : vector<8x32xf32>, vector<32x96xf32>, vector<8x96xf32> -> vector<8x96xf32>
    %c0_389 = arith.constant 0 : index
    %c0_390 = arith.constant 0 : index
    %672 = vector.load %arg11[%c0_389, %c0_390] : memref<1x96xf32, #tpu.memory_space<vmem>>, vector<1x96xf32>
    %673 = vector.broadcast %639 : vector<8x1xf32> to vector<8x96xf32>
    %674 = vector.broadcast %672 : vector<1x96xf32> to vector<8x96xf32>
    %675 = arith.mulf %673, %674 : vector<8x96xf32>
    %676 = vector.extract_strided_slice %675 {offsets = [0, 0], sizes = [8, 32], strides = [1, 1]} : vector<8x96xf32> to vector<8x32xf32>
    %677 = vector.extract_strided_slice %671 {offsets = [0, 0], sizes = [8, 32], strides = [1, 1]} : vector<8x96xf32> to vector<8x32xf32>
    %678 = arith.addf %676, %677 : vector<8x32xf32>
    %679 = arith.negf %678 : vector<8x32xf32>
    %680 = math.exp %679 : vector<8x32xf32>
    %cst_391 = arith.constant 1.000000e+00 : f32
    %681 = vector.broadcast %cst_391 : f32 to vector<8x32xf32>
    %682 = arith.addf %681, %680 : vector<8x32xf32>
    %683 = arith.divf %681, %682 : vector<8x32xf32>
    %684 = vector.extract_strided_slice %675 {offsets = [0, 32], sizes = [8, 32], strides = [1, 1]} : vector<8x96xf32> to vector<8x32xf32>
    %685 = vector.extract_strided_slice %671 {offsets = [0, 32], sizes = [8, 32], strides = [1, 1]} : vector<8x96xf32> to vector<8x32xf32>
    %686 = arith.addf %684, %685 : vector<8x32xf32>
    %687 = arith.negf %686 : vector<8x32xf32>
    %688 = math.exp %687 : vector<8x32xf32>
    %cst_392 = arith.constant 1.000000e+00 : f32
    %689 = vector.broadcast %cst_392 : f32 to vector<8x32xf32>
    %690 = arith.addf %689, %688 : vector<8x32xf32>
    %691 = arith.divf %689, %690 : vector<8x32xf32>
    %692 = vector.extract_strided_slice %675 {offsets = [0, 64], sizes = [8, 32], strides = [1, 1]} : vector<8x96xf32> to vector<8x32xf32>
    %693 = vector.extract_strided_slice %671 {offsets = [0, 64], sizes = [8, 32], strides = [1, 1]} : vector<8x96xf32> to vector<8x32xf32>
    %694 = arith.mulf %683, %693 : vector<8x32xf32>
    %695 = arith.addf %692, %694 : vector<8x32xf32>
    %696 = arith.negf %695 : vector<8x32xf32>
    %697 = math.exp %696 : vector<8x32xf32>
    %cst_393 = arith.constant 1.000000e+00 : f32
    %698 = vector.broadcast %cst_393 : f32 to vector<8x32xf32>
    %699 = arith.addf %698, %697 : vector<8x32xf32>
    %700 = arith.divf %698, %699 : vector<8x32xf32>
    %cst_394 = arith.constant 1.000000e+00 : f32
    %701 = vector.broadcast %cst_394 : f32 to vector<8x32xf32>
    %702 = arith.subf %701, %691 : vector<8x32xf32>
    %703 = arith.mulf %702, %700 : vector<8x32xf32>
    %704 = arith.mulf %691, %600 : vector<8x32xf32>
    %705 = arith.addf %703, %704 : vector<8x32xf32>
    %c0_395 = arith.constant 0 : index
    %c0_396 = arith.constant 0 : index
    %706 = vector.load %arg12[%c0_395, %c0_396] : memref<32x32xf32, #tpu.memory_space<vmem>>, vector<32x32xf32>
    %cst_397 = arith.constant dense<0.000000e+00> : vector<8x32xf32>
    %707 = tpu.matmul %705, %706, %cst_397 {dimension_numbers = #tpu.dot_dimension_numbers<[1], [0], [0], [1], [0, 0, 1, 1], [], []>} : vector<8x32xf32>, vector<32x32xf32>, vector<8x32xf32> -> vector<8x32xf32>
    %c0_398 = arith.constant 0 : index
    %c0_399 = arith.constant 0 : index
    %708 = vector.load %arg13[%c0_398, %c0_399] : memref<1x32xf32, #tpu.memory_space<vmem>>, vector<1x32xf32>
    %709 = vector.broadcast %708 : vector<1x32xf32> to vector<8x32xf32>
    %710 = arith.addf %707, %709 : vector<8x32xf32>
    %cst_400 = arith.constant 0.000000e+00 : f32
    %711 = vector.broadcast %cst_400 : f32 to vector<8x32xf32>
    %712 = arith.maximumf %710, %711 : vector<8x32xf32>
    %c0_401 = arith.constant 0 : index
    %c0_402 = arith.constant 0 : index
    %713 = vector.load %arg14[%c0_401, %c0_402] : memref<32x32xf32, #tpu.memory_space<vmem>>, vector<32x32xf32>
    %cst_403 = arith.constant dense<0.000000e+00> : vector<8x32xf32>
    %714 = tpu.matmul %712, %713, %cst_403 {dimension_numbers = #tpu.dot_dimension_numbers<[1], [0], [0], [1], [0, 0, 1, 1], [], []>} : vector<8x32xf32>, vector<32x32xf32>, vector<8x32xf32> -> vector<8x32xf32>
    %c0_404 = arith.constant 0 : index
    %c0_405 = arith.constant 0 : index
    %715 = vector.load %arg15[%c0_404, %c0_405] : memref<1x32xf32, #tpu.memory_space<vmem>>, vector<1x32xf32>
    %716 = vector.broadcast %715 : vector<1x32xf32> to vector<8x32xf32>
    %717 = arith.addf %714, %716 : vector<8x32xf32>
    %cst_406 = arith.constant 0.000000e+00 : f32
    %718 = vector.broadcast %cst_406 : f32 to vector<8x32xf32>
    %719 = arith.maximumf %717, %718 : vector<8x32xf32>
    %c0_407 = arith.constant 0 : index
    %c0_408 = arith.constant 0 : index
    %720 = vector.load %arg16[%c0_407, %c0_408] : memref<1x32xf32, #tpu.memory_space<vmem>>, vector<1x32xf32>
    %721 = vector.broadcast %720 : vector<1x32xf32> to vector<8x32xf32>
    %722 = arith.mulf %719, %721 : vector<8x32xf32>
    %cst_409 = arith.constant dense<0.000000e+00> : vector<8xf32>
    %723 = vector.multi_reduction <add>, %722, %cst_409 [1] : vector<8x32xf32> to vector<8xf32>
    %724 = vector.shape_cast %723 : vector<8xf32> to vector<8x1xf32>
    %c0_410 = arith.constant 0 : index
    %c0_411 = arith.constant 0 : index
    %725 = vector.load %arg17[%c0_410, %c0_411] : memref<1x1xf32, #tpu.memory_space<vmem>>, vector<1x1xf32>
    %726 = vector.broadcast %725 : vector<1x1xf32> to vector<8x1xf32>
    %727 = arith.addf %724, %726 : vector<8x1xf32>
    %cst_412 = arith.constant 1.000000e-01 : f32
    %728 = vector.broadcast %cst_412 : f32 to vector<8x1xf32>
    %729 = arith.maximumf %727, %728 : vector<8x1xf32>
    %730 = math.log %729 : vector<8x1xf32>
    %731 = vector.broadcast %0 : vector<1x1xf32> to vector<8x1xf32>
    %732 = arith.mulf %731, %730 : vector<8x1xf32>
    %733 = math.exp %732 : vector<8x1xf32>
    %734 = vector.broadcast %1 : vector<1x1xf32> to vector<8x1xf32>
    %735 = arith.addf %733, %734 : vector<8x1xf32>
    %736 = arith.divf %733, %735 : vector<8x1xf32>
    %737 = arith.mulf %736, %727 : vector<8x1xf32>
    %738 = arith.select %4, %737, %727 : vector<8x1xi1>, vector<8x1xf32>
    %c6_413 = arith.constant 6 : index
    %c0_414 = arith.constant 0 : index
    %c0_415 = arith.constant 0 : index
    %739 = vector.load %arg18[%c6_413, %c0_414, %c0_415] : memref<7x8x1xf32, #tpu.memory_space<vmem>>, vector<1x8x1xf32>
    %740 = vector.shape_cast %739 : vector<1x8x1xf32> to vector<8x1xf32>
    %741 = vector.shape_cast %738 : vector<8x1xf32> to vector<1x8x1xf32>
    tpu.vector_store %arg18[%c6_413, %c0_414, %c0_415], %741 {strides = array<i32>} : memref<7x8x1xf32, #tpu.memory_space<vmem>>, vector<1x8x1xf32>,
    return
  }
}

</mosaic_0001>

<bundles_post_ra>
// kernel: tpu_custom_call.1
= control target key start
LH: loop header
LB: loop body
LE: loop exit
PB: predicated region body
PF: predicated region fallthrough
CT: control target
= control target key end

     0   :  { %v8591_v0 = vmov 0.0   ;;  %vm8592_vm0 = vmmov 0   ;;  %vm162_vm1 = vcmask 64512   ;;  %s8593_s24 = smov 96   ;;  %v8594_v40 = vmov 0   ;;  %s8595_s21 = smov 64   ;;  %s10859_s6 = inlined_call_operand.vmem [shape: f32[1,32,64], index: 6, kind: input, shape index: {}]   ;;  %s10860_s3 = inlined_call_operand.vmem [shape: f32[56,8], index: 3, kind: input, shape index: {}]   ;;  %s10861_s4 = inlined_call_operand.vmem [shape: f32[56,8], index: 4, kind: input, shape index: {}]   ;;  %s10862_s8 = inlined_call_operand.vmem [shape: f32[1,32,32], index: 8, kind: input, shape index: {}]   ;;  %s10863_s2 = inlined_call_operand.vmem [shape: f32[56,1], index: 2, kind: input, shape index: {}]   ;;  %s10864_s0 = inlined_call_operand.vmem [shape: f32[8,8,1], index: 0, kind: input, shape index: {}]   ;;  %s10865_s7 = inlined_call_operand.vmem [shape: f32[1,1,32], index: 7, kind: input, shape index: {}]   ;;  %s10866_s9 = inlined_call_operand.vmem [shape: f32[1,1,32], index: 9, kind: input, shape index: {}]   ;;  %s10867_s5 = inlined_call_operand.vmem [shape: f32[8,56], index: 5, kind: input, shape index: {}]   ;;  %s10868_s10 = inlined_call_operand.vmem [shape: f32[32,96], index: 10, kind: input, shape index: {}]   ;;  %s10869_s11 = inlined_call_operand.vmem [shape: f32[1,96], index: 11, kind: input, shape index: {}]   ;;  %s10870_s12 = inlined_call_operand.vmem [shape: f32[32,32], index: 12, kind: input, shape index: {}]   ;;  %s10871_s14 = inlined_call_operand.vmem [shape: f32[32,32], index: 14, kind: input, shape index: {}]   ;;  %s10872_s13 = inlined_call_operand.vmem [shape: f32[1,32], index: 13, kind: input, shape index: {}]   ;;  %s10873_s1 = inlined_call_operand.vmem [shape: f32[1,2], index: 1, kind: input, shape index: {}]   ;;  %s10874_s15 = inlined_call_operand.vmem [shape: f32[1,32], index: 15, kind: input, shape index: {}]   ;;  %s10875_s16 = inlined_call_operand.vmem [shape: f32[1,32], index: 16, kind: input, shape index: {}]   ;;  %s10876_s17 = inlined_call_operand.<no memory space> [shape: f32[1,1], index: 17, kind: input, shape index: {}]   ;;  %s10877_s18 = inlined_call_operand.vmem [shape: f32[7,8,1], index: 18, kind: output, shape index: {}]  }
   0x1   :  { %10881 = sst [smem:[#allocation3_spill]] %s10859_s6  ;;  %7331 = vmatprep.subr.mxu0 %v8591_v0  ;;  %7339 = vmatprep.mubr.msk.f32.mxu0 %vm8592_vm0, %v8591_v0  ;;  %v8861_v22 = vld [vmem:[%s10862_s8 + $0x18] sm:$0xff]  ;;  %v8868_v24 = vld [vmem:[%s10862_s8 + $0x10] sm:$0xff]  ;;  %v8875_v26 = vld [vmem:[%s10862_s8 + $0x8] sm:$0xff]  ;;  %vm70_vm2 = vcmask 261120   ;;  %vm615_vm3 = vcmask 457728  }
   0x2   :  { %10882 = sst [smem:[#allocation4_spill]] %s10860_s3  ;;  %7342 = vmatprep.subr.mxu1 %v8591_v0  ;;  %7344 = vmatprep.mubr.msk.f32.mxu1 %vm8592_vm0, %v8591_v0  ;;  %v8882_v28 = vld [vmem:[%s10862_s8] sm:$0xff]  ;;  %v8891_v41 = vld [vmem:[%s10863_s2 + $0x30] sm:$0xff]  ;;  %v8896_v42 = vld [vmem:[%s10863_s2 + $0x28] sm:$0xff]  ;;  %s8596_s19 = smov 127   ;;  %vm1022_vm5 = vcmask 7168  }
   0x3   :  { %10883 = sst [smem:[#allocation5_spill]] %s10861_s4  ;;  %8290 = vset.pattern.permute.xlu1 %v8594_v40  ;;  %8289 = vset.pattern.permute.xlu0 %v8594_v40  ;;  %v8903_v43 = vld [vmem:[%s10863_s2 + $0x20] sm:$0xff]  ;;  %v8908_v44 = vld [vmem:[%s10863_s2 + $0x10] sm:$0xff]  ;;  %v8915_v45 = vld [vmem:[%s10863_s2 + $0x18] sm:$0xff] }
   0x4   :  { %s10884_s29 = sld [smem:[#allocation3_spill]]  ;;  %599 = vperm.xlu1 %8290, %v8896_v42   ;;  %v8920_v46 = vld [vmem:[%s10863_s2] sm:$0xff]  ;;  %v8927_v47 = vld [vmem:[%s10863_s2 + $0x8] sm:$0xff] }
   0x5   :  { %s10885_s23 = sld [smem:[#allocation4_spill]]  ;;  %v65_v48 = vld [vmem:[%s10864_s0] sm:$0xff] }
   0x6   :  { %s10886_s27 = sld [smem:[#allocation5_spill]]  ;;  %v8936_v50 = vld [vmem:[%s10865_s7] ss:$0 sm:$0xff] }
   0x8   :  { %594 = vperm.xlu1 %8290, %v8903_v43  }
   0xa   :  { %v8696_v1 = vld [vmem:[%s10884_s29 + $0x18] sm:$0xff]  ;;  %v8701_v2 = vld [vmem:[%s10884_s29 + $0x10] sm:$0xff]  ;;  %v8711_v3 = vld [vmem:[%s10884_s29 + $0x8] sm:$0xff] }
   0xb   :  { %7332 = vmatpush3.msra.mxu0 %v8696_v1  ;;  %v8720_v4 = vld [vmem:[%s10884_s29] sm:$0xff]  ;;  %v8743_v8 = vld [vmem:[%s10885_s23 + $0x8] sm:$0xff]  ;;  %v8752_v9 = vld [vmem:[%s10885_s23 + $0x10] sm:$0xff] }
   0xc   :  { %7333 = vmatprep.subr.mxu0 %v8591_v0  ;;  %v8732_v5 = vld [vmem:[%s10885_s23] sm:$0xff]  ;;  %v8761_v10 = vld [vmem:[%s10885_s23 + $0x18] sm:$0xff]  ;;  %v8779_v12 = vld [vmem:[%s10885_s23 + $0x28] sm:$0xff]  ;;  %589 = vperm.xlu1 %8290, %v8915_v45  }
   0xd   :  { %7334 = vmatpush3.msra.mxu0 %v8701_v2  ;;  %v8770_v11 = vld [vmem:[%s10885_s23 + $0x20] sm:$0xff]  ;;  %v8788_v13 = vld [vmem:[%s10885_s23 + $0x30] sm:$0xff]  ;;  %v8807_v16 = vld [vmem:[%s10886_s27 + $0x8] sm:$0xff] }
   0xe   :  { %7335 = vmatprep.subr.mxu0 %v8591_v0  ;;  %v8797_v14 = vld [vmem:[%s10886_s27] sm:$0xff]  ;;  %v8816_v17 = vld [vmem:[%s10886_s27 + $0x10] sm:$0xff]  ;;  %v8825_v18 = vld [vmem:[%s10886_s27 + $0x18] sm:$0xff] }
   0xf   :  { %7336 = vmatpush3.msra.mxu0 %v8711_v3  ;;  %v8834_v19 = vld [vmem:[%s10886_s27 + $0x20] sm:$0xff]  ;;  %v8843_v20 = vld [vmem:[%s10886_s27 + $0x28] sm:$0xff]  ;;  %v8852_v21 = vld [vmem:[%s10886_s27 + $0x30] sm:$0xff] }
  0x10   :  { %7337 = vmatprep.subr.mxu0 %v8591_v0  ;;  %579 = vperm.xlu1 %8290, %v8927_v47  }
  0x11   :  { %7338 = vmatpush3.msra.mxu0 %v8720_v4 }
  0x12   :  { %7340 = vmatmul.mubr.f32.vlgmr.msra.gmra.mxu0 %v8591_v0  ;;  %7365 = vmatprep.subr.mxu0 %v8591_v0 }
  0x13   :  { %7367 = vmatprep.mubr.msk.f32.mxu0 %vm8592_vm0, %v8591_v0 }
  0x14   :  { %770 = vperm.xlu1 %8290, %v65_v48  }
  0xd2   :  { %v140_v6 = vpop.f32.mrf.mxu0 }
  0xd3   :  { %159 = vrot.lane.b32.xlu0 %v140_v6, %s8593_s24  ;;  %7366 = vmatpush3.msra.mxu0 %v140_v6 }
  0xd4   :  { %v7341_v7 = vpop.f32.mrf.mxu0  ;;  %7368 = vmatmul.mubr.msk.f32.vlgmr.msra.gmra.mxu0 %vm162_vm1, %v8732_v5  ;;  %7417 = vmatprep.subr.mxu0 %v8591_v0 }
  0xd5   :  { %7370 = vmatprep.mubr.msk.f32.mxu0 %vm8592_vm0, %v8591_v0 }
  0xd7   :  { %604 = vperm.xlu0 %8289, %v8891_v41  }
  0xd8   :  { %7371 = vmatmul.mubr.msk.f32.gmra.mxu0 %vm162_vm1, %v8743_v8 }
  0xd9   :  { %7373 = vmatprep.mubr.msk.f32.mxu0 %vm8592_vm0, %v8591_v0 }
  0xdb   :  { %584 = vperm.xlu0 %8289, %v8908_v44  }
  0xdc   :  { %7374 = vmatmul.mubr.msk.f32.gmra.mxu0 %vm162_vm1, %v8752_v9 }
  0xdd   :  { %7376 = vmatprep.mubr.msk.f32.mxu0 %vm8592_vm0, %v8591_v0 }
  0xdf   :  { %574 = vperm.xlu0 %8289, %v8920_v46  }
  0xe0   :  { %7377 = vmatmul.mubr.msk.f32.gmra.mxu0 %vm162_vm1, %v8761_v10 }
  0xe1   :  { %7379 = vmatprep.mubr.msk.f32.mxu0 %vm8592_vm0, %v8591_v0 }
  0xe4   :  { %7380 = vmatmul.mubr.msk.f32.gmra.mxu0 %vm162_vm1, %v8770_v11 }
  0xe5   :  { %7382 = vmatprep.mubr.msk.f32.mxu0 %vm8592_vm0, %v8591_v0 }
  0xe8   :  { %7383 = vmatmul.mubr.msk.f32.gmra.mxu0 %vm162_vm1, %v8779_v12 }
  0xe9   :  { %7385 = vmatprep.mubr.msk.f32.mxu0 %vm8592_vm0, %v8591_v0 }
  0xec   :  { %7386 = vmatmul.mubr.msk.f32.gmra.mxu0 %vm162_vm1, %v8788_v13 }
  0xed   :  { %7431 = vmatprep.mubr.msk.f32.mxu0 %vm8592_vm0, %v8591_v0 }
 0x145   :  { %v160_v15 = vpop.permute.xlu0 %159 }
 0x146   :  { %7343 = vmatpush3.msra.mxu1 %v160_v15 }
 0x147   :  { %7345 = vmatmul.mubr.msk.f32.vlgmr.msra.gmra.mxu1 %vm162_vm1, %v8797_v14  ;;  %7388 = vmatprep.subr.mxu1 %v8591_v0 }
 0x148   :  { %7347 = vmatprep.mubr.msk.f32.mxu1 %vm8592_vm0, %v8591_v0  ;;  %7389 = vmatpush3.msra.mxu1 %v8861_v22 }
 0x149   :  { %7390 = vmatprep.subr.mxu1 %v8591_v0 }
 0x14a   :  { %7391 = vmatpush3.msra.mxu1 %v8868_v24 }
 0x14b   :  { %7348 = vmatmul.mubr.msk.f32.gmra.mxu1 %vm162_vm1, %v8807_v16  ;;  %7392 = vmatprep.subr.mxu1 %v8591_v0 }
 0x14c   :  { %7350 = vmatprep.mubr.msk.f32.mxu1 %vm8592_vm0, %v8591_v0  ;;  %7393 = vmatpush3.msra.mxu1 %v8875_v26 }
 0x14d   :  { %7394 = vmatprep.subr.mxu1 %v8591_v0 }
 0x14e   :  { %7395 = vmatpush3.msra.mxu1 %v8882_v28 }
 0x14f   :  { %7351 = vmatmul.mubr.msk.f32.gmra.mxu1 %vm162_vm1, %v8816_v17  ;;  %7456 = vmatprep.subr.mxu1 %v8591_v0 }
 0x150   :  { %7353 = vmatprep.mubr.msk.f32.mxu1 %vm8592_vm0, %v8591_v0 }
 0x153   :  { %7354 = vmatmul.mubr.msk.f32.gmra.mxu1 %vm162_vm1, %v8825_v18 }
 0x154   :  { %7356 = vmatprep.mubr.msk.f32.mxu1 %vm8592_vm0, %v8591_v0 }
 0x157   :  { %7357 = vmatmul.mubr.msk.f32.gmra.mxu1 %vm162_vm1, %v8834_v19 }
 0x158   :  { %7359 = vmatprep.mubr.msk.f32.mxu1 %vm8592_vm0, %v8591_v0 }
 0x15b   :  { %7360 = vmatmul.mubr.msk.f32.gmra.mxu1 %vm162_vm1, %v8843_v20 }
 0x15c   :  { %7362 = vmatprep.mubr.msk.f32.mxu1 %vm8592_vm0, %v8591_v0 }
 0x15f   :  { %7363 = vmatmul.mubr.msk.f32.gmra.mxu1 %vm162_vm1, %v8852_v21 }
 0x160   :  { %7396 = vmatprep.mubr.msk.f32.mxu1 %vm8592_vm0, %v8591_v0 }
 0x194   :  { %v371_v23 = vpop.f32.mrf.mxu0 }
 0x196   :  { %v7369_v25 = vpop.f32.mrf.mxu0 }
 0x198   :  { %v376_v27 = vpop.f32.mrf.mxu0 }
 0x19a   :  { %v7372_v29 = vpop.f32.mrf.mxu0 }
 0x19c   :  { %v381_v30 = vpop.f32.mrf.mxu0 }
 0x19e   :  { %v7375_v31 = vpop.f32.mrf.mxu0 }
 0x1a0   :  { %v386_v32 = vpop.f32.mrf.mxu0 }
 0x1a2   :  { %v7378_v33 = vpop.f32.mrf.mxu0 }
 0x1a4   :  { %v391_v34 = vpop.f32.mrf.mxu0 }
 0x1a6   :  { %v7381_v35 = vpop.f32.mrf.mxu0 }
 0x1a8   :  { %v396_v36 = vpop.f32.mrf.mxu0 }
 0x1aa   :  { %v7384_v37 = vpop.f32.mrf.mxu0 }
 0x1ac   :  { %v8886_v38 = vpop.f32.mrf.mxu0 }
 0x1ae   :  { %v7387_v39 = vpop.f32.mrf.mxu0 }
 0x207   :  { %v250_v49 = vpop.f32.mrf.mxu1 }
 0x208   :  { %v372_v51 = vadd.f32 %v371_v23, %v250_v49 }
 0x209   :  { %v7346_v52 = vpop.f32.mrf.mxu1 }
 0x20a   :  { %v412_v53 = vadd.f32 %v8936_v50, %v372_v51 }
 0x20b   :  { %v255_v54 = vpop.f32.mrf.mxu1 }
 0x20c   :  { %8291 = vtanh.f32 %v412_v53  ;;  %v377_v55 = vadd.f32 %v376_v27, %v255_v54 }
 0x20d   :  { %v7349_v56 = vpop.f32.mrf.mxu1 }
 0x20e   :  { %v413_v57 = vadd.f32 %v8936_v50, %v377_v55 }
 0x20f   :  { %v260_v58 = vpop.f32.mrf.mxu1 }
 0x210   :  { %8293 = vtanh.f32 %v413_v57  ;;  %v382_v59 = vadd.f32 %v381_v30, %v260_v58 }
 0x211   :  { %v7352_v60 = vpop.f32.mrf.mxu1 }
 0x212   :  { %v414_v61 = vadd.f32 %v8936_v50, %v382_v59 }
 0x213   :  { %v265_v62 = vpop.f32.mrf.mxu1 }
 0x214   :  { %8295 = vtanh.f32 %v414_v61  ;;  %v387_v63 = vadd.f32 %v386_v32, %v265_v62 }
 0x215   :  { %v7355_v6 = vpop.f32.mrf.mxu1 }
 0x216   :  { %v415_v7 = vadd.f32 %v8936_v50, %v387_v63  ;;  %v8970_v63 = vld [vmem:[%s10866_s9] ss:$0 sm:$0xff] }
 0x217   :  { %v270_v15 = vpop.f32.mrf.mxu1 }
 0x218   :  { %8297 = vtanh.f32 %v415_v7  ;;  %v392_v23 = vadd.f32 %v391_v34, %v270_v15 }
 0x219   :  { %v8292_v25 = vpop.eup %8291  ;;  %v7358_v27 = vpop.f32.mrf.mxu1 }
 0x21a   :  { %v416_v29 = vadd.f32 %v8936_v50, %v392_v23  ;;  %7397 = vmatmul.mubr.msk.f32.vlgmr.msra.gmra.mxu1 %vm70_vm2, %v8292_v25 }
 0x21b   :  { %v275_v30 = vpop.f32.mrf.mxu1  ;;  %7399 = vmatprep.mubr.msk.f32.mxu1 %vm8592_vm0, %v8591_v0 }
 0x21c   :  { %8299 = vtanh.f32 %v416_v29  ;;  %v397_v31 = vadd.f32 %v396_v36, %v275_v30 }
 0x21d   :  { %v8294_v32 = vpop.eup %8293  ;;  %v7361_v33 = vpop.f32.mrf.mxu1 }
 0x21e   :  { %v417_v35 = vadd.f32 %v8936_v50, %v397_v31  ;;  %7400 = vmatmul.mubr.msk.f32.gmra.mxu1 %vm70_vm2, %v8294_v32  ;;  %v600_v31 = vpop.permute.xlu1 %599 }
 0x21f   :  { %v280_v37 = vpop.f32.mrf.mxu1  ;;  %7402 = vmatprep.mubr.msk.f32.mxu1 %vm8592_vm0, %v8591_v0 }
 0x220   :  { %8301 = vtanh.f32 %v417_v35  ;;  %v402_v34 = vadd.f32 %v8886_v38, %v280_v37  ;;  %v605_v37 = vpop.permute.xlu0 %604 }
 0x221   :  { %v8296_v39 = vpop.eup %8295  ;;  %v7364_v40 = vpop.f32.mrf.mxu1 }
 0x222   :  { %v418_v48 = vadd.f32 %v8936_v50, %v402_v34  ;;  %7403 = vmatmul.mubr.msk.f32.gmra.mxu1 %vm70_vm2, %v8296_v39  ;;  %v595_v35 = vpop.permute.xlu1 %594 }
 0x223   :  { %7405 = vmatprep.mubr.msk.f32.mxu1 %vm8592_vm0, %v8591_v0 }
 0x224   :  { %8303 = vtanh.f32 %v418_v48 }
 0x225   :  { %v8298_v36 = vpop.eup %8297 }
 0x226   :  { %7406 = vmatmul.mubr.msk.f32.gmra.mxu1 %vm70_vm2, %v8298_v36  ;;  %v590_v36 = vpop.permute.xlu1 %589 }
 0x227   :  { %7408 = vmatprep.mubr.msk.f32.mxu1 %vm8592_vm0, %v8591_v0 }
 0x229   :  { %v8300_v49 = vpop.eup %8299 }
 0x22a   :  { %7409 = vmatmul.mubr.msk.f32.gmra.mxu1 %vm70_vm2, %v8300_v49 }
 0x22b   :  { %7411 = vmatprep.mubr.msk.f32.mxu1 %vm8592_vm0, %v8591_v0 }
 0x22d   :  { %v8302_v38 = vpop.eup %8301 }
 0x22e   :  { %7412 = vmatmul.mubr.msk.f32.gmra.mxu1 %vm70_vm2, %v8302_v38 }
 0x22f   :  { %7414 = vmatprep.mubr.msk.f32.mxu1 %vm8592_vm0, %v8591_v0 }
 0x231   :  { %v8304_v51 = vpop.eup %8303 }
 0x232   :  { %7415 = vmatmul.mubr.msk.f32.gmra.mxu1 %vm70_vm2, %v8304_v51  ;;  %v585_v51 = vpop.permute.xlu0 %584 }
 0x233   :  { %7464 = vmatprep.mubr.msk.f32.mxu1 %vm8592_vm0, %v8591_v0 }
 0x2da   :  { %v524_v52 = vpop.f32.mrf.mxu1 }
 0x2db   :  { %v525_v33 = vadd.f32 %v8970_v63, %v524_v52 }
 0x2dc   :  { %v7398_v53 = vpop.f32.mrf.mxu1 }
 0x2de   :  { %v529_v54 = vpop.f32.mrf.mxu1 }
 0x2df   :  { %v530_v32 = vadd.f32 %v8970_v63, %v529_v54 }
 0x2e0   :  { %v7401_v55 = vpop.f32.mrf.mxu1 }
 0x2e2   :  { %v534_v56 = vpop.f32.mrf.mxu1 }
 0x2e3   :  { %v535_v30 = vadd.f32 %v8970_v63, %v534_v56  ;;  %v580_v56 = vpop.permute.xlu1 %579 }
 0x2e4   :  { %v7404_v57 = vpop.f32.mrf.mxu1 }
 0x2e6   :  { %v539_v58 = vpop.f32.mrf.mxu1 }
 0x2e7   :  { %v540_v29 = vadd.f32 %v8970_v63, %v539_v58 }
 0x2e8   :  { %v7407_v59 = vpop.f32.mrf.mxu1 }
 0x2e9   :  { %v575_v59 = vpop.permute.xlu0 %574 }
 0x2ea   :  { %v544_v60 = vpop.f32.mrf.mxu1 }
 0x2eb   :  { %v545_v23 = vadd.f32 %v8970_v63, %v544_v60 }
 0x2ec   :  { %v7410_v61 = vpop.f32.mrf.mxu1 }
 0x2ee   :  { %v549_v62 = vpop.f32.mrf.mxu1 }
 0x2ef   :  { %v550_v6 = vadd.f32 %v8970_v63, %v549_v62  ;;  %v8987_v62 = vld [vmem:[%s10867_s5] sm:$0xff] }
 0x2f0   :  { %v7413_v7 = vpop.f32.mrf.mxu1 }
 0x2f1   :  { %8305 = vtanh.f32 %v550_v6  ;;  %v8993_v6 = vld [vmem:[%s10868_s10 + $0x18] sm:$0xff]  ;;  %v9001_v7 = vld [vmem:[%s10868_s10 + $0x10] sm:$0xff] }
 0x2f2   :  { %v554_v15 = vpop.f32.mrf.mxu1 }
 0x2f3   :  { %v555_v25 = vadd.f32 %v8970_v63, %v554_v15  ;;  %v9012_v15 = vld [vmem:[%s10868_s10 + $0x8] sm:$0xff] }
 0x2f4   :  { %v7416_v27 = vpop.f32.mrf.mxu1 }
 0x2f5   :  { %8307 = vtanh.f32 %v555_v25 }
 0x2f6   :  { %8309 = vtanh.f32 %v545_v23  ;;  %v9019_v23 = vld [vmem:[%s10868_s10] sm:$0xff] }
 0x2f7   :  { %8311 = vtanh.f32 %v540_v29 }
 0x2f8   :  { %8313 = vtanh.f32 %v535_v30 }
 0x2f9   :  { %8315 = vtanh.f32 %v530_v32  ;;  %v9030_v32 = vld [vmem:[%s10869_s11] ss:$0 sm:$0xff] }
 0x2fa   :  { %8317 = vtanh.f32 %v525_v33  ;;  %v771_v33 = vpop.permute.xlu1 %770 }
 0x2fe   :  { %v8306_v34 = vpop.eup %8305 }
 0x2ff   :  { %v612_v49 = vmul.f32 %v8306_v34, %v600_v31 }
 0x302   :  { %v8308_v39 = vpop.eup %8307 }
 0x303   :  { %v613_v40 = vmul.f32 %v8308_v39, %v605_v37  ;;  %v8310_v48 = vpop.eup %8309 }
 0x304   :  { %v8312_v38 = vpop.eup %8311  ;;  %v611_v53 = vmul.f32 %v8310_v48, %v595_v35  ;;  %v779_v35 = vmul.f32 %v9030_v32, %v771_v33 }
 0x305   :  { %7418 = vmatpush3.msra.mxu0 %v613_v40  ;;  %v8314_v54 = vpop.eup %8313  ;;  %v610_v52 = vmul.f32 %v8312_v38, %v590_v36 }
 0x306   :  { %7419 = vmatprep.subr.mxu0 %v8591_v0  ;;  %v8316_v55 = vpop.eup %8315  ;;  %v609_v57 = vmul.f32 %v8314_v54, %v585_v51 }
 0x307   :  { %7420 = vmatpush3.msra.mxu0 %v612_v49  ;;  %v8318_v58 = vpop.eup %8317  ;;  %v608_v60 = vmul.f32 %v8316_v55, %v580_v56  ;;  %v9038_v56 = vld [vmem:[%s10870_s12 + $0x18] sm:$0xff] }
 0x308   :  { %7421 = vmatprep.subr.mxu0 %v8591_v0  ;;  %v607_v61 = vmul.f32 %v8318_v58, %v575_v59  ;;  %v9050_v58 = vld [vmem:[%s10870_s12 + $0x8] sm:$0xff]  ;;  %v9057_v59 = vld [vmem:[%s10870_s12] sm:$0xff] }
 0x309   :  { %7422 = vmatpush3.msra.mxu0 %v611_v53 }
 0x30a   :  { %7423 = vmatprep.subr.mxu0 %v8591_v0 }
 0x30b   :  { %7424 = vmatpush3.msra.mxu0 %v610_v52 }
 0x30c   :  { %7425 = vmatprep.subr.mxu0 %v8591_v0 }
 0x30d   :  { %7426 = vmatpush3.msra.mxu0 %v609_v57  ;;  %v9043_v57 = vld [vmem:[%s10870_s12 + $0x10] sm:$0xff] }
 0x30e   :  { %7427 = vmatprep.subr.mxu0 %v8591_v0 }
 0x30f   :  { %7428 = vmatpush3.msra.mxu0 %v608_v60 }
 0x310   :  { %7429 = vmatprep.subr.mxu0 %v8591_v0 }
 0x311   :  { %7430 = vmatpush3.msra.mxu0 %v607_v61 }
 0x312   :  { %7432 = vmatmul.mubr.msk.f32.vlgmr.msra.gmra.mxu0 %vm615_vm3, %v8987_v62  ;;  %7434 = vmatprep.subr.mxu0 %v8591_v0 }
 0x313   :  { %7435 = vmatpush3.msra.mxu0 %v8993_v6  ;;  %7442 = vmatprep.mubr.msk.f32.mxu0 %vm8592_vm0, %v8591_v0 }
 0x314   :  { %7436 = vmatprep.subr.mxu0 %v8591_v0 }
 0x315   :  { %7437 = vmatpush3.msra.mxu0 %v9001_v7 }
 0x316   :  { %7438 = vmatprep.subr.mxu0 %v8591_v0 }
 0x317   :  { %7439 = vmatpush3.msra.mxu0 %v9012_v15 }
 0x318   :  { %7440 = vmatprep.subr.mxu0 %v8591_v0 }
 0x319   :  { %7441 = vmatpush3.msra.mxu0 %v9019_v23 }
 0x31a   :  { %7445 = vmatprep.subr.mxu0 %v8591_v0 }
 0x3d2   :  { %v685_v25 = vpop.f32.mrf.mxu0 }
 0x3d3   :  { %v689_v27 = vmul.f32 0.125, %v685_v25 }
 0x3d4   :  { %v7433_v29 = vpop.f32.mrf.mxu0 }
 0x3d5   :  { %7443 = vmatmul.mubr.msk.f32.vlgmr.msra.gmra.mxu0 %vm70_vm2, %v689_v27 }
 0x3d6   :  { %7453 = vmatprep.mubr.msk.f32.mxu0 %vm8592_vm0, %v8591_v0  ;;  %7446 = vmatpush3.msra.mxu0 %v9038_v56 }
 0x3d7   :  { %7447 = vmatprep.subr.mxu0 %v8591_v0 }
 0x3d8   :  { %7448 = vmatpush3.msra.mxu0 %v9043_v57 }
 0x3d9   :  { %7449 = vmatprep.subr.mxu0 %v8591_v0 }
 0x3da   :  { %7450 = vmatpush3.msra.mxu0 %v9050_v58 }
 0x3db   :  { %7451 = vmatprep.subr.mxu0 %v8591_v0 }
 0x3dc   :  { %7452 = vmatpush3.msra.mxu0 %v9057_v59 }
 0x3dd   :  { %7467 = vmatprep.subr.mxu0 %v8591_v0 }
 0x495   :  { %v763_v30 = vpop.f32.mrf.mxu0 }
 0x496   :  { %788 = vrot.lane.b32.xlu0 %v763_v30, %s8595_s21  ;;  %v780_v37 = vadd.f32 %v779_v35, %v763_v30  ;;  %v9073_v30 = vld [vmem:[%s10871_s14 + $0x18] sm:$0xff] }
 0x497   :  { %v7444_v31 = vpop.f32.mrf.mxu0  ;;  %7457 = vmatpush3.msra.mxu1 %v9073_v30 }
 0x498   :  { %v6718_v34 = vmul.f32 -1.442695, %v780_v37  ;;  %7458 = vmatprep.subr.mxu1 %v8591_v0 }
 0x49a   :  { %8319 = vpow2.f32 %v6718_v34 }
 0x4a7   :  { %v8320_v39 = vpop.eup %8319 }
 0x4a8   :  { %v784_v40 = vadd.f32 1.0, %v8320_v39 }
 0x4aa   :  { %8321 = vrcp.f32 %v784_v40 }
 0x4b7   :  { %v8322_v48 = vpop.eup %8321 }
 0x4b8   :  { %v803_v60 = vsub.f32 1.0, %v8322_v48  ;;  %v809_v25 = vmul.f32 0.0, %v8322_v48 }
 0x508   :  { %v789_v36 = vpop.permute.xlu0 %788 }
 0x509   :  { %v791_v49 = vmul.f32 %v8322_v48, %v789_v36 }
 0x50b   :  { %793 = vrot.lane.b32.xlu1 %v791_v49, %s8595_s21 }
 0x57d   :  { %v794_v38 = vpop.permute.xlu1 %793 }
 0x57e   :  { %v796_v51 = vadd.f32 %v794_v38, %v779_v35 }
 0x580   :  { %v6719_v53 = vmul.f32 -1.442695, %v796_v51 }
 0x582   :  { %8323 = vpow2.f32 %v6719_v53 }
 0x58f   :  { %v8324_v54 = vpop.eup %8323 }
 0x590   :  { %v800_v52 = vadd.f32 1.0, %v8324_v54 }
 0x592   :  { %8325 = vrcp.f32 %v800_v52 }
 0x59f   :  { %v8326_v55 = vpop.eup %8325 }
 0x5a0   :  { %805 = vrot.lane.b32.xlu0 %v8326_v55, %s8593_s24 }
 0x612   :  { %v806_v61 = vpop.permute.xlu0 %805 }
 0x613   :  { %v808_v27 = vmul.f32 %v806_v61, %v803_v60 }
 0x615   :  { %v9063_v29 = vadd.f32 %v809_v25, %v808_v27 }
 0x617   :  { %823 = vrot.lane.b32.xlu1 %v9063_v29, %s8593_s24 }
 0x61b   :  { %1559 = vperm.xlu1 %8290, %v8891_v41  }
 0x61f   :  { %1549 = vperm.xlu1 %8290, %v8903_v43  }
 0x623   :  { %1539 = vperm.xlu1 %8290, %v8908_v44  }
 0x627   :  { %1529 = vperm.xlu1 %8290, %v8920_v46  }
 0x689   :  { %v824_v31 = vpop.permute.xlu1 %823 }
 0x68a   :  { %7454 = vmatmul.mubr.msk.f32.vlgmr.msra.gmra.mxu0 %vm70_vm2, %v824_v31 }
 0x68b   :  { %7468 = vmatpush3.msra.mxu0 %v8696_v1  ;;  %7475 = vmatprep.mubr.msk.f32.mxu0 %vm8592_vm0, %v8591_v0  ;;  %v9095_v1 = vld [vmem:[%s10871_s14 + $0x10] sm:$0xff] }
 0x68c   :  { %7469 = vmatprep.subr.mxu0 %v8591_v0  ;;  %7459 = vmatpush3.msra.mxu1 %v9095_v1 }
 0x68d   :  { %7470 = vmatpush3.msra.mxu0 %v8701_v2  ;;  %7460 = vmatprep.subr.mxu1 %v8591_v0  ;;  %v9102_v2 = vld [vmem:[%s10871_s14 + $0x8] sm:$0xff] }
 0x68e   :  { %7471 = vmatprep.subr.mxu0 %v8591_v0  ;;  %7461 = vmatpush3.msra.mxu1 %v9102_v2 }
 0x68f   :  { %7472 = vmatpush3.msra.mxu0 %v8711_v3  ;;  %v9108_v3 = vld [vmem:[%s10871_s14] sm:$0xff]  ;;  %7462 = vmatprep.subr.mxu1 %v8591_v0 }
 0x690   :  { %7473 = vmatprep.subr.mxu0 %v8591_v0  ;;  %7463 = vmatpush3.msra.mxu1 %v9108_v3 }
 0x691   :  { %7474 = vmatpush3.msra.mxu0 %v8720_v4  ;;  %7478 = vmatprep.subr.mxu1 %v8591_v0  ;;  %v9116_v4 = vld [vmem:[%s10872_s13] ss:$0 sm:$0xff] }
 0x692   :  { %7476 = vmatmul.mubr.msk.f32.vlgmr.msra.gmra.mxu0 %vm70_vm2, %v824_v31  ;;  %7501 = vmatprep.subr.mxu0 %v8591_v0 }
 0x693   :  { %7503 = vmatprep.mubr.msk.f32.mxu0 %vm8592_vm0, %v8591_v0 }
 0x74a   :  { %v893_v33 = vpop.f32.mrf.mxu0 }
 0x74b   :  { %v894_v35 = vadd.f32 %v9116_v4, %v893_v33 }
 0x74c   :  { %v7455_v37 = vpop.f32.mrf.mxu0 }
 0x74d   :  { %v897_v34 = vmax.f32 %v894_v35, 0.0 }
 0x74f   :  { %7465 = vmatmul.mubr.msk.f32.vlgmr.msra.gmra.mxu1 %vm70_vm2, %v897_v34 }
 0x750   :  { %7480 = vmatprep.mubr.msk.f32.mxu1 %vm8592_vm0, %v8591_v0 }
 0x752   :  { %v1096_v39 = vpop.f32.mrf.mxu0 }
 0x753   :  { %1115 = vrot.lane.b32.xlu0 %v1096_v39, %s8593_s24  ;;  %7502 = vmatpush3.msra.mxu0 %v1096_v39 }
 0x754   :  { %v7477_v40 = vpop.f32.mrf.mxu0  ;;  %7504 = vmatmul.mubr.msk.f32.vlgmr.msra.gmra.mxu0 %vm162_vm1, %v8732_v5  ;;  %7553 = vmatprep.subr.mxu0 %v8591_v0  ;;  %v6727_v5 = vld [vmem:[%s10864_s0 + $0x8] sm:$0xff] }
 0x755   :  { %7506 = vmatprep.mubr.msk.f32.mxu0 %vm8592_vm0, %v8591_v0 }
 0x757   :  { %1554 = vperm.xlu0 %8289, %v8896_v42  }
 0x758   :  { %7507 = vmatmul.mubr.msk.f32.gmra.mxu0 %vm162_vm1, %v8743_v8 }
 0x759   :  { %7509 = vmatprep.mubr.msk.f32.mxu0 %vm8592_vm0, %v8591_v0 }
 0x75b   :  { %1544 = vperm.xlu0 %8289, %v8915_v45  }
 0x75c   :  { %7510 = vmatmul.mubr.msk.f32.gmra.mxu0 %vm162_vm1, %v8752_v9 }
 0x75d   :  { %7512 = vmatprep.mubr.msk.f32.mxu0 %vm8592_vm0, %v8591_v0 }
 0x75f   :  { %1534 = vperm.xlu0 %8289, %v8927_v47  }
 0x760   :  { %7513 = vmatmul.mubr.msk.f32.gmra.mxu0 %vm162_vm1, %v8761_v10 }
 0x761   :  { %7515 = vmatprep.mubr.msk.f32.mxu0 %vm8592_vm0, %v8591_v0 }
 0x763   :  { %1724 = vperm.xlu0 %8289, %v6727_v5  }
 0x764   :  { %7516 = vmatmul.mubr.msk.f32.gmra.mxu0 %vm162_vm1, %v8770_v11 }
 0x765   :  { %7518 = vmatprep.mubr.msk.f32.mxu0 %vm8592_vm0, %v8591_v0 }
 0x768   :  { %7519 = vmatmul.mubr.msk.f32.gmra.mxu0 %vm162_vm1, %v8779_v12 }
 0x769   :  { %7521 = vmatprep.mubr.msk.f32.mxu0 %vm8592_vm0, %v8591_v0 }
 0x76c   :  { %7522 = vmatmul.mubr.msk.f32.gmra.mxu0 %vm162_vm1, %v8788_v13 }
 0x76d   :  { %7567 = vmatprep.mubr.msk.f32.mxu0 %vm8592_vm0, %v8591_v0 }
 0x7c5   :  { %v1116_v8 = vpop.permute.xlu0 %1115 }
 0x7c6   :  { %7479 = vmatpush3.msra.mxu1 %v1116_v8 }
 0x7c7   :  { %7481 = vmatmul.mubr.msk.f32.vlgmr.msra.gmra.mxu1 %vm162_vm1, %v8797_v14  ;;  %7524 = vmatprep.subr.mxu1 %v8591_v0 }
 0x7c8   :  { %7483 = vmatprep.mubr.msk.f32.mxu1 %vm8592_vm0, %v8591_v0  ;;  %7525 = vmatpush3.msra.mxu1 %v8861_v22 }
 0x7c9   :  { %7526 = vmatprep.subr.mxu1 %v8591_v0 }
 0x7ca   :  { %7527 = vmatpush3.msra.mxu1 %v8868_v24 }
 0x7cb   :  { %7484 = vmatmul.mubr.msk.f32.gmra.mxu1 %vm162_vm1, %v8807_v16  ;;  %7528 = vmatprep.subr.mxu1 %v8591_v0 }
 0x7cc   :  { %7486 = vmatprep.mubr.msk.f32.mxu1 %vm8592_vm0, %v8591_v0  ;;  %7529 = vmatpush3.msra.mxu1 %v8875_v26 }
 0x7cd   :  { %7530 = vmatprep.subr.mxu1 %v8591_v0 }
 0x7ce   :  { %7531 = vmatpush3.msra.mxu1 %v8882_v28 }
 0x7cf   :  { %7487 = vmatmul.mubr.msk.f32.gmra.mxu1 %vm162_vm1, %v8816_v17  ;;  %7592 = vmatprep.subr.mxu1 %v8591_v0 }
 0x7d0   :  { %7489 = vmatprep.mubr.msk.f32.mxu1 %vm8592_vm0, %v8591_v0 }
 0x7d3   :  { %7490 = vmatmul.mubr.msk.f32.gmra.mxu1 %vm162_vm1, %v8825_v18 }
 0x7d4   :  { %7492 = vmatprep.mubr.msk.f32.mxu1 %vm8592_vm0, %v8591_v0 }
 0x7d7   :  { %7493 = vmatmul.mubr.msk.f32.gmra.mxu1 %vm162_vm1, %v8834_v19 }
 0x7d8   :  { %7495 = vmatprep.mubr.msk.f32.mxu1 %vm8592_vm0, %v8591_v0 }
 0x7db   :  { %7496 = vmatmul.mubr.msk.f32.gmra.mxu1 %vm162_vm1, %v8843_v20 }
 0x7dc   :  { %7498 = vmatprep.mubr.msk.f32.mxu1 %vm8592_vm0, %v8591_v0 }
 0x7df   :  { %7499 = vmatmul.mubr.msk.f32.gmra.mxu1 %vm162_vm1, %v8852_v21 }
 0x7e0   :  { %7532 = vmatprep.mubr.msk.f32.mxu1 %vm8592_vm0, %v8591_v0 }
 0x80f   :  { %v9195_v9 = vpop.f32.mrf.mxu1 }
 0x811   :  { %v7466_v10 = vpop.f32.mrf.mxu1 }
 0x814   :  { %v1326_v11 = vpop.f32.mrf.mxu0 }
 0x816   :  { %v7505_v12 = vpop.f32.mrf.mxu0 }
 0x818   :  { %v1331_v13 = vpop.f32.mrf.mxu0 }
 0x81a   :  { %v7508_v14 = vpop.f32.mrf.mxu0 }
 0x81c   :  { %v1336_v16 = vpop.f32.mrf.mxu0 }
 0x81e   :  { %v7511_v17 = vpop.f32.mrf.mxu0 }
 0x820   :  { %v1341_v18 = vpop.f32.mrf.mxu0 }
 0x822   :  { %v7514_v19 = vpop.f32.mrf.mxu0 }
 0x824   :  { %v1346_v20 = vpop.f32.mrf.mxu0 }
 0x826   :  { %v7517_v22 = vpop.f32.mrf.mxu0 }
 0x828   :  { %v1351_v24 = vpop.f32.mrf.mxu0 }
 0x82a   :  { %v7520_v26 = vpop.f32.mrf.mxu0 }
 0x82c   :  { %v1356_v28 = vpop.f32.mrf.mxu0 }
 0x82e   :  { %v7523_v21 = vpop.f32.mrf.mxu0 }
 0x887   :  { %v1205_v42 = vpop.f32.mrf.mxu1 }
 0x888   :  { %v1327_v45 = vadd.f32 %v1326_v11, %v1205_v42 }
 0x889   :  { %v7482_v47 = vpop.f32.mrf.mxu1 }
 0x88a   :  { %v1367_v48 = vadd.f32 %v8936_v50, %v1327_v45 }
 0x88b   :  { %v1210_v36 = vpop.f32.mrf.mxu1 }
 0x88c   :  { %8327 = vtanh.f32 %v1367_v48  ;;  %v1332_v49 = vadd.f32 %v1331_v13, %v1210_v36 }
 0x88d   :  { %v7485_v38 = vpop.f32.mrf.mxu1 }
 0x88e   :  { %v1368_v51 = vadd.f32 %v8936_v50, %v1332_v49 }
 0x88f   :  { %v1215_v53 = vpop.f32.mrf.mxu1 }
 0x890   :  { %8329 = vtanh.f32 %v1368_v51  ;;  %v1337_v54 = vadd.f32 %v1336_v16, %v1215_v53 }
 0x891   :  { %v7488_v52 = vpop.f32.mrf.mxu1 }
 0x892   :  { %v1369_v55 = vadd.f32 %v8936_v50, %v1337_v54 }
 0x893   :  { %v1220_v60 = vpop.f32.mrf.mxu1 }
 0x894   :  { %8331 = vtanh.f32 %v1369_v55  ;;  %v1342_v61 = vadd.f32 %v1341_v18, %v1220_v60  ;;  %v1560_v55 = vpop.permute.xlu1 %1559  ;;  %v1555_v60 = vpop.permute.xlu0 %1554 }
 0x895   :  { %v7491_v25 = vpop.f32.mrf.mxu1 }
 0x896   :  { %v1370_v27 = vadd.f32 %v8936_v50, %v1342_v61 }
 0x897   :  { %v1225_v31 = vpop.f32.mrf.mxu1 }
 0x898   :  { %8333 = vtanh.f32 %v1370_v27  ;;  %v1347_v33 = vadd.f32 %v1346_v20, %v1225_v31  ;;  %v1550_v27 = vpop.permute.xlu1 %1549 }
 0x899   :  { %v8328_v35 = vpop.eup %8327  ;;  %v7494_v37 = vpop.f32.mrf.mxu1 }
 0x89a   :  { %v1371_v34 = vadd.f32 %v8936_v50, %v1347_v33  ;;  %7533 = vmatmul.mubr.msk.f32.vlgmr.msra.gmra.mxu1 %vm70_vm2, %v8328_v35 }
 0x89b   :  { %v1230_v39 = vpop.f32.mrf.mxu1  ;;  %7535 = vmatprep.mubr.msk.f32.mxu1 %vm8592_vm0, %v8591_v0  ;;  %7593 = vmatpush3.msra.mxu1 %v9073_v30 }
 0x89c   :  { %8335 = vtanh.f32 %v1371_v34  ;;  %v1352_v40 = vadd.f32 %v1351_v24, %v1230_v39  ;;  %7594 = vmatprep.subr.mxu1 %v8591_v0  ;;  %v1545_v34 = vpop.permute.xlu0 %1544 }
 0x89d   :  { %v8330_v5 = vpop.eup %8329  ;;  %v7497_v8 = vpop.f32.mrf.mxu1  ;;  %7595 = vmatpush3.msra.mxu1 %v9095_v1 }
 0x89e   :  { %v1372_v10 = vadd.f32 %v8936_v50, %v1352_v40  ;;  %7536 = vmatmul.mubr.msk.f32.gmra.mxu1 %vm70_vm2, %v8330_v5  ;;  %7596 = vmatprep.subr.mxu1 %v8591_v0 }
 0x89f   :  { %v1235_v11 = vpop.f32.mrf.mxu1  ;;  %7538 = vmatprep.mubr.msk.f32.mxu1 %vm8592_vm0, %v8591_v0  ;;  %7597 = vmatpush3.msra.mxu1 %v9102_v2 }
 0x8a0   :  { %8337 = vtanh.f32 %v1372_v10  ;;  %v1357_v30 = vadd.f32 %v1356_v28, %v1235_v11  ;;  %7598 = vmatprep.subr.mxu1 %v8591_v0 }
 0x8a1   :  { %v8332_v12 = vpop.eup %8331  ;;  %v7500_v13 = vpop.f32.mrf.mxu1  ;;  %7599 = vmatpush3.msra.mxu1 %v9108_v3 }
 0x8a2   :  { %v1373_v1 = vadd.f32 %v8936_v50, %v1357_v30  ;;  %7539 = vmatmul.mubr.msk.f32.gmra.mxu1 %vm70_vm2, %v8332_v12  ;;  %7614 = vmatprep.subr.mxu1 %v8591_v0  ;;  %v1535_v30 = vpop.permute.xlu0 %1534 }
 0x8a3   :  { %7541 = vmatprep.mubr.msk.f32.mxu1 %vm8592_vm0, %v8591_v0 }
 0x8a4   :  { %8339 = vtanh.f32 %v1373_v1 }
 0x8a5   :  { %v8334_v14 = vpop.eup %8333 }
 0x8a6   :  { %7542 = vmatmul.mubr.msk.f32.gmra.mxu1 %vm70_vm2, %v8334_v14 }
 0x8a7   :  { %7544 = vmatprep.mubr.msk.f32.mxu1 %vm8592_vm0, %v8591_v0 }
 0x8a9   :  { %v8336_v2 = vpop.eup %8335 }
 0x8aa   :  { %7545 = vmatmul.mubr.msk.f32.gmra.mxu1 %vm70_vm2, %v8336_v2 }
 0x8ab   :  { %7547 = vmatprep.mubr.msk.f32.mxu1 %vm8592_vm0, %v8591_v0 }
 0x8ad   :  { %v8338_v50 = vpop.eup %8337 }
 0x8ae   :  { %7548 = vmatmul.mubr.msk.f32.gmra.mxu1 %vm70_vm2, %v8338_v50 }
 0x8af   :  { %7550 = vmatprep.mubr.msk.f32.mxu1 %vm8592_vm0, %v8591_v0 }
 0x8b1   :  { %v8340_v3 = vpop.eup %8339 }
 0x8b2   :  { %7551 = vmatmul.mubr.msk.f32.gmra.mxu1 %vm70_vm2, %v8340_v3 }
 0x8b3   :  { %7600 = vmatprep.mubr.msk.f32.mxu1 %vm8592_vm0, %v8591_v0 }
 0x95a   :  { %v1479_v16 = vpop.f32.mrf.mxu1 }
 0x95b   :  { %v1480_v52 = vadd.f32 %v8970_v63, %v1479_v16 }
 0x95c   :  { %v7534_v17 = vpop.f32.mrf.mxu1 }
 0x95e   :  { %v1484_v18 = vpop.f32.mrf.mxu1 }
 0x95f   :  { %v1485_v54 = vadd.f32 %v8970_v63, %v1484_v18 }
 0x960   :  { %v7537_v19 = vpop.f32.mrf.mxu1 }
 0x962   :  { %v1489_v20 = vpop.f32.mrf.mxu1 }
 0x963   :  { %v1490_v53 = vadd.f32 %v8970_v63, %v1489_v20 }
 0x964   :  { %v7540_v22 = vpop.f32.mrf.mxu1 }
 0x966   :  { %v1494_v24 = vpop.f32.mrf.mxu1 }
 0x967   :  { %v1495_v51 = vadd.f32 %v8970_v63, %v1494_v24 }
 0x968   :  { %v7543_v26 = vpop.f32.mrf.mxu1 }
 0x96a   :  { %v1499_v28 = vpop.f32.mrf.mxu1 }
 0x96b   :  { %v1500_v36 = vadd.f32 %v8970_v63, %v1499_v28 }
 0x96c   :  { %v7546_v21 = vpop.f32.mrf.mxu1 }
 0x96e   :  { %v1504_v42 = vpop.f32.mrf.mxu1 }
 0x96f   :  { %v1505_v45 = vadd.f32 %v8970_v63, %v1504_v42 }
 0x970   :  { %v7549_v47 = vpop.f32.mrf.mxu1 }
 0x971   :  { %8341 = vtanh.f32 %v1505_v45  ;;  %v9286_v45 = vld [vmem:[%s10884_s29 + $0x18] sm:$0xff]  ;;  %v9292_v47 = vld [vmem:[%s10884_s29 + $0x10] sm:$0xff] }
 0x972   :  { %v1509_v48 = vpop.f32.mrf.mxu1 }
 0x973   :  { %v1510_v49 = vadd.f32 %v8970_v63, %v1509_v48  ;;  %v1540_v63 = vpop.permute.xlu1 %1539 }
 0x974   :  { %v7552_v38 = vpop.f32.mrf.mxu1 }
 0x975   :  { %8343 = vtanh.f32 %v1510_v49  ;;  %v9324_v49 = vld [vmem:[%s10885_s23] sm:$0xff] }
 0x976   :  { %8345 = vtanh.f32 %v1500_v36 }
 0x977   :  { %8347 = vtanh.f32 %v1495_v51  ;;  %v1530_v13 = vpop.permute.xlu1 %1529 }
 0x978   :  { %8349 = vtanh.f32 %v1490_v53  ;;  %v8585_v53 = vld [vmem:[%s10863_s2 + $0x28] sm:$0xff] }
 0x979   :  { %8351 = vtanh.f32 %v1485_v54  ;;  %v9347_v54 = vld [vmem:[%s10885_s23 + $0x10] sm:$0xff] }
 0x97a   :  { %8353 = vtanh.f32 %v1480_v52  ;;  %v8586_v52 = vld [vmem:[%s10863_s2 + $0x18] sm:$0xff] }
 0x97e   :  { %v8342_v61 = vpop.eup %8341 }
 0x97f   :  { %v1567_v35 = vmul.f32 %v8342_v61, %v1555_v60  ;;  %v8587_v60 = vld [vmem:[%s10863_s2 + $0x8] sm:$0xff]  ;;  %v6764_v61 = vld [vmem:[%s10864_s0 + $0x10] sm:$0xff] }
 0x982   :  { %v8344_v25 = vpop.eup %8343 }
 0x983   :  { %v1568_v31 = vmul.f32 %v8344_v25, %v1560_v55  ;;  %v8346_v33 = vpop.eup %8345  ;;  %v9359_v55 = vld [vmem:[%s10885_s23 + $0x18] sm:$0xff]  ;;  %v9374_v25 = vld [vmem:[%s10885_s23 + $0x20] sm:$0xff] }
 0x984   :  { %v8348_v37 = vpop.eup %8347  ;;  %v1566_v39 = vmul.f32 %v8346_v33, %v1550_v27  ;;  %v9383_v27 = vld [vmem:[%s10885_s23 + $0x28] sm:$0xff]  ;;  %v9401_v33 = vld [vmem:[%s10886_s27] sm:$0xff] }
 0x985   :  { %7554 = vmatpush3.msra.mxu0 %v1568_v31  ;;  %v8350_v40 = vpop.eup %8349  ;;  %v1565_v5 = vmul.f32 %v8348_v37, %v1545_v34  ;;  %v9392_v31 = vld [vmem:[%s10885_s23 + $0x30] sm:$0xff]  ;;  %v9411_v37 = vld [vmem:[%s10886_s27 + $0x8] sm:$0xff] }
 0x986   :  { %7555 = vmatprep.subr.mxu0 %v8591_v0  ;;  %v8352_v8 = vpop.eup %8351  ;;  %v1564_v10 = vmul.f32 %v8350_v40, %v1540_v63  ;;  %v9420_v34 = vld [vmem:[%s10886_s27 + $0x10] sm:$0xff]  ;;  %v9438_v40 = vld [vmem:[%s10886_s27 + $0x20] sm:$0xff]  ;;  %v9447_v63 = vld [vmem:[%s10886_s27 + $0x28] sm:$0xff] }
 0x987   :  { %7556 = vmatpush3.msra.mxu0 %v1567_v35  ;;  %v8354_v11 = vpop.eup %8353  ;;  %v1563_v12 = vmul.f32 %v8352_v8, %v1535_v30 }
 0x988   :  { %7557 = vmatprep.subr.mxu0 %v8591_v0  ;;  %v1562_v1 = vmul.f32 %v8354_v11, %v1530_v13 }
 0x989   :  { %7558 = vmatpush3.msra.mxu0 %v1566_v39  ;;  %v9429_v39 = vld [vmem:[%s10886_s27 + $0x18] sm:$0xff] }
 0x98a   :  { %7559 = vmatprep.subr.mxu0 %v8591_v0 }
 0x98b   :  { %7560 = vmatpush3.msra.mxu0 %v1565_v5  ;;  %v9456_v5 = vld [vmem:[%s10886_s27 + $0x30] sm:$0xff] }
 0x98c   :  { %7561 = vmatprep.subr.mxu0 %v8591_v0 }
 0x98d   :  { %7562 = vmatpush3.msra.mxu0 %v1564_v10  ;;  %v9467_v10 = vld [vmem:[%s10862_s8 + $0x18] sm:$0xff] }
 0x98e   :  { %7563 = vmatprep.subr.mxu0 %v8591_v0 }
 0x98f   :  { %7564 = vmatpush3.msra.mxu0 %v1563_v12  ;;  %v9474_v12 = vld [vmem:[%s10862_s8 + $0x10] sm:$0xff] }
 0x990   :  { %7565 = vmatprep.subr.mxu0 %v8591_v0 }
 0x991   :  { %7566 = vmatpush3.msra.mxu0 %v1562_v1  ;;  %v9481_v1 = vld [vmem:[%s10862_s8 + $0x8] sm:$0xff] }
 0x992   :  { %7568 = vmatmul.mubr.msk.f32.vlgmr.msra.gmra.mxu0 %vm615_vm3, %v8987_v62  ;;  %7570 = vmatprep.subr.mxu0 %v8591_v0 }
 0x993   :  { %7571 = vmatpush3.msra.mxu0 %v8993_v6  ;;  %7578 = vmatprep.mubr.msk.f32.mxu0 %vm8592_vm0, %v8591_v0 }
 0x994   :  { %7572 = vmatprep.subr.mxu0 %v8591_v0 }
 0x995   :  { %7573 = vmatpush3.msra.mxu0 %v9001_v7 }
 0x996   :  { %7574 = vmatprep.subr.mxu0 %v8591_v0 }
 0x997   :  { %7575 = vmatpush3.msra.mxu0 %v9012_v15 }
 0x998   :  { %7576 = vmatprep.subr.mxu0 %v8591_v0 }
 0x999   :  { %7577 = vmatpush3.msra.mxu0 %v9019_v23  ;;  %v1725_v23 = vpop.permute.xlu0 %1724 }
 0x99a   :  { %7581 = vmatprep.subr.mxu0 %v8591_v0 }
 0xa52   :  { %v1639_v62 = vpop.f32.mrf.mxu0 }
 0xa53   :  { %v1643_v14 = vmul.f32 0.125, %v1639_v62 }
 0xa54   :  { %v7569_v6 = vpop.f32.mrf.mxu0 }
 0xa55   :  { %7579 = vmatmul.mubr.msk.f32.vlgmr.msra.gmra.mxu0 %vm70_vm2, %v1643_v14  ;;  %v9488_v14 = vld [vmem:[%s10862_s8] sm:$0xff] }
 0xa56   :  { %7582 = vmatpush3.msra.mxu0 %v9038_v56  ;;  %7589 = vmatprep.mubr.msk.f32.mxu0 %vm8592_vm0, %v8591_v0  ;;  %v1733_v56 = vmul.f32 %v9030_v32, %v1725_v23 }
 0xa57   :  { %7583 = vmatprep.subr.mxu0 %v8591_v0 }
 0xa58   :  { %7584 = vmatpush3.msra.mxu0 %v9043_v57 }
 0xa59   :  { %7585 = vmatprep.subr.mxu0 %v8591_v0 }
 0xa5a   :  { %7586 = vmatpush3.msra.mxu0 %v9050_v58 }
 0xa5b   :  { %7587 = vmatprep.subr.mxu0 %v8591_v0 }
 0xa5c   :  { %7588 = vmatpush3.msra.mxu0 %v9057_v59 }
 0xa5d   :  { %7603 = vmatprep.subr.mxu0 %v8591_v0 }
 0xb15   :  { %v1717_v7 = vpop.f32.mrf.mxu0 }
 0xb16   :  { %1742 = vrot.lane.b32.xlu1 %v1717_v7, %s8595_s21  ;;  %v1734_v2 = vadd.f32 %v1733_v56, %v1717_v7 }
 0xb17   :  { %v7580_v15 = vpop.f32.mrf.mxu0 }
 0xb18   :  { %v6755_v50 = vmul.f32 -1.442695, %v1734_v2 }
 0xb1a   :  { %8355 = vpow2.f32 %v6755_v50 }
 0xb27   :  { %v8356_v57 = vpop.eup %8355 }
 0xb28   :  { %v1738_v3 = vadd.f32 1.0, %v8356_v57 }
 0xb2a   :  { %8357 = vrcp.f32 %v1738_v3 }
 0xb37   :  { %v8358_v58 = vpop.eup %8357 }
 0xb38   :  { %v1757_v32 = vsub.f32 1.0, %v8358_v58  ;;  %v1763_v28 = vmul.f32 %v8358_v58, %v9063_v29 }
 0xb88   :  { %v1743_v16 = vpop.permute.xlu1 %1742 }
 0xb89   :  { %v1745_v17 = vmul.f32 %v8358_v58, %v1743_v16 }
 0xb8b   :  { %1747 = vrot.lane.b32.xlu0 %v1745_v17, %s8595_s21 }
 0xbfd   :  { %v1748_v59 = vpop.permute.xlu0 %1747 }
 0xbfe   :  { %v1750_v18 = vadd.f32 %v1748_v59, %v1733_v56  ;;  %v9495_v59 = vld [vmem:[%s10865_s7] ss:$0 sm:$0xff] }
 0xc00   :  { %v6756_v19 = vmul.f32 -1.442695, %v1750_v18 }
 0xc02   :  { %8359 = vpow2.f32 %v6756_v19 }
 0xc0f   :  { %v8360_v20 = vpop.eup %8359 }
 0xc10   :  { %v1754_v22 = vadd.f32 1.0, %v8360_v20 }
 0xc12   :  { %8361 = vrcp.f32 %v1754_v22 }
 0xc1f   :  { %v8362_v24 = vpop.eup %8361 }
 0xc20   :  { %1759 = vrot.lane.b32.xlu1 %v8362_v24, %s8593_s24 }
 0xc92   :  { %v1760_v26 = vpop.permute.xlu1 %1759 }
 0xc93   :  { %v1762_v21 = vmul.f32 %v1760_v26, %v1757_v32 }
 0xc95   :  { %v9275_v42 = vadd.f32 %v1763_v28, %v1762_v21 }
 0xc97   :  { %1777 = vrot.lane.b32.xlu0 %v9275_v42, %s8593_s24 }
 0xc9b   :  { %2504 = vperm.xlu0 %8289, %v8891_v41   ;;  %v9301_v41 = vld [vmem:[%s10884_s29 + $0x8] sm:$0xff] }
 0xc9f   :  { %2494 = vperm.xlu0 %8289, %v8903_v43   ;;  %v9308_v43 = vld [vmem:[%s10884_s29] sm:$0xff] }
 0xca3   :  { %2484 = vperm.xlu0 %8289, %v8908_v44  }
 0xca7   :  { %2474 = vperm.xlu0 %8289, %v8920_v46  }
 0xd09   :  { %v1778_v29 = vpop.permute.xlu0 %1777 }
 0xd0a   :  { %7590 = vmatmul.mubr.msk.f32.vlgmr.msra.gmra.mxu0 %vm70_vm2, %v1778_v29 }
 0xd0b   :  { %7604 = vmatpush3.msra.mxu0 %v9286_v45  ;;  %7611 = vmatprep.mubr.msk.f32.mxu0 %vm8592_vm0, %v8591_v0 }
 0xd0c   :  { %7605 = vmatprep.subr.mxu0 %v8591_v0 }
 0xd0d   :  { %7606 = vmatpush3.msra.mxu0 %v9292_v47 }
 0xd0e   :  { %7607 = vmatprep.subr.mxu0 %v8591_v0 }
 0xd0f   :  { %7608 = vmatpush3.msra.mxu0 %v9301_v41 }
 0xd10   :  { %7609 = vmatprep.subr.mxu0 %v8591_v0 }
 0xd11   :  { %7610 = vmatpush3.msra.mxu0 %v9308_v43 }
 0xd12   :  { %7612 = vmatmul.mubr.msk.f32.vlgmr.msra.gmra.mxu0 %vm70_vm2, %v1778_v29  ;;  %7637 = vmatprep.subr.mxu0 %v8591_v0 }
 0xd13   :  { %7639 = vmatprep.mubr.msk.f32.mxu0 %vm8592_vm0, %v8591_v0 }
 0xdca   :  { %v1847_v44 = vpop.f32.mrf.mxu0 }
 0xdcb   :  { %v1848_v46 = vadd.f32 %v9116_v4, %v1847_v44  ;;  %v9335_v4 = vld [vmem:[%s10885_s23 + $0x8] sm:$0xff] }
 0xdcc   :  { %v7591_v48 = vpop.f32.mrf.mxu0 }
 0xdcd   :  { %v1851_v36 = vmax.f32 %v1848_v46, 0.0 }
 0xdcf   :  { %7601 = vmatmul.mubr.msk.f32.vlgmr.msra.gmra.mxu1 %vm70_vm2, %v1851_v36 }
 0xdd0   :  { %7616 = vmatprep.mubr.msk.f32.mxu1 %vm8592_vm0, %v8591_v0 }
 0xdd2   :  { %v2041_v38 = vpop.f32.mrf.mxu0 }
 0xdd3   :  { %2060 = vrot.lane.b32.xlu1 %v2041_v38, %s8593_s24  ;;  %7638 = vmatpush3.msra.mxu0 %v2041_v38 }
 0xdd4   :  { %v7613_v51 = vpop.f32.mrf.mxu0  ;;  %7640 = vmatmul.mubr.msk.f32.vlgmr.msra.gmra.mxu0 %vm162_vm1, %v9324_v49  ;;  %7689 = vmatprep.subr.mxu0 %v8591_v0 }
 0xdd5   :  { %7642 = vmatprep.mubr.msk.f32.mxu0 %vm8592_vm0, %v8591_v0 }
 0xdd7   :  { %2499 = vperm.xlu1 %8290, %v8585_v53  }
 0xdd8   :  { %7643 = vmatmul.mubr.msk.f32.gmra.mxu0 %vm162_vm1, %v9335_v4 }
 0xdd9   :  { %7645 = vmatprep.mubr.msk.f32.mxu0 %vm8592_vm0, %v8591_v0 }
 0xddb   :  { %2489 = vperm.xlu1 %8290, %v8586_v52  }
 0xddc   :  { %7646 = vmatmul.mubr.msk.f32.gmra.mxu0 %vm162_vm1, %v9347_v54 }
 0xddd   :  { %7648 = vmatprep.mubr.msk.f32.mxu0 %vm8592_vm0, %v8591_v0 }
 0xddf   :  { %2479 = vperm.xlu1 %8290, %v8587_v60  }
 0xde0   :  { %7649 = vmatmul.mubr.msk.f32.gmra.mxu0 %vm162_vm1, %v9359_v55 }
 0xde1   :  { %7651 = vmatprep.mubr.msk.f32.mxu0 %vm8592_vm0, %v8591_v0 }
 0xde3   :  { %2669 = vperm.xlu1 %8290, %v6764_v61  }
 0xde4   :  { %7652 = vmatmul.mubr.msk.f32.gmra.mxu0 %vm162_vm1, %v9374_v25 }
 0xde5   :  { %7654 = vmatprep.mubr.msk.f32.mxu0 %vm8592_vm0, %v8591_v0 }
 0xde8   :  { %7655 = vmatmul.mubr.msk.f32.gmra.mxu0 %vm162_vm1, %v9383_v27 }
 0xde9   :  { %7657 = vmatprep.mubr.msk.f32.mxu0 %vm8592_vm0, %v8591_v0 }
 0xdec   :  { %7658 = vmatmul.mubr.msk.f32.gmra.mxu0 %vm162_vm1, %v9392_v31 }
 0xded   :  { %7703 = vmatprep.mubr.msk.f32.mxu0 %vm8592_vm0, %v8591_v0 }
 0xe45   :  { %v2061_v35 = vpop.permute.xlu1 %2060 }
 0xe46   :  { %7615 = vmatpush3.msra.mxu1 %v2061_v35 }
 0xe47   :  { %7617 = vmatmul.mubr.msk.f32.vlgmr.msra.gmra.mxu1 %vm162_vm1, %v9401_v33  ;;  %7660 = vmatprep.subr.mxu1 %v8591_v0 }
 0xe48   :  { %7619 = vmatprep.mubr.msk.f32.mxu1 %vm8592_vm0, %v8591_v0  ;;  %7661 = vmatpush3.msra.mxu1 %v9467_v10 }
 0xe49   :  { %7662 = vmatprep.subr.mxu1 %v8591_v0 }
 0xe4a   :  { %7663 = vmatpush3.msra.mxu1 %v9474_v12 }
 0xe4b   :  { %7620 = vmatmul.mubr.msk.f32.gmra.mxu1 %vm162_vm1, %v9411_v37  ;;  %7664 = vmatprep.subr.mxu1 %v8591_v0 }
 0xe4c   :  { %7622 = vmatprep.mubr.msk.f32.mxu1 %vm8592_vm0, %v8591_v0  ;;  %7665 = vmatpush3.msra.mxu1 %v9481_v1 }
 0xe4d   :  { %7666 = vmatprep.subr.mxu1 %v8591_v0 }
 0xe4e   :  { %7667 = vmatpush3.msra.mxu1 %v9488_v14 }
 0xe4f   :  { %7623 = vmatmul.mubr.msk.f32.gmra.mxu1 %vm162_vm1, %v9420_v34  ;;  %7739 = vmatprep.subr.mxu1 %v8591_v0 }
 0xe50   :  { %7625 = vmatprep.mubr.msk.f32.mxu1 %vm8592_vm0, %v8591_v0 }
 0xe53   :  { %7626 = vmatmul.mubr.msk.f32.gmra.mxu1 %vm162_vm1, %v9429_v39 }
 0xe54   :  { %7628 = vmatprep.mubr.msk.f32.mxu1 %vm8592_vm0, %v8591_v0 }
 0xe57   :  { %7629 = vmatmul.mubr.msk.f32.gmra.mxu1 %vm162_vm1, %v9438_v40 }
 0xe58   :  { %7631 = vmatprep.mubr.msk.f32.mxu1 %vm8592_vm0, %v8591_v0 }
 0xe5b   :  { %7632 = vmatmul.mubr.msk.f32.gmra.mxu1 %vm162_vm1, %v9447_v63 }
 0xe5c   :  { %7634 = vmatprep.mubr.msk.f32.mxu1 %vm8592_vm0, %v8591_v0 }
 0xe5f   :  { %7635 = vmatmul.mubr.msk.f32.gmra.mxu1 %vm162_vm1, %v9456_v5 }
 0xe60   :  { %7668 = vmatprep.mubr.msk.f32.mxu1 %vm8592_vm0, %v8591_v0 }
 0xe8f   :  { %v9462_v8 = vpop.f32.mrf.mxu1 }
 0xe91   :  { %v7602_v11 = vpop.f32.mrf.mxu1 }
 0xe94   :  { %v2271_v30 = vpop.f32.mrf.mxu0 }
 0xe96   :  { %v7641_v13 = vpop.f32.mrf.mxu0 }
 0xe98   :  { %v2276_v62 = vpop.f32.mrf.mxu0 }
 0xe9a   :  { %v7644_v6 = vpop.f32.mrf.mxu0 }
 0xe9c   :  { %v2281_v7 = vpop.f32.mrf.mxu0 }
 0xe9e   :  { %v7647_v15 = vpop.f32.mrf.mxu0 }
 0xea0   :  { %v2286_v23 = vpop.f32.mrf.mxu0 }
 0xea2   :  { %v7650_v56 = vpop.f32.mrf.mxu0 }
 0xea4   :  { %v2291_v2 = vpop.f32.mrf.mxu0 }
 0xea6   :  { %v7653_v50 = vpop.f32.mrf.mxu0 }
 0xea8   :  { %v2296_v57 = vpop.f32.mrf.mxu0 }
 0xeaa   :  { %v7656_v3 = vpop.f32.mrf.mxu0 }
 0xeac   :  { %v2301_v58 = vpop.f32.mrf.mxu0 }
 0xeae   :  { %v7659_v16 = vpop.f32.mrf.mxu0 }
 0xf07   :  { %v2150_v17 = vpop.f32.mrf.mxu1 }
 0xf08   :  { %v2272_v18 = vadd.f32 %v2271_v30, %v2150_v17 }
 0xf09   :  { %v7618_v19 = vpop.f32.mrf.mxu1 }
 0xf0a   :  { %v2312_v20 = vadd.f32 %v9495_v59, %v2272_v18 }
 0xf0b   :  { %v2155_v22 = vpop.f32.mrf.mxu1 }
 0xf0c   :  { %8363 = vtanh.f32 %v2312_v20  ;;  %v2277_v24 = vadd.f32 %v2276_v62, %v2155_v22 }
 0xf0d   :  { %v7621_v32 = vpop.f32.mrf.mxu1 }
 0xf0e   :  { %v2313_v26 = vadd.f32 %v9495_v59, %v2277_v24  ;;  %v9536_v24 = vld [vmem:[%s10866_s9] ss:$0 sm:$0xff] }
 0xf0f   :  { %v2160_v28 = vpop.f32.mrf.mxu1 }
 0xf10   :  { %8365 = vtanh.f32 %v2313_v26  ;;  %v2282_v21 = vadd.f32 %v2281_v7, %v2160_v28 }
 0xf11   :  { %v7624_v29 = vpop.f32.mrf.mxu1 }
 0xf12   :  { %v2314_v44 = vadd.f32 %v9495_v59, %v2282_v21 }
 0xf13   :  { %v2165_v46 = vpop.f32.mrf.mxu1 }
 0xf14   :  { %8367 = vtanh.f32 %v2314_v44  ;;  %v2287_v48 = vadd.f32 %v2286_v23, %v2165_v46 }
 0xf15   :  { %v7627_v36 = vpop.f32.mrf.mxu1 }
 0xf16   :  { %v2315_v38 = vadd.f32 %v9495_v59, %v2287_v48 }
 0xf17   :  { %v2170_v51 = vpop.f32.mrf.mxu1 }
 0xf18   :  { %8369 = vtanh.f32 %v2315_v38  ;;  %v2292_v53 = vadd.f32 %v2291_v2, %v2170_v51  ;;  %v2505_v51 = vpop.permute.xlu0 %2504 }
 0xf19   :  { %v8364_v52 = vpop.eup %8363  ;;  %v7630_v60 = vpop.f32.mrf.mxu1 }
 0xf1a   :  { %v2316_v61 = vadd.f32 %v9495_v59, %v2292_v53  ;;  %7669 = vmatmul.mubr.msk.f32.vlgmr.msra.gmra.mxu1 %vm70_vm2, %v8364_v52  ;;  %v2500_v53 = vpop.permute.xlu1 %2499 }
 0xf1b   :  { %v2175_v35 = vpop.f32.mrf.mxu1  ;;  %7671 = vmatprep.mubr.msk.f32.mxu1 %vm8592_vm0, %v8591_v0  ;;  %7740 = vmatpush3.msra.mxu1 %v9286_v45 }
 0xf1c   :  { %8371 = vtanh.f32 %v2316_v61  ;;  %v2297_v11 = vadd.f32 %v2296_v57, %v2175_v35  ;;  %7741 = vmatprep.subr.mxu1 %v8591_v0  ;;  %v2495_v61 = vpop.permute.xlu0 %2494 }
 0xf1d   :  { %v8366_v30 = vpop.eup %8365  ;;  %v7633_v13 = vpop.f32.mrf.mxu1  ;;  %7742 = vmatpush3.msra.mxu1 %v9292_v47 }
 0xf1e   :  { %v2317_v62 = vadd.f32 %v9495_v59, %v2297_v11  ;;  %7672 = vmatmul.mubr.msk.f32.gmra.mxu1 %vm70_vm2, %v8366_v30  ;;  %7743 = vmatprep.subr.mxu1 %v8591_v0 }
 0xf1f   :  { %v2180_v6 = vpop.f32.mrf.mxu1  ;;  %7674 = vmatprep.mubr.msk.f32.mxu1 %vm8592_vm0, %v8591_v0  ;;  %7744 = vmatpush3.msra.mxu1 %v9301_v41 }
 0xf20   :  { %8373 = vtanh.f32 %v2317_v62  ;;  %v2302_v45 = vadd.f32 %v2301_v58, %v2180_v6  ;;  %7745 = vmatprep.subr.mxu1 %v8591_v0  ;;  %v2490_v62 = vpop.permute.xlu1 %2489 }
 0xf21   :  { %v8368_v7 = vpop.eup %8367  ;;  %v7636_v15 = vpop.f32.mrf.mxu1  ;;  %7746 = vmatpush3.msra.mxu1 %v9308_v43 }
 0xf22   :  { %v2318_v47 = vadd.f32 %v9495_v59, %v2302_v45  ;;  %7675 = vmatmul.mubr.msk.f32.gmra.mxu1 %vm70_vm2, %v8368_v7  ;;  %7773 = vmatprep.subr.mxu1 %v8591_v0  ;;  %v2485_v7 = vpop.permute.xlu0 %2484 }
 0xf23   :  { %7677 = vmatprep.mubr.msk.f32.mxu1 %vm8592_vm0, %v8591_v0 }
 0xf24   :  { %8375 = vtanh.f32 %v2318_v47 }
 0xf25   :  { %v8370_v23 = vpop.eup %8369 }
 0xf26   :  { %7678 = vmatmul.mubr.msk.f32.gmra.mxu1 %vm70_vm2, %v8370_v23 }
 0xf27   :  { %7680 = vmatprep.mubr.msk.f32.mxu1 %vm8592_vm0, %v8591_v0 }
 0xf29   :  { %v8372_v41 = vpop.eup %8371 }
 0xf2a   :  { %7681 = vmatmul.mubr.msk.f32.gmra.mxu1 %vm70_vm2, %v8372_v41 }
 0xf2b   :  { %7683 = vmatprep.mubr.msk.f32.mxu1 %vm8592_vm0, %v8591_v0 }
 0xf2d   :  { %v8374_v43 = vpop.eup %8373 }
 0xf2e   :  { %7684 = vmatmul.mubr.msk.f32.gmra.mxu1 %vm70_vm2, %v8374_v43  ;;  %v2480_v43 = vpop.permute.xlu1 %2479 }
 0xf2f   :  { %7686 = vmatprep.mubr.msk.f32.mxu1 %vm8592_vm0, %v8591_v0 }
 0xf31   :  { %v8376_v56 = vpop.eup %8375 }
 0xf32   :  { %7687 = vmatmul.mubr.msk.f32.gmra.mxu1 %vm70_vm2, %v8376_v56 }
 0xf33   :  { %7747 = vmatprep.mubr.msk.f32.mxu1 %vm8592_vm0, %v8591_v0 }
 0xfda   :  { %v2424_v2 = vpop.f32.mrf.mxu1 }
 0xfdb   :  { %v2425_v38 = vadd.f32 %v9536_v24, %v2424_v2  ;;  %v2475_v2 = vpop.permute.xlu0 %2474 }
 0xfdc   :  { %v7670_v50 = vpop.f32.mrf.mxu1 }
 0xfde   :  { %v2429_v57 = vpop.f32.mrf.mxu1 }
 0xfdf   :  { %v2430_v36 = vadd.f32 %v9536_v24, %v2429_v57  ;;  %v9553_v57 = vld [vmem:[%s10867_s5] sm:$0xff] }
 0xfe0   :  { %v7673_v3 = vpop.f32.mrf.mxu1 }
 0xfe1   :  { %v9559_v3 = vld [vmem:[%s10868_s10 + $0x18] sm:$0xff] }
 0xfe2   :  { %v2434_v58 = vpop.f32.mrf.mxu1 }
 0xfe3   :  { %v2435_v48 = vadd.f32 %v9536_v24, %v2434_v58  ;;  %v9567_v58 = vld [vmem:[%s10868_s10 + $0x10] sm:$0xff] }
 0xfe4   :  { %v7676_v16 = vpop.f32.mrf.mxu1 }
 0xfe5   :  { %v9578_v16 = vld [vmem:[%s10868_s10 + $0x8] sm:$0xff] }
 0xfe6   :  { %v2439_v17 = vpop.f32.mrf.mxu1 }
 0xfe7   :  { %v2440_v46 = vadd.f32 %v9536_v24, %v2439_v17  ;;  %v9585_v17 = vld [vmem:[%s10868_s10] sm:$0xff] }
 0xfe8   :  { %v7679_v18 = vpop.f32.mrf.mxu1 }
 0xfea   :  { %v2444_v19 = vpop.f32.mrf.mxu1 }
 0xfeb   :  { %v2445_v21 = vadd.f32 %v9536_v24, %v2444_v19 }
 0xfec   :  { %v7682_v20 = vpop.f32.mrf.mxu1 }
 0xfee   :  { %v2449_v22 = vpop.f32.mrf.mxu1 }
 0xfef   :  { %v2450_v32 = vadd.f32 %v9536_v24, %v2449_v22 }
 0xff0   :  { %v7685_v26 = vpop.f32.mrf.mxu1 }
 0xff1   :  { %8377 = vtanh.f32 %v2450_v32  ;;  %v2670_v26 = vpop.permute.xlu1 %2669 }
 0xff2   :  { %v2454_v28 = vpop.f32.mrf.mxu1 }
 0xff3   :  { %v2455_v29 = vadd.f32 %v9536_v24, %v2454_v28  ;;  %v8588_v28 = vld [vmem:[%s10869_s11] ss:$0 sm:$0xff] }
 0xff4   :  { %v7688_v44 = vpop.f32.mrf.mxu1 }
 0xff5   :  { %8379 = vtanh.f32 %v2455_v29 }
 0xff6   :  { %8381 = vtanh.f32 %v2445_v21  ;;  %v2678_v21 = vmul.f32 %v8588_v28, %v2670_v26 }
 0xff7   :  { %8383 = vtanh.f32 %v2440_v46 }
 0xff8   :  { %8385 = vtanh.f32 %v2435_v48 }
 0xff9   :  { %8387 = vtanh.f32 %v2430_v36 }
 0xffa   :  { %8389 = vtanh.f32 %v2425_v38 }
 0xffe   :  { %v8378_v52 = vpop.eup %8377 }
 0xfff   :  { %v2512_v30 = vmul.f32 %v8378_v52, %v2500_v53 }
0x1002   :  { %v8380_v60 = vpop.eup %8379 }
0x1003   :  { %v2513_v35 = vmul.f32 %v8380_v60, %v2505_v51  ;;  %v8382_v11 = vpop.eup %8381 }
0x1004   :  { %v8384_v13 = vpop.eup %8383  ;;  %v2511_v6 = vmul.f32 %v8382_v11, %v2495_v61 }
0x1005   :  { %7690 = vmatpush3.msra.mxu0 %v2513_v35  ;;  %v8386_v45 = vpop.eup %8385  ;;  %v2510_v15 = vmul.f32 %v8384_v13, %v2490_v62  ;;  %v9606_v13 = vld [vmem:[%s10870_s12 + $0x10] sm:$0xff]  ;;  %v9613_v62 = vld [vmem:[%s10870_s12 + $0x8] sm:$0xff] }
0x1006   :  { %7691 = vmatprep.subr.mxu0 %v8591_v0  ;;  %v8388_v47 = vpop.eup %8387  ;;  %v2509_v23 = vmul.f32 %v8386_v45, %v2485_v7 }
0x1007   :  { %7692 = vmatpush3.msra.mxu0 %v2512_v30  ;;  %v8390_v41 = vpop.eup %8389  ;;  %v2508_v56 = vmul.f32 %v8388_v47, %v2480_v43  ;;  %v9601_v30 = vld [vmem:[%s10870_s12 + $0x18] sm:$0xff]  ;;  %v9640_v43 = vld [vmem:[%s10863_s2 + $0x20] sm:$0xff] }
0x1008   :  { %7693 = vmatprep.subr.mxu0 %v8591_v0  ;;  %v2507_v50 = vmul.f32 %v8390_v41, %v2475_v2  ;;  %v9634_v41 = vld [vmem:[%s10863_s2 + $0x30] sm:$0xff]  ;;  %v9658_v2 = vld [vmem:[%s10871_s14 + $0x18] sm:$0xff] }
0x1009   :  { %7694 = vmatpush3.msra.mxu0 %v2511_v6  ;;  %v9620_v6 = vld [vmem:[%s10870_s12] sm:$0xff] }
0x100a   :  { %7695 = vmatprep.subr.mxu0 %v8591_v0 }
0x100b   :  { %7696 = vmatpush3.msra.mxu0 %v2510_v15 }
0x100c   :  { %7697 = vmatprep.subr.mxu0 %v8591_v0 }
0x100d   :  { %7698 = vmatpush3.msra.mxu0 %v2509_v23 }
0x100e   :  { %7699 = vmatprep.subr.mxu0 %v8591_v0 }
0x100f   :  { %7700 = vmatpush3.msra.mxu0 %v2508_v56  ;;  %v9652_v56 = vld [vmem:[%s10863_s2] sm:$0xff] }
0x1010   :  { %7701 = vmatprep.subr.mxu0 %v8591_v0 }
0x1011   :  { %7702 = vmatpush3.msra.mxu0 %v2507_v50 }
0x1012   :  { %7704 = vmatmul.mubr.msk.f32.vlgmr.msra.gmra.mxu0 %vm615_vm3, %v9553_v57  ;;  %7706 = vmatprep.subr.mxu0 %v8591_v0 }
0x1013   :  { %7707 = vmatpush3.msra.mxu0 %v9559_v3  ;;  %7714 = vmatprep.mubr.msk.f32.mxu0 %vm8592_vm0, %v8591_v0 }
0x1014   :  { %7708 = vmatprep.subr.mxu0 %v8591_v0 }
0x1015   :  { %7709 = vmatpush3.msra.mxu0 %v9567_v58 }
0x1016   :  { %7710 = vmatprep.subr.mxu0 %v8591_v0 }
0x1017   :  { %7711 = vmatpush3.msra.mxu0 %v9578_v16 }
0x1018   :  { %7712 = vmatprep.subr.mxu0 %v8591_v0 }
0x1019   :  { %7713 = vmatpush3.msra.mxu0 %v9585_v17 }
0x101a   :  { %7717 = vmatprep.subr.mxu0 %v8591_v0 }
0x10d2   :  { %v2584_v18 = vpop.f32.mrf.mxu0 }
0x10d3   :  { %v2588_v19 = vmul.f32 0.125, %v2584_v18  ;;  %v9671_v18 = vld [vmem:[%s10871_s14 + $0x10] sm:$0xff] }
0x10d4   :  { %v7705_v20 = vpop.f32.mrf.mxu0 }
0x10d5   :  { %7715 = vmatmul.mubr.msk.f32.vlgmr.msra.gmra.mxu0 %vm70_vm2, %v2588_v19  ;;  %v9678_v19 = vld [vmem:[%s10871_s14 + $0x8] sm:$0xff]  ;;  %v9685_v20 = vld [vmem:[%s10871_s14] sm:$0xff] }
0x10d6   :  { %7725 = vmatprep.mubr.msk.f32.mxu0 %vm8592_vm0, %v8591_v0  ;;  %7718 = vmatpush3.msra.mxu0 %v9601_v30 }
0x10d7   :  { %7719 = vmatprep.subr.mxu0 %v8591_v0 }
0x10d8   :  { %7720 = vmatpush3.msra.mxu0 %v9606_v13 }
0x10d9   :  { %7721 = vmatprep.subr.mxu0 %v8591_v0 }
0x10da   :  { %7722 = vmatpush3.msra.mxu0 %v9613_v62 }
0x10db   :  { %7723 = vmatprep.subr.mxu0 %v8591_v0 }
0x10dc   :  { %7724 = vmatpush3.msra.mxu0 %v9620_v6 }
0x10dd   :  { %7728 = vmatprep.subr.mxu0 %v8591_v0 }
0x1195   :  { %v2662_v22 = vpop.f32.mrf.mxu0 }
0x1196   :  { %2687 = vrot.lane.b32.xlu0 %v2662_v22, %s8595_s21  ;;  %v2679_v29 = vadd.f32 %v2678_v21, %v2662_v22  ;;  %v9692_v22 = vld [vmem:[%s10872_s13] ss:$0 sm:$0xff] }
0x1197   :  { %v7716_v32 = vpop.f32.mrf.mxu0 }
0x1198   :  { %v6792_v44 = vmul.f32 -1.442695, %v2679_v29 }
0x119a   :  { %8391 = vpow2.f32 %v6792_v44  ;;  %v9699_v44 = vld [vmem:[%s10863_s2 + $0x28] sm:$0xff] }
0x11a7   :  { %v8392_v46 = vpop.eup %8391 }
0x11a8   :  { %v2683_v48 = vadd.f32 1.0, %v8392_v46 }
0x11aa   :  { %8393 = vrcp.f32 %v2683_v48  ;;  %v9711_v48 = vld [vmem:[%s10863_s2 + $0x18] sm:$0xff] }
0x11b7   :  { %v8394_v36 = vpop.eup %8393 }
0x11b8   :  { %v2702_v45 = vsub.f32 1.0, %v8394_v36  ;;  %v2708_v15 = vmul.f32 %v8394_v36, %v9275_v42  ;;  %v9646_v42 = vld [vmem:[%s10863_s2 + $0x10] sm:$0xff] }
0x1208   :  { %v2688_v38 = vpop.permute.xlu0 %2687 }
0x1209   :  { %v2690_v51 = vmul.f32 %v8394_v36, %v2688_v38 }
0x120b   :  { %2692 = vrot.lane.b32.xlu1 %v2690_v51, %s8595_s21 }
0x127d   :  { %v2693_v53 = vpop.permute.xlu1 %2692 }
0x127e   :  { %v2695_v52 = vadd.f32 %v2693_v53, %v2678_v21 }
0x1280   :  { %v6793_v60 = vmul.f32 -1.442695, %v2695_v52 }
0x1282   :  { %8395 = vpow2.f32 %v6793_v60 }
0x128f   :  { %v8396_v61 = vpop.eup %8395 }
0x1290   :  { %v2699_v35 = vadd.f32 1.0, %v8396_v61 }
0x1292   :  { %8397 = vrcp.f32 %v2699_v35 }
0x129f   :  { %v8398_v11 = vpop.eup %8397 }
0x12a0   :  { %2704 = vrot.lane.b32.xlu0 %v8398_v11, %s8593_s24 }
0x1312   :  { %v2705_v7 = vpop.permute.xlu0 %2704 }
0x1313   :  { %v2707_v47 = vmul.f32 %v2705_v7, %v2702_v45 }
0x1315   :  { %v9627_v23 = vadd.f32 %v2708_v15, %v2707_v47 }
0x1317   :  { %2722 = vrot.lane.b32.xlu1 %v9627_v23, %s8593_s24 }
0x131b   :  { %3449 = vperm.xlu1 %8290, %v9634_v41  }
0x131f   :  { %3439 = vperm.xlu1 %8290, %v9640_v43  }
0x1323   :  { %3429 = vperm.xlu1 %8290, %v9646_v42  }
0x1327   :  { %3419 = vperm.xlu1 %8290, %v9652_v56  }
0x1389   :  { %v2723_v50 = vpop.permute.xlu1 %2722 }
0x138a   :  { %7726 = vmatmul.mubr.msk.f32.vlgmr.msra.gmra.mxu0 %vm70_vm2, %v2723_v50  ;;  %7748 = vmatmul.mubr.msk.f32.vlgmr.msra.gmra.mxu1 %vm70_vm2, %v2723_v50 }
0x138b   :  { %7729 = vmatpush3.msra.mxu0 %v9658_v2  ;;  %7736 = vmatprep.mubr.msk.f32.mxu0 %vm8592_vm0, %v8591_v0 }
0x138c   :  { %7730 = vmatprep.subr.mxu0 %v8591_v0  ;;  %7775 = vmatprep.mubr.msk.f32.mxu1 %vm8592_vm0, %v8591_v0 }
0x138d   :  { %7731 = vmatpush3.msra.mxu0 %v9671_v18 }
0x138e   :  { %7732 = vmatprep.subr.mxu0 %v8591_v0 }
0x138f   :  { %7733 = vmatpush3.msra.mxu0 %v9678_v19 }
0x1390   :  { %7734 = vmatprep.subr.mxu0 %v8591_v0 }
0x1391   :  { %7735 = vmatpush3.msra.mxu0 %v9685_v20 }
0x1392   :  { %7750 = vmatprep.subr.mxu0 %v8591_v0 }
0x144a   :  { %v2792_v32 = vpop.f32.mrf.mxu0  ;;  %v2986_v26 = vpop.f32.mrf.mxu1 }
0x144b   :  { %v2793_v28 = vadd.f32 %v9692_v22, %v2792_v32  ;;  %3005 = vrot.lane.b32.xlu0 %v2986_v26, %s8593_s24  ;;  %7774 = vmatpush3.msra.mxu1 %v2986_v26 }
0x144c   :  { %v7727_v21 = vpop.f32.mrf.mxu0  ;;  %v7749_v29 = vpop.f32.mrf.mxu1  ;;  %7776 = vmatmul.mubr.msk.f32.vlgmr.msra.gmra.mxu1 %vm162_vm1, %v9324_v49  ;;  %7825 = vmatprep.subr.mxu1 %v8591_v0  ;;  %v9723_v49 = vld [vmem:[%s10863_s2 + $0x8] sm:$0xff] }
0x144d   :  { %v2796_v46 = vmax.f32 %v2793_v28, 0.0  ;;  %7778 = vmatprep.mubr.msk.f32.mxu1 %vm8592_vm0, %v8591_v0 }
0x144f   :  { %3444 = vperm.xlu0 %8289, %v9699_v44   ;;  %7737 = vmatmul.mubr.msk.f32.vlgmr.msra.gmra.mxu0 %vm70_vm2, %v2796_v46 }
0x1450   :  { %7752 = vmatprep.mubr.msk.f32.mxu0 %vm8592_vm0, %v8591_v0  ;;  %7779 = vmatmul.mubr.msk.f32.gmra.mxu1 %vm162_vm1, %v9335_v4  ;;  %v6801_v4 = vld [vmem:[%s10864_s0 + $0x18] sm:$0xff] }
0x1451   :  { %7781 = vmatprep.mubr.msk.f32.mxu1 %vm8592_vm0, %v8591_v0 }
0x1453   :  { %3434 = vperm.xlu0 %8289, %v9711_v48  }
0x1454   :  { %7782 = vmatmul.mubr.msk.f32.gmra.mxu1 %vm162_vm1, %v9347_v54 }
0x1455   :  { %7784 = vmatprep.mubr.msk.f32.mxu1 %vm8592_vm0, %v8591_v0 }
0x1457   :  { %3424 = vperm.xlu0 %8289, %v9723_v49  }
0x1458   :  { %7785 = vmatmul.mubr.msk.f32.gmra.mxu1 %vm162_vm1, %v9359_v55 }
0x1459   :  { %7787 = vmatprep.mubr.msk.f32.mxu1 %vm8592_vm0, %v8591_v0 }
0x145b   :  { %3614 = vperm.xlu0 %8289, %v6801_v4  }
0x145c   :  { %7788 = vmatmul.mubr.msk.f32.gmra.mxu1 %vm162_vm1, %v9374_v25 }
0x145d   :  { %7790 = vmatprep.mubr.msk.f32.mxu1 %vm8592_vm0, %v8591_v0 }
0x1460   :  { %7791 = vmatmul.mubr.msk.f32.gmra.mxu1 %vm162_vm1, %v9383_v27 }
0x1461   :  { %7793 = vmatprep.mubr.msk.f32.mxu1 %vm8592_vm0, %v8591_v0 }
0x1464   :  { %7794 = vmatmul.mubr.msk.f32.gmra.mxu1 %vm162_vm1, %v9392_v31 }
0x1465   :  { %7839 = vmatprep.mubr.msk.f32.mxu1 %vm8592_vm0, %v8591_v0 }
0x14bd   :  { %v3006_v54 = vpop.permute.xlu0 %3005 }
0x14be   :  { %7751 = vmatpush3.msra.mxu0 %v3006_v54 }
0x14bf   :  { %7753 = vmatmul.mubr.msk.f32.vlgmr.msra.gmra.mxu0 %vm162_vm1, %v9401_v33  ;;  %7796 = vmatprep.subr.mxu0 %v8591_v0 }
0x14c0   :  { %7755 = vmatprep.mubr.msk.f32.mxu0 %vm8592_vm0, %v8591_v0  ;;  %7797 = vmatpush3.msra.mxu0 %v9467_v10 }
0x14c1   :  { %7798 = vmatprep.subr.mxu0 %v8591_v0 }
0x14c2   :  { %7799 = vmatpush3.msra.mxu0 %v9474_v12 }
0x14c3   :  { %7756 = vmatmul.mubr.msk.f32.gmra.mxu0 %vm162_vm1, %v9411_v37  ;;  %7800 = vmatprep.subr.mxu0 %v8591_v0 }
0x14c4   :  { %7758 = vmatprep.mubr.msk.f32.mxu0 %vm8592_vm0, %v8591_v0  ;;  %7801 = vmatpush3.msra.mxu0 %v9481_v1 }
0x14c5   :  { %7802 = vmatprep.subr.mxu0 %v8591_v0 }
0x14c6   :  { %7803 = vmatpush3.msra.mxu0 %v9488_v14 }
0x14c7   :  { %7759 = vmatmul.mubr.msk.f32.gmra.mxu0 %vm162_vm1, %v9420_v34  ;;  %7875 = vmatprep.subr.mxu0 %v8591_v0 }
0x14c8   :  { %7761 = vmatprep.mubr.msk.f32.mxu0 %vm8592_vm0, %v8591_v0 }
0x14cb   :  { %7762 = vmatmul.mubr.msk.f32.gmra.mxu0 %vm162_vm1, %v9429_v39 }
0x14cc   :  { %7764 = vmatprep.mubr.msk.f32.mxu0 %vm8592_vm0, %v8591_v0 }
0x14cf   :  { %7765 = vmatmul.mubr.msk.f32.gmra.mxu0 %vm162_vm1, %v9438_v40 }
0x14d0   :  { %7767 = vmatprep.mubr.msk.f32.mxu0 %vm8592_vm0, %v8591_v0 }
0x14d3   :  { %7768 = vmatmul.mubr.msk.f32.gmra.mxu0 %vm162_vm1, %v9447_v63 }
0x14d4   :  { %7770 = vmatprep.mubr.msk.f32.mxu0 %vm8592_vm0, %v8591_v0 }
0x14d7   :  { %7771 = vmatmul.mubr.msk.f32.gmra.mxu0 %vm162_vm1, %v9456_v5 }
0x14d8   :  { %7804 = vmatprep.mubr.msk.f32.mxu0 %vm8592_vm0, %v8591_v0 }
0x150c   :  { %v3216_v55 = vpop.f32.mrf.mxu1 }
0x150e   :  { %v7777_v25 = vpop.f32.mrf.mxu1 }
0x150f   :  { %v9786_v27 = vpop.f32.mrf.mxu0 }
0x1510   :  { %v3221_v31 = vpop.f32.mrf.mxu1 }
0x1511   :  { %v7738_v33 = vpop.f32.mrf.mxu0 }
0x1512   :  { %v7780_v37 = vpop.f32.mrf.mxu1 }
0x1514   :  { %v3226_v34 = vpop.f32.mrf.mxu1 }
0x1516   :  { %v7783_v39 = vpop.f32.mrf.mxu1 }
0x1518   :  { %v3231_v40 = vpop.f32.mrf.mxu1 }
0x151a   :  { %v7786_v63 = vpop.f32.mrf.mxu1 }
0x151c   :  { %v3236_v10 = vpop.f32.mrf.mxu1 }
0x151e   :  { %v7789_v12 = vpop.f32.mrf.mxu1 }
0x1520   :  { %v3241_v1 = vpop.f32.mrf.mxu1 }
0x1522   :  { %v7792_v14 = vpop.f32.mrf.mxu1 }
0x1524   :  { %v3246_v36 = vpop.f32.mrf.mxu1 }
0x1526   :  { %v7795_v5 = vpop.f32.mrf.mxu1 }
0x157f   :  { %v3095_v38 = vpop.f32.mrf.mxu0 }
0x1580   :  { %v3217_v51 = vadd.f32 %v3216_v55, %v3095_v38 }
0x1581   :  { %v7754_v53 = vpop.f32.mrf.mxu0 }
0x1582   :  { %v3257_v52 = vadd.f32 %v9495_v59, %v3217_v51 }
0x1583   :  { %v3100_v60 = vpop.f32.mrf.mxu0 }
0x1584   :  { %8399 = vtanh.f32 %v3257_v52  ;;  %v3222_v61 = vadd.f32 %v3221_v31, %v3100_v60 }
0x1585   :  { %v7757_v35 = vpop.f32.mrf.mxu0 }
0x1586   :  { %v3258_v11 = vadd.f32 %v9495_v59, %v3222_v61 }
0x1587   :  { %v3105_v45 = vpop.f32.mrf.mxu0 }
0x1588   :  { %8401 = vtanh.f32 %v3258_v11  ;;  %v3227_v7 = vadd.f32 %v3226_v34, %v3105_v45 }
0x1589   :  { %v7760_v15 = vpop.f32.mrf.mxu0 }
0x158a   :  { %v3259_v47 = vadd.f32 %v9495_v59, %v3227_v7 }
0x158b   :  { %v3110_v50 = vpop.f32.mrf.mxu0 }
0x158c   :  { %8403 = vtanh.f32 %v3259_v47  ;;  %v3232_v32 = vadd.f32 %v3231_v40, %v3110_v50 }
0x158d   :  { %v7763_v26 = vpop.f32.mrf.mxu0 }
0x158e   :  { %v3260_v28 = vadd.f32 %v9495_v59, %v3232_v32 }
0x158f   :  { %v3115_v21 = vpop.f32.mrf.mxu0 }
0x1590   :  { %8405 = vtanh.f32 %v3260_v28  ;;  %v3237_v29 = vadd.f32 %v3236_v10, %v3115_v21 }
0x1591   :  { %v8400_v46 = vpop.eup %8399  ;;  %v7766_v4 = vpop.f32.mrf.mxu0 }
0x1592   :  { %v3261_v54 = vadd.f32 %v9495_v59, %v3237_v29  ;;  %7805 = vmatmul.mubr.msk.f32.vlgmr.msra.gmra.mxu0 %vm70_vm2, %v8400_v46  ;;  %v3450_v4 = vpop.permute.xlu1 %3449 }
0x1593   :  { %v3120_v55 = vpop.f32.mrf.mxu0  ;;  %7807 = vmatprep.mubr.msk.f32.mxu0 %vm8592_vm0, %v8591_v0 }
0x1594   :  { %8407 = vtanh.f32 %v3261_v54  ;;  %v3242_v25 = vadd.f32 %v3241_v1, %v3120_v55  ;;  %v3445_v54 = vpop.permute.xlu0 %3444 }
0x1595   :  { %v8402_v31 = vpop.eup %8401  ;;  %v7769_v33 = vpop.f32.mrf.mxu0 }
0x1596   :  { %v3262_v37 = vadd.f32 %v9495_v59, %v3242_v25  ;;  %7808 = vmatmul.mubr.msk.f32.gmra.mxu0 %vm70_vm2, %v8402_v31  ;;  %v3440_v31 = vpop.permute.xlu1 %3439 }
0x1597   :  { %v3125_v34 = vpop.f32.mrf.mxu0  ;;  %7810 = vmatprep.mubr.msk.f32.mxu0 %vm8592_vm0, %v8591_v0 }
0x1598   :  { %8409 = vtanh.f32 %v3262_v37  ;;  %v3247_v39 = vadd.f32 %v3246_v36, %v3125_v34 }
0x1599   :  { %v8404_v40 = vpop.eup %8403  ;;  %v7772_v63 = vpop.f32.mrf.mxu0 }
0x159a   :  { %v3263_v10 = vadd.f32 %v9495_v59, %v3247_v39  ;;  %7811 = vmatmul.mubr.msk.f32.gmra.mxu0 %vm70_vm2, %v8404_v40  ;;  %v3435_v40 = vpop.permute.xlu0 %3434 }
0x159b   :  { %7813 = vmatprep.mubr.msk.f32.mxu0 %vm8592_vm0, %v8591_v0 }
0x159c   :  { %8411 = vtanh.f32 %v3263_v10 }
0x159d   :  { %v8406_v12 = vpop.eup %8405 }
0x159e   :  { %7814 = vmatmul.mubr.msk.f32.gmra.mxu0 %vm70_vm2, %v8406_v12 }
0x159f   :  { %7816 = vmatprep.mubr.msk.f32.mxu0 %vm8592_vm0, %v8591_v0 }
0x15a1   :  { %v8408_v1 = vpop.eup %8407 }
0x15a2   :  { %7817 = vmatmul.mubr.msk.f32.gmra.mxu0 %vm70_vm2, %v8408_v1 }
0x15a3   :  { %7819 = vmatprep.mubr.msk.f32.mxu0 %vm8592_vm0, %v8591_v0 }
0x15a5   :  { %v8410_v14 = vpop.eup %8409 }
0x15a6   :  { %7820 = vmatmul.mubr.msk.f32.gmra.mxu0 %vm70_vm2, %v8410_v14 }
0x15a7   :  { %7822 = vmatprep.mubr.msk.f32.mxu0 %vm8592_vm0, %v8591_v0 }
0x15a9   :  { %v8412_v59 = vpop.eup %8411 }
0x15aa   :  { %7823 = vmatmul.mubr.msk.f32.gmra.mxu0 %vm70_vm2, %v8412_v59 }
0x15ab   :  { %7883 = vmatprep.mubr.msk.f32.mxu0 %vm8592_vm0, %v8591_v0 }
0x1652   :  { %v3369_v36 = vpop.f32.mrf.mxu0 }
0x1653   :  { %v3370_v46 = vadd.f32 %v9536_v24, %v3369_v36  ;;  %v3425_v36 = vpop.permute.xlu0 %3424 }
0x1654   :  { %v7806_v5 = vpop.f32.mrf.mxu0 }
0x1656   :  { %v3374_v38 = vpop.f32.mrf.mxu0 }
0x1657   :  { %v3375_v29 = vadd.f32 %v9536_v24, %v3374_v38 }
0x1658   :  { %v7809_v51 = vpop.f32.mrf.mxu0 }
0x165a   :  { %v3379_v53 = vpop.f32.mrf.mxu0 }
0x165b   :  { %v3380_v21 = vadd.f32 %v9536_v24, %v3379_v53 }
0x165c   :  { %v7812_v52 = vpop.f32.mrf.mxu0 }
0x165e   :  { %v3384_v60 = vpop.f32.mrf.mxu0 }
0x165f   :  { %v3385_v28 = vadd.f32 %v9536_v24, %v3384_v60 }
0x1660   :  { %v7815_v61 = vpop.f32.mrf.mxu0 }
0x1662   :  { %v3389_v35 = vpop.f32.mrf.mxu0 }
0x1663   :  { %v3390_v50 = vadd.f32 %v9536_v24, %v3389_v35 }
0x1664   :  { %v7818_v11 = vpop.f32.mrf.mxu0 }
0x1666   :  { %v3394_v45 = vpop.f32.mrf.mxu0 }
0x1667   :  { %v3395_v7 = vadd.f32 %v9536_v24, %v3394_v45 }
0x1668   :  { %v7821_v15 = vpop.f32.mrf.mxu0 }
0x1669   :  { %8413 = vtanh.f32 %v3395_v7 }
0x166a   :  { %v3399_v47 = vpop.f32.mrf.mxu0 }
0x166b   :  { %v3400_v32 = vadd.f32 %v9536_v24, %v3399_v47  ;;  %v3430_v24 = vpop.permute.xlu1 %3429 }
0x166c   :  { %v7824_v26 = vpop.f32.mrf.mxu0 }
0x166d   :  { %8415 = vtanh.f32 %v3400_v32  ;;  %v9865_v26 = vld [vmem:[%s10884_s29 + $0x18] sm:$0xff] }
0x166e   :  { %8417 = vtanh.f32 %v3390_v50  ;;  %7876 = vmatpush3.msra.mxu0 %v9865_v26 }
0x166f   :  { %8419 = vtanh.f32 %v3385_v28  ;;  %v3420_v38 = vpop.permute.xlu1 %3419  ;;  %v9870_v28 = vld [vmem:[%s10884_s29 + $0x10] sm:$0xff]  ;;  %7877 = vmatprep.subr.mxu0 %v8591_v0 }
0x1670   :  { %8421 = vtanh.f32 %v3380_v21  ;;  %v9877_v21 = vld [vmem:[%s10884_s29 + $0x8] sm:$0xff]  ;;  %7878 = vmatpush3.msra.mxu0 %v9870_v28 }
0x1671   :  { %8423 = vtanh.f32 %v3375_v29  ;;  %7879 = vmatprep.subr.mxu0 %v8591_v0  ;;  %v9884_v29 = vld [vmem:[%s10884_s29] sm:$0xff] }
0x1672   :  { %8425 = vtanh.f32 %v3370_v46  ;;  %7880 = vmatpush3.msra.mxu0 %v9877_v21 }
0x1673   :  { %7881 = vmatprep.subr.mxu0 %v8591_v0 }
0x1674   :  { %7882 = vmatpush3.msra.mxu0 %v9884_v29 }
0x1675   :  { %7909 = vmatprep.subr.mxu0 %v8591_v0 }
0x1676   :  { %v8414_v55 = vpop.eup %8413 }
0x1677   :  { %v3457_v34 = vmul.f32 %v8414_v55, %v3445_v54 }
0x167a   :  { %v8416_v25 = vpop.eup %8415 }
0x167b   :  { %v3458_v33 = vmul.f32 %v8416_v25, %v3450_v4  ;;  %v8418_v37 = vpop.eup %8417 }
0x167c   :  { %v8420_v39 = vpop.eup %8419  ;;  %v3456_v63 = vmul.f32 %v8418_v37, %v3440_v31  ;;  %v9988_v37 = vld [vmem:[%s10873_s1] ss:$0 sm:$0xff] }
0x167d   :  { %7826 = vmatpush3.msra.mxu1 %v3458_v33  ;;  %v8422_v10 = vpop.eup %8421  ;;  %v3455_v12 = vmul.f32 %v8420_v39, %v3435_v40  ;;  %v9979_v33 = vld [vmem:[%s10885_s23 + $0x30] sm:$0xff]  ;;  %v10004_v40 = vld [vmem:[%s10886_s27 + $0x8] sm:$0xff] }
0x167e   :  { %7827 = vmatprep.subr.mxu1 %v8591_v0  ;;  %v8424_v1 = vpop.eup %8423  ;;  %v3454_v14 = vmul.f32 %v8422_v10, %v3430_v24  ;;  %v10022_v10 = vld [vmem:[%s10886_s27 + $0x18] sm:$0xff]  ;;  %v10031_v24 = vld [vmem:[%s10886_s27 + $0x20] sm:$0xff] }
0x167f   :  { %7828 = vmatpush3.msra.mxu1 %v3457_v34  ;;  %v8426_v59 = vpop.eup %8425  ;;  %v3453_v5 = vmul.f32 %v8424_v1, %v3425_v36  ;;  %v9994_v34 = vld [vmem:[%s10886_s27] sm:$0xff]  ;;  %v10049_v1 = vld [vmem:[%s10886_s27 + $0x30] sm:$0xff] }
0x1680   :  { %7829 = vmatprep.subr.mxu1 %v8591_v0  ;;  %v3452_v51 = vmul.f32 %v8426_v59, %v3420_v38  ;;  %v10065_v36 = vld [vmem:[%s10862_s8 + $0x10] sm:$0xff]  ;;  %v10072_v38 = vld [vmem:[%s10862_s8 + $0x8] sm:$0xff] }
0x1681   :  { %7830 = vmatpush3.msra.mxu1 %v3456_v63  ;;  %v10013_v63 = vld [vmem:[%s10886_s27 + $0x10] sm:$0xff] }
0x1682   :  { %7831 = vmatprep.subr.mxu1 %v8591_v0 }
0x1683   :  { %7832 = vmatpush3.msra.mxu1 %v3455_v12  ;;  %v10040_v12 = vld [vmem:[%s10886_s27 + $0x28] sm:$0xff] }
0x1684   :  { %7833 = vmatprep.subr.mxu1 %v8591_v0 }
0x1685   :  { %7834 = vmatpush3.msra.mxu1 %v3454_v14  ;;  %v10058_v14 = vld [vmem:[%s10862_s8 + $0x18] sm:$0xff] }
0x1686   :  { %7835 = vmatprep.subr.mxu1 %v8591_v0 }
0x1687   :  { %7836 = vmatpush3.msra.mxu1 %v3453_v5 }
0x1688   :  { %7837 = vmatprep.subr.mxu1 %v8591_v0 }
0x1689   :  { %7838 = vmatpush3.msra.mxu1 %v3452_v51  ;;  %v6796_v51 = vld [vmem:[%s10874_s15] ss:$0 sm:$0xff] }
0x168a   :  { %7840 = vmatmul.mubr.msk.f32.vlgmr.msra.gmra.mxu1 %vm615_vm3, %v9553_v57  ;;  %7842 = vmatprep.subr.mxu1 %v8591_v0 }
0x168b   :  { %7843 = vmatpush3.msra.mxu1 %v9559_v3  ;;  %7850 = vmatprep.mubr.msk.f32.mxu1 %vm8592_vm0, %v8591_v0 }
0x168c   :  { %7844 = vmatprep.subr.mxu1 %v8591_v0 }
0x168d   :  { %7845 = vmatpush3.msra.mxu1 %v9567_v58 }
0x168e   :  { %7846 = vmatprep.subr.mxu1 %v8591_v0 }
0x168f   :  { %7847 = vmatpush3.msra.mxu1 %v9578_v16 }
0x1690   :  { %7848 = vmatprep.subr.mxu1 %v8591_v0 }
0x1691   :  { %7849 = vmatpush3.msra.mxu1 %v9585_v17  ;;  %v9857_v17 = vld [vmem:[%s10869_s11] ss:$0 sm:$0xff] }
0x1692   :  { %7853 = vmatprep.subr.mxu1 %v8591_v0 }
0x174a   :  { %v3529_v57 = vpop.f32.mrf.mxu1 }
0x174b   :  { %v3533_v53 = vmul.f32 0.125, %v3529_v57 }
0x174c   :  { %v7841_v3 = vpop.f32.mrf.mxu1 }
0x174d   :  { %7851 = vmatmul.mubr.msk.f32.vlgmr.msra.gmra.mxu1 %vm70_vm2, %v3533_v53 }
0x174e   :  { %7854 = vmatpush3.msra.mxu1 %v9601_v30  ;;  %7861 = vmatprep.mubr.msk.f32.mxu1 %vm8592_vm0, %v8591_v0  ;;  %v3615_v30 = vpop.permute.xlu0 %3614 }
0x174f   :  { %7855 = vmatprep.subr.mxu1 %v8591_v0 }
0x1750   :  { %7856 = vmatpush3.msra.mxu1 %v9606_v13  ;;  %v3623_v13 = vmul.f32 %v9857_v17, %v3615_v30  ;;  %v10087_v30 = vld [vmem:[%s10875_s16] ss:$0 sm:$0xff] }
0x1751   :  { %7857 = vmatprep.subr.mxu1 %v8591_v0 }
0x1752   :  { %7858 = vmatpush3.msra.mxu1 %v9613_v62 }
0x1753   :  { %7859 = vmatprep.subr.mxu1 %v8591_v0 }
0x1754   :  { %7860 = vmatpush3.msra.mxu1 %v9620_v6 }
0x1755   :  { %7864 = vmatprep.subr.mxu1 %v8591_v0 }
0x180d   :  { %v3607_v58 = vpop.f32.mrf.mxu1 }
0x180e   :  { %3632 = vrot.lane.b32.xlu1 %v3607_v58, %s8595_s21  ;;  %v3624_v52 = vadd.f32 %v3623_v13, %v3607_v58  ;;  %v10082_v58 = vld [vmem:[%s10862_s8] sm:$0xff] }
0x180f   :  { %v7852_v16 = vpop.f32.mrf.mxu1 }
0x1810   :  { %v6829_v62 = vmul.f32 -1.442695, %v3624_v52 }
0x1812   :  { %8427 = vpow2.f32 %v6829_v62 }
0x181f   :  { %v8428_v60 = vpop.eup %8427 }
0x1820   :  { %v3628_v61 = vadd.f32 1.0, %v8428_v60 }
0x1822   :  { %8429 = vrcp.f32 %v3628_v61 }
0x182f   :  { %v8430_v6 = vpop.eup %8429 }
0x1830   :  { %v3647_v46 = vsub.f32 1.0, %v8430_v6  ;;  %v3653_v54 = vmul.f32 %v8430_v6, %v9627_v23  ;;  %v9916_v23 = vld [vmem:[%s10885_s23] sm:$0xff] }
0x1880   :  { %v3633_v35 = vpop.permute.xlu1 %3632 }
0x1881   :  { %v3635_v11 = vmul.f32 %v8430_v6, %v3633_v35 }
0x1883   :  { %3637 = vrot.lane.b32.xlu0 %v3635_v11, %s8595_s21  ;;  %v23_v11 = vstv %s10876_s17 }
0x1884   :  { %24 = vst [vmem:[#allocation2] sm:$0x1] %v23_v11 }
0x18f5   :  { %v3638_v45 = vpop.permute.xlu0 %3637 }
0x18f6   :  { %v3640_v7 = vadd.f32 %v3638_v45, %v3623_v13 }
0x18f8   :  { %v6830_v15 = vmul.f32 -1.442695, %v3640_v7 }
0x18fa   :  { %8431 = vpow2.f32 %v6830_v15 }
0x1907   :  { %v8432_v47 = vpop.eup %8431 }
0x1908   :  { %v3644_v50 = vadd.f32 1.0, %v8432_v47 }
0x190a   :  { %8433 = vrcp.f32 %v3644_v50 }
0x1917   :  { %v8434_v32 = vpop.eup %8433 }
0x1918   :  { %3649 = vrot.lane.b32.xlu1 %v8434_v32, %s8593_s24 }
0x198a   :  { %v3650_v4 = vpop.permute.xlu1 %3649 }
0x198b   :  { %v3652_v55 = vmul.f32 %v3650_v4, %v3647_v46 }
0x198d   :  { %v9891_v25 = vadd.f32 %v3653_v54, %v3652_v55  ;;  %v10100_v54 = vld [vmem:[%s10865_s7] ss:$0 sm:$0xff] }
0x198f   :  { %3667 = vrot.lane.b32.xlu0 %v9891_v25, %s8593_s24 }
0x1993   :  { %4392 = vperm.xlu0 %8289, %v9634_v41  }
0x1997   :  { %4382 = vperm.xlu0 %8289, %v9640_v43  }
0x199b   :  { %4372 = vperm.xlu0 %8289, %v9646_v42  }
0x199f   :  { %4362 = vperm.xlu0 %8289, %v9652_v56  }
0x19a3   :  { %1014 = vrot.lane.b32.xlu0 %v9988_v37, %s8596_s19 }
0x1a01   :  { %v3668_v31 = vpop.permute.xlu0 %3667 }
0x1a02   :  { %7862 = vmatmul.mubr.msk.f32.vlgmr.msra.gmra.mxu1 %vm70_vm2, %v3668_v31  ;;  %7884 = vmatmul.mubr.msk.f32.vlgmr.msra.gmra.mxu0 %vm70_vm2, %v3668_v31 }
0x1a03   :  { %7865 = vmatpush3.msra.mxu1 %v9658_v2  ;;  %7872 = vmatprep.mubr.msk.f32.mxu1 %vm8592_vm0, %v8591_v0 }
0x1a04   :  { %7866 = vmatprep.subr.mxu1 %v8591_v0  ;;  %7911 = vmatprep.mubr.msk.f32.mxu0 %vm8592_vm0, %v8591_v0 }
0x1a05   :  { %7867 = vmatpush3.msra.mxu1 %v9671_v18 }
0x1a06   :  { %7868 = vmatprep.subr.mxu1 %v8591_v0 }
0x1a07   :  { %7869 = vmatpush3.msra.mxu1 %v9678_v19 }
0x1a08   :  { %7870 = vmatprep.subr.mxu1 %v8591_v0 }
0x1a09   :  { %7871 = vmatpush3.msra.mxu1 %v9685_v20  ;;  %v9928_v20 = vld [vmem:[%s10885_s23 + $0x8] sm:$0xff] }
0x1a0a   :  { %7886 = vmatprep.subr.mxu1 %v8591_v0 }
0x1ac2   :  { %v3737_v41 = vpop.f32.mrf.mxu1  ;;  %v3929_v42 = vpop.f32.mrf.mxu0 }
0x1ac3   :  { %v3738_v56 = vadd.f32 %v9692_v22, %v3737_v41  ;;  %3948 = vrot.lane.b32.xlu1 %v3929_v42, %s8593_s24  ;;  %7910 = vmatpush3.msra.mxu0 %v3929_v42  ;;  %v9941_v22 = vld [vmem:[%s10885_s23 + $0x10] sm:$0xff] }
0x1ac4   :  { %v7863_v2 = vpop.f32.mrf.mxu1  ;;  %v7885_v18 = vpop.f32.mrf.mxu0  ;;  %7912 = vmatmul.mubr.msk.f32.vlgmr.msra.gmra.mxu0 %vm162_vm1, %v9916_v23  ;;  %7961 = vmatprep.subr.mxu0 %v8591_v0 }
0x1ac5   :  { %v3741_v19 = vmax.f32 %v3738_v56, 0.0  ;;  %7914 = vmatprep.mubr.msk.f32.mxu0 %vm8592_vm0, %v8591_v0 }
0x1ac7   :  { %7873 = vmatmul.mubr.msk.f32.vlgmr.msra.gmra.mxu1 %vm70_vm2, %v3741_v19  ;;  %4387 = vperm.xlu1 %8290, %v9699_v44   ;;  %v9951_v44 = vld [vmem:[%s10885_s23 + $0x18] sm:$0xff] }
0x1ac8   :  { %7888 = vmatprep.mubr.msk.f32.mxu1 %vm8592_vm0, %v8591_v0  ;;  %7915 = vmatmul.mubr.msk.f32.gmra.mxu0 %vm162_vm1, %v9928_v20 }
0x1ac9   :  { %7917 = vmatprep.mubr.msk.f32.mxu0 %vm8592_vm0, %v8591_v0 }
0x1acb   :  { %4377 = vperm.xlu1 %8290, %v9711_v48   ;;  %v9961_v48 = vld [vmem:[%s10885_s23 + $0x20] sm:$0xff] }
0x1acc   :  { %7918 = vmatmul.mubr.msk.f32.gmra.mxu0 %vm162_vm1, %v9941_v22 }
0x1acd   :  { %7920 = vmatprep.mubr.msk.f32.mxu0 %vm8592_vm0, %v8591_v0 }
0x1acf   :  { %4367 = vperm.xlu1 %8290, %v9723_v49   ;;  %v9970_v49 = vld [vmem:[%s10885_s23 + $0x28] sm:$0xff] }
0x1ad0   :  { %7921 = vmatmul.mubr.msk.f32.gmra.mxu0 %vm162_vm1, %v9951_v44 }
0x1ad1   :  { %7923 = vmatprep.mubr.msk.f32.mxu0 %vm8592_vm0, %v8591_v0 }
0x1ad4   :  { %7924 = vmatmul.mubr.msk.f32.gmra.mxu0 %vm162_vm1, %v9961_v48 }
0x1ad5   :  { %7926 = vmatprep.mubr.msk.f32.mxu0 %vm8592_vm0, %v8591_v0 }
0x1ad8   :  { %7927 = vmatmul.mubr.msk.f32.gmra.mxu0 %vm162_vm1, %v9970_v49 }
0x1ad9   :  { %7929 = vmatprep.mubr.msk.f32.mxu0 %vm8592_vm0, %v8591_v0 }
0x1adc   :  { %7930 = vmatmul.mubr.msk.f32.gmra.mxu0 %vm162_vm1, %v9979_v33 }
0x1add   :  { %7975 = vmatprep.mubr.msk.f32.mxu0 %vm8592_vm0, %v8591_v0 }
0x1b35   :  { %v3949_v39 = vpop.permute.xlu1 %3948 }
0x1b36   :  { %7887 = vmatpush3.msra.mxu1 %v3949_v39 }
0x1b37   :  { %7889 = vmatmul.mubr.msk.f32.vlgmr.msra.gmra.mxu1 %vm162_vm1, %v9994_v34  ;;  %7932 = vmatprep.subr.mxu1 %v8591_v0 }
0x1b38   :  { %7891 = vmatprep.mubr.msk.f32.mxu1 %vm8592_vm0, %v8591_v0  ;;  %7933 = vmatpush3.msra.mxu1 %v10058_v14 }
0x1b39   :  { %7934 = vmatprep.subr.mxu1 %v8591_v0 }
0x1b3a   :  { %7935 = vmatpush3.msra.mxu1 %v10065_v36 }
0x1b3b   :  { %7892 = vmatmul.mubr.msk.f32.gmra.mxu1 %vm162_vm1, %v10004_v40  ;;  %7936 = vmatprep.subr.mxu1 %v8591_v0 }
0x1b3c   :  { %7894 = vmatprep.mubr.msk.f32.mxu1 %vm8592_vm0, %v8591_v0  ;;  %7937 = vmatpush3.msra.mxu1 %v10072_v38 }
0x1b3d   :  { %7938 = vmatprep.subr.mxu1 %v8591_v0 }
0x1b3e   :  { %7939 = vmatpush3.msra.mxu1 %v10082_v58 }
0x1b3f   :  { %7895 = vmatmul.mubr.msk.f32.gmra.mxu1 %vm162_vm1, %v10013_v63  ;;  %8011 = vmatprep.subr.mxu1 %v8591_v0 }
0x1b40   :  { %7897 = vmatprep.mubr.msk.f32.mxu1 %vm8592_vm0, %v8591_v0 }
0x1b43   :  { %7898 = vmatmul.mubr.msk.f32.gmra.mxu1 %vm162_vm1, %v10022_v10 }
0x1b44   :  { %7900 = vmatprep.mubr.msk.f32.mxu1 %vm8592_vm0, %v8591_v0 }
0x1b47   :  { %7901 = vmatmul.mubr.msk.f32.gmra.mxu1 %vm162_vm1, %v10031_v24 }
0x1b48   :  { %7903 = vmatprep.mubr.msk.f32.mxu1 %vm8592_vm0, %v8591_v0 }
0x1b4b   :  { %7904 = vmatmul.mubr.msk.f32.gmra.mxu1 %vm162_vm1, %v10040_v12 }
0x1b4c   :  { %7906 = vmatprep.mubr.msk.f32.mxu1 %vm8592_vm0, %v8591_v0 }
0x1b4f   :  { %7907 = vmatmul.mubr.msk.f32.gmra.mxu1 %vm162_vm1, %v10049_v1 }
0x1b50   :  { %7940 = vmatprep.mubr.msk.f32.mxu1 %vm8592_vm0, %v8591_v0 }
0x1b84   :  { %v4159_v59 = vpop.f32.mrf.mxu0 }
0x1b86   :  { %v7913_v5 = vpop.f32.mrf.mxu0 }
0x1b87   :  { %v3822_v57 = vpop.f32.mrf.mxu1 }
0x1b88   :  { %v3823_v53 = vadd.f32 %v6796_v51, %v3822_v57  ;;  %v4164_v3 = vpop.f32.mrf.mxu0 }
0x1b89   :  { %v7874_v16 = vpop.f32.mrf.mxu1 }
0x1b8a   :  { %v3826_v13 = vmax.f32 %v3823_v53, 0.0  ;;  %v7916_v52 = vpop.f32.mrf.mxu0 }
0x1b8c   :  { %v3834_v62 = vmul.f32 %v10087_v30, %v3826_v13  ;;  %v4169_v60 = vpop.f32.mrf.mxu0  ;;  %v10106_v13 = vpop.permute.xlu1 %4387 }
0x1b8e   :  { %v3835_v61 = vsel %vm70_vm2, %v3834_v62, 0.0  ;;  %v7919_v6 = vpop.f32.mrf.mxu0 }
0x1b8f   :  { %3836 = vadd.xlane.f32.xlu1 %v3835_v61 }
0x1b90   :  { %v4174_v35 = vpop.f32.mrf.mxu0 }
0x1b92   :  { %v7922_v45 = vpop.f32.mrf.mxu0 }
0x1b93   :  { %v10115_v45 = vpop.permute.xlu1 %4377 }
0x1b94   :  { %v4179_v7 = vpop.f32.mrf.mxu0 }
0x1b96   :  { %v7925_v15 = vpop.f32.mrf.mxu0 }
0x1b98   :  { %v4184_v47 = vpop.f32.mrf.mxu0 }
0x1b9a   :  { %v7928_v50 = vpop.f32.mrf.mxu0 }
0x1b9c   :  { %v4189_v32 = vpop.f32.mrf.mxu0 }
0x1b9e   :  { %v7931_v46 = vpop.f32.mrf.mxu0 }
0x1b9f   :  { %v10130_v46 = vpop.permute.xlu1 %4367 }
0x1ba0   :  { %5325 = vperm.xlu1 %8290, %v9640_v43  }
0x1bf7   :  { %v4038_v4 = vpop.f32.mrf.mxu1 }
0x1bf8   :  { %v4160_v55 = vadd.f32 %v4159_v59, %v4038_v4 }
0x1bf9   :  { %v7890_v31 = vpop.f32.mrf.mxu1 }
0x1bfa   :  { %v4200_v41 = vadd.f32 %v10100_v54, %v4160_v55 }
0x1bfb   :  { %v4043_v42 = vpop.f32.mrf.mxu1 }
0x1bfc   :  { %8435 = vtanh.f32 %v4200_v41  ;;  %v4165_v56 = vadd.f32 %v4164_v3, %v4043_v42 }
0x1bfd   :  { %v7893_v2 = vpop.f32.mrf.mxu1 }
0x1bfe   :  { %v4201_v18 = vadd.f32 %v10100_v54, %v4165_v56  ;;  %v4393_v56 = vpop.permute.xlu0 %4392 }
0x1bff   :  { %v4048_v19 = vpop.f32.mrf.mxu1 }
0x1c00   :  { %8437 = vtanh.f32 %v4201_v18  ;;  %v4170_v39 = vadd.f32 %v4169_v60, %v4048_v19 }
0x1c01   :  { %v7896_v43 = vpop.f32.mrf.mxu1 }
0x1c02   :  { %v4202_v5 = vadd.f32 %v10100_v54, %v4170_v39  ;;  %v4383_v19 = vpop.permute.xlu0 %4382 }
0x1c03   :  { %v4053_v51 = vpop.f32.mrf.mxu1 }
0x1c04   :  { %8439 = vtanh.f32 %v4202_v5  ;;  %v4175_v57 = vadd.f32 %v4174_v35, %v4053_v51 }
0x1c05   :  { %v7899_v53 = vpop.f32.mrf.mxu1 }
0x1c06   :  { %v4203_v59 = vadd.f32 %v10100_v54, %v4175_v57  ;;  %v10148_v5 = vpop.permute.xlu0 %4372 }
0x1c07   :  { %v4058_v16 = vpop.f32.mrf.mxu1 }
0x1c08   :  { %8441 = vtanh.f32 %v4203_v59  ;;  %v4180_v3 = vadd.f32 %v4179_v7, %v4058_v16  ;;  %v62_v16 = vlaneseq }
0x1c09   :  { %v8436_v52 = vpop.eup %8435  ;;  %v7902_v62 = vpop.f32.mrf.mxu1 }
0x1c0a   :  { %v4204_v61 = vadd.f32 %v10100_v54, %v4180_v3  ;;  %7941 = vmatmul.mubr.msk.f32.vlgmr.msra.gmra.mxu1 %vm70_vm2, %v8436_v52  ;;  %v10150_v51 = vpop.permute.xlu0 %4362  ;;  %v10155_v3 = vshrl.u32 %v62_v16, 7 }
0x1c0b   :  { %v4063_v60 = vpop.f32.mrf.mxu1  ;;  %7943 = vmatprep.mubr.msk.f32.mxu1 %vm8592_vm0, %v8591_v0  ;;  %8012 = vmatpush3.msra.mxu1 %v9865_v26 }
0x1c0c   :  { %8443 = vtanh.f32 %v4204_v61  ;;  %v4185_v6 = vadd.f32 %v4184_v47, %v4063_v60  ;;  %8013 = vmatprep.subr.mxu1 %v8591_v0  ;;  %vm64_vm4 = vcmp.eq.s32.totalorder %v10155_v3, 7 }
0x1c0d   :  { %v8438_v35 = vpop.eup %8437  ;;  %v7905_v11 = vpop.f32.mrf.mxu1  ;;  %8014 = vmatpush3.msra.mxu1 %v9870_v28 }
0x1c0e   :  { %v4205_v7 = vadd.f32 %v10100_v54, %v4185_v6  ;;  %7944 = vmatmul.mubr.msk.f32.gmra.mxu1 %vm70_vm2, %v8438_v35  ;;  %8015 = vmatprep.subr.mxu1 %v8591_v0  ;;  %v10152_v57 = vpop.permute.xlu0 %1014 }
0x1c0f   :  { %v4068_v15 = vpop.f32.mrf.mxu1  ;;  %7946 = vmatprep.mubr.msk.f32.mxu1 %vm8592_vm0, %v8591_v0  ;;  %8016 = vmatpush3.msra.mxu1 %v9877_v21 }
0x1c10   :  { %8445 = vtanh.f32 %v4205_v7  ;;  %v4190_v26 = vadd.f32 %v4189_v32, %v4068_v15  ;;  %8017 = vmatprep.subr.mxu1 %v8591_v0  ;;  %v10133_v32 = vld [vmem:[#allocation2] ss:$0 sm:$0xff] }
0x1c11   :  { %v8440_v47 = vpop.eup %8439  ;;  %v7908_v28 = vpop.f32.mrf.mxu1  ;;  %8018 = vmatpush3.msra.mxu1 %v9884_v29 }
0x1c12   :  { %v4206_v50 = vadd.f32 %v10100_v54, %v4190_v26  ;;  %7947 = vmatmul.mubr.msk.f32.gmra.mxu1 %vm70_vm2, %v8440_v47  ;;  %8045 = vmatprep.subr.mxu1 %v8591_v0 }
0x1c13   :  { %7949 = vmatprep.mubr.msk.f32.mxu1 %vm8592_vm0, %v8591_v0 }
0x1c14   :  { %8447 = vtanh.f32 %v4206_v50 }
0x1c15   :  { %v8442_v21 = vpop.eup %8441 }
0x1c16   :  { %7950 = vmatmul.mubr.msk.f32.gmra.mxu1 %vm70_vm2, %v8442_v21 }
0x1c17   :  { %7952 = vmatprep.mubr.msk.f32.mxu1 %vm8592_vm0, %v8591_v0 }
0x1c18   :  { %v3837_v29 = vpop.xlane.xlu1 %3836 }
0x1c19   :  { %v8444_v4 = vpop.eup %8443  ;;  %v3845_v55 = vadd.f32 %v10133_v32, %v3837_v29 }
0x1c1a   :  { %7953 = vmatmul.mubr.msk.f32.gmra.mxu1 %vm70_vm2, %v8444_v4  ;;  %v10167_v4 = vld [vmem:[%s10866_s9] ss:$0 sm:$0xff] }
0x1c1b   :  { %v3846_v31 = vmax.f32 %v3845_v55, 0.1  ;;  %7955 = vmatprep.mubr.msk.f32.mxu1 %vm8592_vm0, %v8591_v0 }
0x1c1d   :  { %v8446_v41 = vpop.eup %8445  ;;  %8449 = vlog2.f32 %v3846_v31 }
0x1c1e   :  { %7956 = vmatmul.mubr.msk.f32.gmra.mxu1 %vm70_vm2, %v8446_v41 }
0x1c1f   :  { %7958 = vmatprep.mubr.msk.f32.mxu1 %vm8592_vm0, %v8591_v0 }
0x1c21   :  { %v8448_v42 = vpop.eup %8447 }
0x1c22   :  { %7959 = vmatmul.mubr.msk.f32.gmra.mxu1 %vm70_vm2, %v8448_v42 }
0x1c23   :  { %8019 = vmatprep.mubr.msk.f32.mxu1 %vm8592_vm0, %v8591_v0 }
0x1c2a   :  { %v8450_v2 = vpop.eup %8449 }
0x1c2b   :  { %v3848_v18 = vmul.f32 0.6931472, %v8450_v2 }
0x1c2d   :  { %v3849_v39 = vmul.f32 %v9988_v37, %v3848_v18 }
0x1c2f   :  { %v3850_v43 = vmul.f32 1.442695, %v3849_v39 }
0x1c31   :  { %8451 = vpow2.f32 %v3850_v43 }
0x1c3e   :  { %v8452_v53 = vpop.eup %8451 }
0x1c3f   :  { %v3852_v59 = vadd.f32 %v8452_v53, %v10152_v57 }
0x1c41   :  { %8453 = vrcp.f32 %v3852_v59 }
0x1c4e   :  { %v8454_v52 = vpop.eup %8453 }
0x1c4f   :  { %v3854_v62 = vmul.f32 %v8454_v52, %v8452_v53 }
0x1c51   :  { %v3855_v61 = vmul.f32 %v3854_v62, %v3845_v55 }
0x1c53   :  { %v3856_v60 = vsel %vm64_vm4, %v3855_v61, %v3845_v55 }
0x1c54   :  { %4557 = vperm.xlu0 %8289, %v3856_v60   ;;  %6837 = vst.msk [vmem:[%s10877_s18 + $0x18] sm:$0xff] %vm1022_vm5, %v3856_v60 }
0x1cca   :  { %v4312_v6 = vpop.f32.mrf.mxu1 }
0x1ccb   :  { %v4313_v59 = vadd.f32 %v10167_v4, %v4312_v6 }
0x1ccc   :  { %v7942_v35 = vpop.f32.mrf.mxu1 }
0x1cce   :  { %v4317_v11 = vpop.f32.mrf.mxu1 }
0x1ccf   :  { %v4318_v53 = vadd.f32 %v10167_v4, %v4317_v11 }
0x1cd0   :  { %v7945_v7 = vpop.f32.mrf.mxu1 }
0x1cd2   :  { %v4322_v15 = vpop.f32.mrf.mxu1 }
0x1cd3   :  { %v4323_v43 = vadd.f32 %v10167_v4, %v4322_v15 }
0x1cd4   :  { %v7948_v26 = vpop.f32.mrf.mxu1 }
0x1cd6   :  { %v4327_v47 = vpop.f32.mrf.mxu1 }
0x1cd7   :  { %v4328_v39 = vadd.f32 %v10167_v4, %v4327_v47  ;;  %v10221_v47 = vld [vmem:[%s10868_s10] sm:$0xff] }
0x1cd8   :  { %v7951_v28 = vpop.f32.mrf.mxu1 }
0x1cda   :  { %v4332_v50 = vpop.f32.mrf.mxu1 }
0x1cdb   :  { %v4333_v42 = vadd.f32 %v10167_v4, %v4332_v50 }
0x1cdc   :  { %v7954_v21 = vpop.f32.mrf.mxu1 }
0x1cde   :  { %v4337_v29 = vpop.f32.mrf.mxu1 }
0x1cdf   :  { %v4338_v55 = vadd.f32 %v10167_v4, %v4337_v29 }
0x1ce0   :  { %v7957_v31 = vpop.f32.mrf.mxu1 }
0x1ce1   :  { %8455 = vtanh.f32 %v4338_v55  ;;  %v4558_v31 = vpop.permute.xlu0 %4557 }
0x1ce2   :  { %v4342_v41 = vpop.f32.mrf.mxu1 }
0x1ce3   :  { %v4343_v2 = vadd.f32 %v10167_v4, %v4342_v41  ;;  %v4566_v41 = vmul.f32 %v9857_v17, %v4558_v31  ;;  %v10234_v17 = vld [vmem:[%s10870_s12 + $0x18] sm:$0xff] }
0x1ce4   :  { %v7960_v18 = vpop.f32.mrf.mxu1 }
0x1ce5   :  { %8457 = vtanh.f32 %v4343_v2 }
0x1ce6   :  { %8459 = vtanh.f32 %v4333_v42 }
0x1ce7   :  { %8461 = vtanh.f32 %v4328_v39 }
0x1ce8   :  { %8463 = vtanh.f32 %v4323_v43 }
0x1ce9   :  { %8465 = vtanh.f32 %v4318_v53 }
0x1cea   :  { %8467 = vtanh.f32 %v4313_v59 }
0x1cee   :  { %v8456_v16 = vpop.eup %8455 }
0x1cef   :  { %v4400_v60 = vmul.f32 %v8456_v16, %v10106_v13 }
0x1cf2   :  { %v8458_v52 = vpop.eup %8457 }
0x1cf3   :  { %v4401_v62 = vmul.f32 %v8458_v52, %v4393_v56  ;;  %v8460_v61 = vpop.eup %8459 }
0x1cf4   :  { %v8462_v35 = vpop.eup %8461  ;;  %v4399_v7 = vmul.f32 %v8460_v61, %v4383_v19 }
0x1cf5   :  { %7962 = vmatpush3.msra.mxu0 %v4401_v62  ;;  %v8464_v15 = vpop.eup %8463  ;;  %v4398_v6 = vmul.f32 %v8462_v35, %v10115_v45  ;;  %v10189_v45 = vld [vmem:[%s10867_s5] sm:$0xff]  ;;  %v10239_v35 = vld [vmem:[%s10870_s12 + $0x10] sm:$0xff] }
0x1cf6   :  { %7963 = vmatprep.subr.mxu0 %v8591_v0  ;;  %v8466_v11 = vpop.eup %8465  ;;  %v4397_v56 = vmul.f32 %v8464_v15, %v10148_v5  ;;  %v10195_v5 = vld [vmem:[%s10868_s10 + $0x18] sm:$0xff]  ;;  %v10253_v15 = vld [vmem:[%s10870_s12] sm:$0xff] }
0x1cf7   :  { %7964 = vmatpush3.msra.mxu0 %v4400_v60  ;;  %v8468_v26 = vpop.eup %8467  ;;  %v4396_v13 = vmul.f32 %v8466_v11, %v10130_v46  ;;  %v10203_v46 = vld [vmem:[%s10868_s10 + $0x10] sm:$0xff] }
0x1cf8   :  { %7965 = vmatprep.subr.mxu0 %v8591_v0  ;;  %v4395_v19 = vmul.f32 %v8468_v26, %v10150_v51  ;;  %v10214_v51 = vld [vmem:[%s10868_s10 + $0x8] sm:$0xff] }
0x1cf9   :  { %7966 = vmatpush3.msra.mxu0 %v4399_v7  ;;  %v10246_v7 = vld [vmem:[%s10870_s12 + $0x8] sm:$0xff] }
0x1cfa   :  { %7967 = vmatprep.subr.mxu0 %v8591_v0 }
0x1cfb   :  { %7968 = vmatpush3.msra.mxu0 %v4398_v6 }
0x1cfc   :  { %7969 = vmatprep.subr.mxu0 %v8591_v0 }
0x1cfd   :  { %7970 = vmatpush3.msra.mxu0 %v4397_v56 }
0x1cfe   :  { %7971 = vmatprep.subr.mxu0 %v8591_v0 }
0x1cff   :  { %7972 = vmatpush3.msra.mxu0 %v4396_v13 }
0x1d00   :  { %7973 = vmatprep.subr.mxu0 %v8591_v0 }
0x1d01   :  { %7974 = vmatpush3.msra.mxu0 %v4395_v19 }
0x1d02   :  { %7976 = vmatmul.mubr.msk.f32.vlgmr.msra.gmra.mxu0 %vm615_vm3, %v10189_v45  ;;  %7978 = vmatprep.subr.mxu0 %v8591_v0 }
0x1d03   :  { %7979 = vmatpush3.msra.mxu0 %v10195_v5  ;;  %7986 = vmatprep.mubr.msk.f32.mxu0 %vm8592_vm0, %v8591_v0 }
0x1d04   :  { %7980 = vmatprep.subr.mxu0 %v8591_v0 }
0x1d05   :  { %7981 = vmatpush3.msra.mxu0 %v10203_v46 }
0x1d06   :  { %7982 = vmatprep.subr.mxu0 %v8591_v0 }
0x1d07   :  { %7983 = vmatpush3.msra.mxu0 %v10214_v51 }
0x1d08   :  { %7984 = vmatprep.subr.mxu0 %v8591_v0 }
0x1d09   :  { %7985 = vmatpush3.msra.mxu0 %v10221_v47 }
0x1d0a   :  { %7989 = vmatprep.subr.mxu0 %v8591_v0 }
0x1dc2   :  { %v4472_v28 = vpop.f32.mrf.mxu0 }
0x1dc3   :  { %v4476_v50 = vmul.f32 0.125, %v4472_v28  ;;  %v10268_v28 = vld [vmem:[%s10871_s14 + $0x18] sm:$0xff] }
0x1dc4   :  { %v7977_v21 = vpop.f32.mrf.mxu0 }
0x1dc5   :  { %7987 = vmatmul.mubr.msk.f32.vlgmr.msra.gmra.mxu0 %vm70_vm2, %v4476_v50  ;;  %v10288_v21 = vld [vmem:[%s10871_s14 + $0x8] sm:$0xff] }
0x1dc6   :  { %7997 = vmatprep.mubr.msk.f32.mxu0 %vm8592_vm0, %v8591_v0  ;;  %7990 = vmatpush3.msra.mxu0 %v10234_v17 }
0x1dc7   :  { %7991 = vmatprep.subr.mxu0 %v8591_v0 }
0x1dc8   :  { %7992 = vmatpush3.msra.mxu0 %v10239_v35 }
0x1dc9   :  { %7993 = vmatprep.subr.mxu0 %v8591_v0 }
0x1dca   :  { %7994 = vmatpush3.msra.mxu0 %v10246_v7 }
0x1dcb   :  { %7995 = vmatprep.subr.mxu0 %v8591_v0 }
0x1dcc   :  { %7996 = vmatpush3.msra.mxu0 %v10253_v15 }
0x1dcd   :  { %8000 = vmatprep.subr.mxu0 %v8591_v0 }
0x1e85   :  { %v4550_v29 = vpop.f32.mrf.mxu0 }
0x1e86   :  { %4575 = vrot.lane.b32.xlu0 %v4550_v29, %s8595_s21  ;;  %v4567_v42 = vadd.f32 %v4566_v41, %v4550_v29  ;;  %v10295_v29 = vld [vmem:[%s10871_s14] sm:$0xff] }
0x1e87   :  { %v7988_v55 = vpop.f32.mrf.mxu0 }
0x1e88   :  { %v6865_v2 = vmul.f32 -1.442695, %v4567_v42  ;;  %v10302_v55 = vld [vmem:[%s10872_s13] ss:$0 sm:$0xff] }
0x1e8a   :  { %8469 = vpow2.f32 %v6865_v2 }
0x1e97   :  { %v8470_v18 = vpop.eup %8469 }
0x1e98   :  { %v4571_v39 = vadd.f32 1.0, %v8470_v18 }
0x1e9a   :  { %8471 = vrcp.f32 %v4571_v39  ;;  %v10309_v39 = vld [vmem:[%s10863_s2 + $0x30] sm:$0xff] }
0x1ea7   :  { %v8472_v43 = vpop.eup %8471 }
0x1ea8   :  { %v4590_v11 = vsub.f32 1.0, %v8472_v43  ;;  %v4596_v26 = vmul.f32 %v8472_v43, %v9891_v25  ;;  %v10281_v25 = vld [vmem:[%s10871_s14 + $0x10] sm:$0xff] }
0x1ef8   :  { %v4576_v53 = vpop.permute.xlu0 %4575 }
0x1ef9   :  { %v4578_v59 = vmul.f32 %v8472_v43, %v4576_v53  ;;  %v10321_v53 = vld [vmem:[%s10863_s2 + $0x28] sm:$0xff] }
0x1efb   :  { %4580 = vrot.lane.b32.xlu0 %v4578_v59, %s8595_s21 }
0x1f6d   :  { %v4581_v16 = vpop.permute.xlu0 %4580 }
0x1f6e   :  { %v4583_v52 = vadd.f32 %v4581_v16, %v4566_v41 }
0x1f70   :  { %v6866_v62 = vmul.f32 -1.442695, %v4583_v52 }
0x1f72   :  { %8473 = vpow2.f32 %v6866_v62 }
0x1f7f   :  { %v8474_v61 = vpop.eup %8473 }
0x1f80   :  { %v4587_v60 = vadd.f32 1.0, %v8474_v61 }
0x1f82   :  { %8475 = vrcp.f32 %v4587_v60 }
0x1f8f   :  { %v8476_v6 = vpop.eup %8475 }
0x1f90   :  { %4592 = vrot.lane.b32.xlu0 %v8476_v6, %s8593_s24 }
0x2002   :  { %v4593_v56 = vpop.permute.xlu0 %4592 }
0x2003   :  { %v4595_v13 = vmul.f32 %v4593_v56, %v4590_v11 }
0x2005   :  { %v10261_v19 = vadd.f32 %v4596_v26, %v4595_v13 }
0x2007   :  { %4610 = vrot.lane.b32.xlu0 %v10261_v19, %s8593_s24 }
0x2079   :  { %v4611_v50 = vpop.permute.xlu0 %4610 }
0x207a   :  { %7998 = vmatmul.mubr.msk.f32.vlgmr.msra.gmra.mxu0 %vm70_vm2, %v4611_v50  ;;  %8020 = vmatmul.mubr.msk.f32.vlgmr.msra.gmra.mxu1 %vm70_vm2, %v4611_v50 }
0x207b   :  { %8001 = vmatpush3.msra.mxu0 %v10268_v28  ;;  %8008 = vmatprep.mubr.msk.f32.mxu0 %vm8592_vm0, %v8591_v0 }
0x207c   :  { %8002 = vmatprep.subr.mxu0 %v8591_v0  ;;  %8047 = vmatprep.mubr.msk.f32.mxu1 %vm8592_vm0, %v8591_v0 }
0x207d   :  { %8003 = vmatpush3.msra.mxu0 %v10281_v25 }
0x207e   :  { %8004 = vmatprep.subr.mxu0 %v8591_v0 }
0x207f   :  { %8005 = vmatpush3.msra.mxu0 %v10288_v21 }
0x2080   :  { %8006 = vmatprep.subr.mxu0 %v8591_v0 }
0x2081   :  { %8007 = vmatpush3.msra.mxu0 %v10295_v29 }
0x2082   :  { %8022 = vmatprep.subr.mxu0 %v8591_v0 }
0x213a   :  { %v4680_v31 = vpop.f32.mrf.mxu0  ;;  %v4872_v41 = vpop.f32.mrf.mxu1 }
0x213b   :  { %v4681_v42 = vadd.f32 %v10302_v55, %v4680_v31  ;;  %4891 = vrot.lane.b32.xlu0 %v4872_v41, %s8593_s24  ;;  %8046 = vmatpush3.msra.mxu1 %v4872_v41 }
0x213c   :  { %v7999_v2 = vpop.f32.mrf.mxu0  ;;  %v8021_v18 = vpop.f32.mrf.mxu1  ;;  %8048 = vmatmul.mubr.msk.f32.vlgmr.msra.gmra.mxu1 %vm162_vm1, %v9916_v23  ;;  %8097 = vmatprep.subr.mxu1 %v8591_v0  ;;  %v10333_v23 = vld [vmem:[%s10863_s2 + $0x18] sm:$0xff] }
0x213d   :  { %v4684_v43 = vmax.f32 %v4681_v42, 0.0  ;;  %8050 = vmatprep.mubr.msk.f32.mxu1 %vm8592_vm0, %v8591_v0 }
0x213f   :  { %5335 = vperm.xlu0 %8289, %v10309_v39   ;;  %8009 = vmatmul.mubr.msk.f32.vlgmr.msra.gmra.mxu0 %vm70_vm2, %v4684_v43 }
0x2140   :  { %8024 = vmatprep.mubr.msk.f32.mxu0 %vm8592_vm0, %v8591_v0  ;;  %8051 = vmatmul.mubr.msk.f32.gmra.mxu1 %vm162_vm1, %v9928_v20  ;;  %v10343_v20 = vld [vmem:[%s10863_s2 + $0x10] sm:$0xff] }
0x2141   :  { %8053 = vmatprep.mubr.msk.f32.mxu1 %vm8592_vm0, %v8591_v0 }
0x2143   :  { %5330 = vperm.xlu0 %8289, %v10321_v53  }
0x2144   :  { %8054 = vmatmul.mubr.msk.f32.gmra.mxu1 %vm162_vm1, %v9941_v22  ;;  %v10353_v22 = vld [vmem:[%s10863_s2 + $0x8] sm:$0xff] }
0x2145   :  { %8056 = vmatprep.mubr.msk.f32.mxu1 %vm8592_vm0, %v8591_v0 }
0x2147   :  { %5320 = vperm.xlu0 %8289, %v10333_v23  }
0x2148   :  { %8057 = vmatmul.mubr.msk.f32.gmra.mxu1 %vm162_vm1, %v9951_v44  ;;  %v10363_v44 = vld [vmem:[%s10863_s2] sm:$0xff] }
0x2149   :  { %8059 = vmatprep.mubr.msk.f32.mxu1 %vm8592_vm0, %v8591_v0 }
0x214b   :  { %5315 = vperm.xlu0 %8289, %v10343_v20  }
0x214c   :  { %8060 = vmatmul.mubr.msk.f32.gmra.mxu1 %vm162_vm1, %v9961_v48 }
0x214d   :  { %8062 = vmatprep.mubr.msk.f32.mxu1 %vm8592_vm0, %v8591_v0 }
0x214f   :  { %5310 = vperm.xlu0 %8289, %v10353_v22  }
0x2150   :  { %8063 = vmatmul.mubr.msk.f32.gmra.mxu1 %vm162_vm1, %v9970_v49 }
0x2151   :  { %8065 = vmatprep.mubr.msk.f32.mxu1 %vm8592_vm0, %v8591_v0 }
0x2153   :  { %5305 = vperm.xlu0 %8289, %v10363_v44  }
0x2154   :  { %8066 = vmatmul.mubr.msk.f32.gmra.mxu1 %vm162_vm1, %v9979_v33  ;;  %v10414_v33 = vld [vmem:[%s10874_s15] ss:$0 sm:$0xff] }
0x2155   :  { %8111 = vmatprep.mubr.msk.f32.mxu1 %vm8592_vm0, %v8591_v0 }
0x21ad   :  { %v4892_v48 = vpop.permute.xlu0 %4891 }
0x21ae   :  { %8023 = vmatpush3.msra.mxu0 %v4892_v48 }
0x21af   :  { %8025 = vmatmul.mubr.msk.f32.vlgmr.msra.gmra.mxu0 %vm162_vm1, %v9994_v34  ;;  %8068 = vmatprep.subr.mxu0 %v8591_v0 }
0x21b0   :  { %8027 = vmatprep.mubr.msk.f32.mxu0 %vm8592_vm0, %v8591_v0  ;;  %8069 = vmatpush3.msra.mxu0 %v10058_v14 }
0x21b1   :  { %8070 = vmatprep.subr.mxu0 %v8591_v0 }
0x21b2   :  { %8071 = vmatpush3.msra.mxu0 %v10065_v36 }
0x21b3   :  { %8028 = vmatmul.mubr.msk.f32.gmra.mxu0 %vm162_vm1, %v10004_v40  ;;  %8072 = vmatprep.subr.mxu0 %v8591_v0 }
0x21b4   :  { %8030 = vmatprep.mubr.msk.f32.mxu0 %vm8592_vm0, %v8591_v0  ;;  %8073 = vmatpush3.msra.mxu0 %v10072_v38 }
0x21b5   :  { %8074 = vmatprep.subr.mxu0 %v8591_v0 }
0x21b6   :  { %8075 = vmatpush3.msra.mxu0 %v10082_v58 }
0x21b7   :  { %8031 = vmatmul.mubr.msk.f32.gmra.mxu0 %vm162_vm1, %v10013_v63  ;;  %8147 = vmatprep.subr.mxu0 %v8591_v0 }
0x21b8   :  { %8033 = vmatprep.mubr.msk.f32.mxu0 %vm8592_vm0, %v8591_v0 }
0x21bb   :  { %8034 = vmatmul.mubr.msk.f32.gmra.mxu0 %vm162_vm1, %v10022_v10 }
0x21bc   :  { %8036 = vmatprep.mubr.msk.f32.mxu0 %vm8592_vm0, %v8591_v0 }
0x21bf   :  { %8037 = vmatmul.mubr.msk.f32.gmra.mxu0 %vm162_vm1, %v10031_v24 }
0x21c0   :  { %8039 = vmatprep.mubr.msk.f32.mxu0 %vm8592_vm0, %v8591_v0 }
0x21c3   :  { %8040 = vmatmul.mubr.msk.f32.gmra.mxu0 %vm162_vm1, %v10040_v12 }
0x21c4   :  { %8042 = vmatprep.mubr.msk.f32.mxu0 %vm8592_vm0, %v8591_v0 }
0x21c7   :  { %8043 = vmatmul.mubr.msk.f32.gmra.mxu0 %vm162_vm1, %v10049_v1 }
0x21c8   :  { %8076 = vmatprep.mubr.msk.f32.mxu0 %vm8592_vm0, %v8591_v0 }
0x21fc   :  { %v5102_v49 = vpop.f32.mrf.mxu1 }
0x21fe   :  { %v8049_v34 = vpop.f32.mrf.mxu1 }
0x21ff   :  { %v4765_v40 = vpop.f32.mrf.mxu0 }
0x2200   :  { %v4766_v63 = vadd.f32 %v10414_v33, %v4765_v40  ;;  %v5107_v10 = vpop.f32.mrf.mxu1 }
0x2201   :  { %v8010_v24 = vpop.f32.mrf.mxu0 }
0x2202   :  { %v4769_v12 = vmax.f32 %v4766_v63, 0.0  ;;  %v8052_v14 = vpop.f32.mrf.mxu1 }
0x2204   :  { %v4777_v36 = vmul.f32 %v10087_v30, %v4769_v12  ;;  %v5112_v1 = vpop.f32.mrf.mxu1 }
0x2206   :  { %v4778_v38 = vsel %vm70_vm2, %v4777_v36, 0.0  ;;  %v8055_v58 = vpop.f32.mrf.mxu1 }
0x2207   :  { %4779 = vadd.xlane.f32.xlu1 %v4778_v38 }
0x2208   :  { %v5117_v59 = vpop.f32.mrf.mxu1 }
0x220a   :  { %v8058_v16 = vpop.f32.mrf.mxu1 }
0x220c   :  { %v5122_v52 = vpop.f32.mrf.mxu1 }
0x220e   :  { %v8061_v62 = vpop.f32.mrf.mxu1 }
0x2210   :  { %v5127_v61 = vpop.f32.mrf.mxu1 }
0x2212   :  { %v8064_v60 = vpop.f32.mrf.mxu1 }
0x2214   :  { %v5132_v6 = vpop.f32.mrf.mxu1 }
0x2216   :  { %v8067_v11 = vpop.f32.mrf.mxu1 }
0x2218   :  { %6263 = vperm.xlu1 %8290, %v10333_v23  }
0x226f   :  { %v4981_v56 = vpop.f32.mrf.mxu0 }
0x2270   :  { %v5103_v26 = vadd.f32 %v5102_v49, %v4981_v56 }
0x2271   :  { %v8026_v13 = vpop.f32.mrf.mxu0 }
0x2272   :  { %v5143_v30 = vadd.f32 %v10100_v54, %v5103_v26 }
0x2273   :  { %v4986_v50 = vpop.f32.mrf.mxu0 }
0x2274   :  { %8477 = vtanh.f32 %v5143_v30  ;;  %v5108_v31 = vadd.f32 %v5107_v10, %v4986_v50 }
0x2275   :  { %v8029_v41 = vpop.f32.mrf.mxu0 }
0x2276   :  { %v5144_v42 = vadd.f32 %v10100_v54, %v5108_v31 }
0x2277   :  { %v4991_v2 = vpop.f32.mrf.mxu0 }
0x2278   :  { %8479 = vtanh.f32 %v5144_v42  ;;  %v5113_v18 = vadd.f32 %v5112_v1, %v4991_v2 }
0x2279   :  { %v8032_v43 = vpop.f32.mrf.mxu0 }
0x227a   :  { %v5145_v48 = vadd.f32 %v10100_v54, %v5113_v18 }
0x227b   :  { %v4996_v34 = vpop.f32.mrf.mxu0 }
0x227c   :  { %8481 = vtanh.f32 %v5145_v48  ;;  %v5118_v23 = vadd.f32 %v5117_v59, %v4996_v34 }
0x227d   :  { %v8035_v40 = vpop.f32.mrf.mxu0 }
0x227e   :  { %v5146_v49 = vadd.f32 %v10100_v54, %v5118_v23 }
0x227f   :  { %v5001_v63 = vpop.f32.mrf.mxu0 }
0x2280   :  { %8483 = vtanh.f32 %v5146_v49  ;;  %v5123_v24 = vadd.f32 %v5122_v52, %v5001_v63 }
0x2281   :  { %v8478_v12 = vpop.eup %8477  ;;  %v8038_v10 = vpop.f32.mrf.mxu0 }
0x2282   :  { %v5147_v14 = vadd.f32 %v10100_v54, %v5123_v24  ;;  %8077 = vmatmul.mubr.msk.f32.vlgmr.msra.gmra.mxu0 %vm70_vm2, %v8478_v12 }
0x2283   :  { %v5006_v36 = vpop.f32.mrf.mxu0  ;;  %8079 = vmatprep.mubr.msk.f32.mxu0 %vm8592_vm0, %v8591_v0 }
0x2284   :  { %8485 = vtanh.f32 %v5147_v14  ;;  %v5128_v1 = vadd.f32 %v5127_v61, %v5006_v36  ;;  %v10436_v61 = vpop.permute.xlu1 %5325 }
0x2285   :  { %v8480_v38 = vpop.eup %8479  ;;  %v8041_v58 = vpop.f32.mrf.mxu0 }
0x2286   :  { %v5148_v59 = vadd.f32 %v10100_v54, %v5128_v1  ;;  %8080 = vmatmul.mubr.msk.f32.gmra.mxu0 %vm70_vm2, %v8480_v38  ;;  %v5336_v58 = vpop.permute.xlu0 %5335 }
0x2287   :  { %v5011_v16 = vpop.f32.mrf.mxu0  ;;  %8082 = vmatprep.mubr.msk.f32.mxu0 %vm8592_vm0, %v8591_v0 }
0x2288   :  { %8487 = vtanh.f32 %v5148_v59  ;;  %v5133_v52 = vadd.f32 %v5132_v6, %v5011_v16 }
0x2289   :  { %v8482_v62 = vpop.eup %8481  ;;  %v8044_v60 = vpop.f32.mrf.mxu0 }
0x228a   :  { %v5149_v11 = vadd.f32 %v10100_v54, %v5133_v52  ;;  %8083 = vmatmul.mubr.msk.f32.gmra.mxu0 %vm70_vm2, %v8482_v62 }
0x228b   :  { %8085 = vmatprep.mubr.msk.f32.mxu0 %vm8592_vm0, %v8591_v0 }
0x228c   :  { %8489 = vtanh.f32 %v5149_v11 }
0x228d   :  { %v8484_v56 = vpop.eup %8483 }
0x228e   :  { %8086 = vmatmul.mubr.msk.f32.gmra.mxu0 %vm70_vm2, %v8484_v56 }
0x228f   :  { %8088 = vmatprep.mubr.msk.f32.mxu0 %vm8592_vm0, %v8591_v0 }
0x2290   :  { %v4780_v26 = vpop.xlane.xlu1 %4779 }
0x2291   :  { %v8486_v6 = vpop.eup %8485  ;;  %v4788_v13 = vadd.f32 %v10133_v32, %v4780_v26  ;;  %v5331_v26 = vpop.permute.xlu0 %5330 }
0x2292   :  { %8089 = vmatmul.mubr.msk.f32.gmra.mxu0 %vm70_vm2, %v8486_v6 }
0x2293   :  { %v4789_v54 = vmax.f32 %v4788_v13, 0.1  ;;  %8091 = vmatprep.mubr.msk.f32.mxu0 %vm8592_vm0, %v8591_v0 }
0x2295   :  { %v8488_v30 = vpop.eup %8487  ;;  %8491 = vlog2.f32 %v4789_v54 }
0x2296   :  { %8092 = vmatmul.mubr.msk.f32.gmra.mxu0 %vm70_vm2, %v8488_v30  ;;  %v5321_v30 = vpop.permute.xlu0 %5320 }
0x2297   :  { %8094 = vmatprep.mubr.msk.f32.mxu0 %vm8592_vm0, %v8591_v0 }
0x2299   :  { %v8490_v50 = vpop.eup %8489 }
0x229a   :  { %8095 = vmatmul.mubr.msk.f32.gmra.mxu0 %vm70_vm2, %v8490_v50 }
0x229b   :  { %8155 = vmatprep.mubr.msk.f32.mxu0 %vm8592_vm0, %v8591_v0 }
0x22a2   :  { %v8492_v32 = vpop.eup %8491 }
0x22a3   :  { %v4791_v31 = vmul.f32 0.6931472, %v8492_v32 }
0x22a5   :  { %v4792_v41 = vmul.f32 %v9988_v37, %v4791_v31  ;;  %v5316_v31 = vpop.permute.xlu0 %5315 }
0x22a7   :  { %v4793_v42 = vmul.f32 1.442695, %v4792_v41 }
0x22a9   :  { %8493 = vpow2.f32 %v4793_v42 }
0x22b6   :  { %v8494_v2 = vpop.eup %8493 }
0x22b7   :  { %v4795_v18 = vadd.f32 %v8494_v2, %v10152_v57 }
0x22b9   :  { %8495 = vrcp.f32 %v4795_v18 }
0x22c6   :  { %v8496_v43 = vpop.eup %8495 }
0x22c7   :  { %v4797_v48 = vmul.f32 %v8496_v43, %v8494_v2 }
0x22c9   :  { %v4798_v34 = vmul.f32 %v4797_v48, %v4788_v13 }
0x22cb   :  { %v4799_v23 = vsel %vm64_vm4, %v4798_v34, %v4788_v13  ;;  %v5311_v34 = vpop.permute.xlu0 %5310 }
0x22cc   :  { %5500 = vperm.xlu0 %8289, %v4799_v23   ;;  %6873 = vst.msk [vmem:[%s10877_s18 + $0x20] sm:$0xff] %vm1022_vm5, %v4799_v23 }
0x2342   :  { %v5255_v40 = vpop.f32.mrf.mxu0 }
0x2343   :  { %v5256_v54 = vadd.f32 %v10167_v4, %v5255_v40 }
0x2344   :  { %v8078_v37 = vpop.f32.mrf.mxu0 }
0x2346   :  { %v5260_v49 = vpop.f32.mrf.mxu0 }
0x2347   :  { %v5261_v13 = vadd.f32 %v10167_v4, %v5260_v49 }
0x2348   :  { %v8081_v63 = vpop.f32.mrf.mxu0 }
0x2349   :  { %v5306_v63 = vpop.permute.xlu0 %5305 }
0x234a   :  { %v5265_v24 = vpop.f32.mrf.mxu0 }
0x234b   :  { %v5266_v6 = vadd.f32 %v10167_v4, %v5265_v24 }
0x234c   :  { %v8084_v12 = vpop.f32.mrf.mxu0 }
0x234e   :  { %v5270_v10 = vpop.f32.mrf.mxu0 }
0x234f   :  { %v5271_v56 = vadd.f32 %v10167_v4, %v5270_v10 }
0x2350   :  { %v8087_v14 = vpop.f32.mrf.mxu0 }
0x2352   :  { %v5275_v36 = vpop.f32.mrf.mxu0 }
0x2353   :  { %v5276_v62 = vadd.f32 %v10167_v4, %v5275_v36 }
0x2354   :  { %v8090_v1 = vpop.f32.mrf.mxu0 }
0x2356   :  { %v5280_v38 = vpop.f32.mrf.mxu0 }
0x2357   :  { %v5281_v59 = vadd.f32 %v10167_v4, %v5280_v38 }
0x2358   :  { %v8093_v16 = vpop.f32.mrf.mxu0 }
0x2359   :  { %8497 = vtanh.f32 %v5281_v59 }
0x235a   :  { %v5285_v52 = vpop.f32.mrf.mxu0 }
0x235b   :  { %v5286_v60 = vadd.f32 %v10167_v4, %v5285_v52 }
0x235c   :  { %v8096_v11 = vpop.f32.mrf.mxu0 }
0x235d   :  { %8499 = vtanh.f32 %v5286_v60  ;;  %v5747_v60 = vld [vmem:[%s10884_s29 + $0x10] sm:$0xff]  ;;  %v5746_v11 = vld [vmem:[%s10884_s29 + $0x8] sm:$0xff] }
0x235e   :  { %8501 = vtanh.f32 %v5276_v62  ;;  %v5748_v62 = vld [vmem:[%s10884_s29 + $0x18] sm:$0xff] }
0x235f   :  { %8503 = vtanh.f32 %v5271_v56  ;;  %8148 = vmatpush3.msra.mxu0 %v5748_v62  ;;  %v5745_v56 = vld [vmem:[%s10884_s29] sm:$0xff] }
0x2360   :  { %8505 = vtanh.f32 %v5266_v6  ;;  %8149 = vmatprep.subr.mxu0 %v8591_v0 }
0x2361   :  { %8507 = vtanh.f32 %v5261_v13  ;;  %8150 = vmatpush3.msra.mxu0 %v5747_v60 }
0x2362   :  { %8509 = vtanh.f32 %v5256_v54  ;;  %8151 = vmatprep.subr.mxu0 %v8591_v0 }
0x2363   :  { %8152 = vmatpush3.msra.mxu0 %v5746_v11 }
0x2364   :  { %8153 = vmatprep.subr.mxu0 %v8591_v0 }
0x2365   :  { %8154 = vmatpush3.msra.mxu0 %v5745_v56 }
0x2366   :  { %v8498_v50 = vpop.eup %8497  ;;  %8181 = vmatprep.subr.mxu0 %v8591_v0 }
0x2367   :  { %v5343_v2 = vmul.f32 %v8498_v50, %v5331_v26 }
0x236a   :  { %v8500_v32 = vpop.eup %8499 }
0x236b   :  { %v5344_v41 = vmul.f32 %v8500_v32, %v5336_v58  ;;  %v8502_v42 = vpop.eup %8501 }
0x236c   :  { %v8504_v18 = vpop.eup %8503  ;;  %v5342_v43 = vmul.f32 %v8502_v42, %v10436_v61 }
0x236d   :  { %8098 = vmatpush3.msra.mxu1 %v5344_v41  ;;  %v8506_v48 = vpop.eup %8505  ;;  %v5341_v4 = vmul.f32 %v8504_v18, %v5321_v30  ;;  %v5824_v18 = vld [vmem:[%s10885_s23 + $0x28] sm:$0xff] }
0x236e   :  { %8099 = vmatprep.subr.mxu1 %v8591_v0  ;;  %v8508_v23 = vpop.eup %8507  ;;  %v5340_v40 = vmul.f32 %v8506_v48, %v5316_v31  ;;  %v5828_v48 = vld [vmem:[%s10886_s27 + $0x10] sm:$0xff] }
0x236f   :  { %8100 = vmatpush3.msra.mxu1 %v5343_v2  ;;  %v8510_v37 = vpop.eup %8509  ;;  %v5339_v49 = vmul.f32 %v8508_v23, %v5311_v34  ;;  %v6243_v2 = vld [vmem:[%s10863_s2 + $0x20] sm:$0xff]  ;;  %v5829_v34 = vld [vmem:[%s10886_s27 + $0x18] sm:$0xff]  ;;  %v5831_v23 = vld [vmem:[%s10886_s27 + $0x28] sm:$0xff] }
0x2370   :  { %8101 = vmatprep.subr.mxu1 %v8591_v0  ;;  %v5338_v61 = vmul.f32 %v8510_v37, %v5306_v63  ;;  %v6103_v37 = vld [vmem:[%s10862_s8 + $0x18] sm:$0xff]  ;;  %v6102_v63 = vld [vmem:[%s10862_s8 + $0x10] sm:$0xff] }
0x2371   :  { %8102 = vmatpush3.msra.mxu1 %v5342_v43 }
0x2372   :  { %8103 = vmatprep.subr.mxu1 %v8591_v0 }
0x2373   :  { %8104 = vmatpush3.msra.mxu1 %v5341_v4  ;;  %v5830_v4 = vld [vmem:[%s10886_s27 + $0x20] sm:$0xff] }
0x2374   :  { %8105 = vmatprep.subr.mxu1 %v8591_v0 }
0x2375   :  { %8106 = vmatpush3.msra.mxu1 %v5340_v40  ;;  %v5832_v40 = vld [vmem:[%s10886_s27 + $0x30] sm:$0xff] }
0x2376   :  { %8107 = vmatprep.subr.mxu1 %v8591_v0 }
0x2377   :  { %8108 = vmatpush3.msra.mxu1 %v5339_v49 }
0x2378   :  { %8109 = vmatprep.subr.mxu1 %v8591_v0 }
0x2379   :  { %8110 = vmatpush3.msra.mxu1 %v5338_v61  ;;  %v10650_v61 = vld [vmem:[%s10874_s15] ss:$0 sm:$0xff] }
0x237a   :  { %8112 = vmatmul.mubr.msk.f32.vlgmr.msra.gmra.mxu1 %vm615_vm3, %v10189_v45  ;;  %8114 = vmatprep.subr.mxu1 %v8591_v0 }
0x237b   :  { %8115 = vmatpush3.msra.mxu1 %v10195_v5  ;;  %8122 = vmatprep.mubr.msk.f32.mxu1 %vm8592_vm0, %v8591_v0 }
0x237c   :  { %8116 = vmatprep.subr.mxu1 %v8591_v0 }
0x237d   :  { %8117 = vmatpush3.msra.mxu1 %v10203_v46 }
0x237e   :  { %8118 = vmatprep.subr.mxu1 %v8591_v0 }
0x237f   :  { %8119 = vmatpush3.msra.mxu1 %v10214_v51 }
0x2380   :  { %8120 = vmatprep.subr.mxu1 %v8591_v0 }
0x2381   :  { %8121 = vmatpush3.msra.mxu1 %v10221_v47  ;;  %v10501_v47 = vld [vmem:[%s10869_s11] ss:$0 sm:$0xff] }
0x2382   :  { %8125 = vmatprep.subr.mxu1 %v8591_v0 }
0x243a   :  { %v5415_v45 = vpop.f32.mrf.mxu1 }
0x243b   :  { %v5419_v24 = vmul.f32 0.125, %v5415_v45  ;;  %v1933_v45 = vadd.f32 %v10650_v61, %v9462_v8 }
0x243c   :  { %v8113_v5 = vpop.f32.mrf.mxu1 }
0x243d   :  { %8123 = vmatmul.mubr.msk.f32.vlgmr.msra.gmra.mxu1 %vm70_vm2, %v5419_v24  ;;  %v6101_v5 = vld [vmem:[%s10862_s8 + $0x8] sm:$0xff]  ;;  %v1936_v8 = vmax.f32 %v1933_v45, 0.0 }
0x243e   :  { %8126 = vmatpush3.msra.mxu1 %v10234_v17  ;;  %8133 = vmatprep.mubr.msk.f32.mxu1 %vm8592_vm0, %v8591_v0  ;;  %v5501_v17 = vpop.permute.xlu0 %5500 }
0x243f   :  { %8127 = vmatprep.subr.mxu1 %v8591_v0 }
0x2440   :  { %8128 = vmatpush3.msra.mxu1 %v10239_v35  ;;  %v5509_v35 = vmul.f32 %v10501_v47, %v5501_v17 }
0x2441   :  { %8129 = vmatprep.subr.mxu1 %v8591_v0 }
0x2442   :  { %8130 = vmatpush3.msra.mxu1 %v10246_v7 }
0x2443   :  { %8131 = vmatprep.subr.mxu1 %v8591_v0 }
0x2444   :  { %8132 = vmatpush3.msra.mxu1 %v10253_v15 }
0x2445   :  { %8136 = vmatprep.subr.mxu1 %v8591_v0 }
0x24fd   :  { %v5493_v46 = vpop.f32.mrf.mxu1 }
0x24fe   :  { %5518 = vrot.lane.b32.xlu0 %v5493_v46, %s8595_s21  ;;  %v5510_v12 = vadd.f32 %v5509_v35, %v5493_v46 }
0x24ff   :  { %v8124_v51 = vpop.f32.mrf.mxu1 }
0x2500   :  { %v6901_v7 = vmul.f32 -1.442695, %v5510_v12 }
0x2502   :  { %8511 = vpow2.f32 %v6901_v7  ;;  %v8589_v7 = vld [vmem:[%s10874_s15] ss:$0 sm:$0xff] }
0x250f   :  { %v8512_v10 = vpop.eup %8511 }
0x2510   :  { %v5514_v14 = vadd.f32 1.0, %v8512_v10  ;;  %v2878_v10 = vadd.f32 %v8589_v7, %v9786_v27 }
0x2512   :  { %8513 = vrcp.f32 %v5514_v14 }
0x251f   :  { %v8514_v15 = vpop.eup %8513 }
0x2520   :  { %v5533_v6 = vsub.f32 1.0, %v8514_v15  ;;  %v5539_v54 = vmul.f32 %v8514_v15, %v10261_v19  ;;  %v5819_v19 = vld [vmem:[%s10885_s23] sm:$0xff] }
0x2570   :  { %v5519_v36 = vpop.permute.xlu0 %5518 }
0x2571   :  { %v5521_v1 = vmul.f32 %v8514_v15, %v5519_v36  ;;  %v10673_v36 = vld [vmem:[%s10875_s16] ss:$0 sm:$0xff] }
0x2573   :  { %5523 = vrot.lane.b32.xlu0 %v5521_v1, %s8595_s21 }
0x25e5   :  { %v5524_v38 = vpop.permute.xlu0 %5523 }
0x25e6   :  { %v5526_v58 = vadd.f32 %v5524_v38, %v5509_v35  ;;  %v6100_v35 = vld [vmem:[%s10862_s8] sm:$0xff] }
0x25e8   :  { %v6902_v59 = vmul.f32 -1.442695, %v5526_v58 }
0x25ea   :  { %8515 = vpow2.f32 %v6902_v59  ;;  %v2881_v59 = vmax.f32 %v2878_v10, 0.0 }
0x25f7   :  { %v8516_v16 = vpop.eup %8515 }
0x25f8   :  { %v5530_v52 = vadd.f32 1.0, %v8516_v16 }
0x25fa   :  { %8517 = vrcp.f32 %v5530_v52 }
0x2607   :  { %v8518_v26 = vpop.eup %8517 }
0x2608   :  { %5535 = vrot.lane.b32.xlu0 %v8518_v26, %s8593_s24 }
0x267a   :  { %v5536_v13 = vpop.permute.xlu0 %5535 }
0x267b   :  { %v5538_v30 = vmul.f32 %v5536_v13, %v5533_v6 }
0x267d   :  { %v10523_v50 = vadd.f32 %v5539_v54, %v5538_v30 }
0x267f   :  { %5553 = vrot.lane.b32.xlu0 %v10523_v50, %s8593_s24 }
0x26f1   :  { %v5554_v32 = vpop.permute.xlu0 %5553 }
0x26f2   :  { %8134 = vmatmul.mubr.msk.f32.vlgmr.msra.gmra.mxu1 %vm70_vm2, %v5554_v32  ;;  %8156 = vmatmul.mubr.msk.f32.vlgmr.msra.gmra.mxu0 %vm70_vm2, %v5554_v32 }
0x26f3   :  { %8137 = vmatpush3.msra.mxu1 %v10268_v28  ;;  %8144 = vmatprep.mubr.msk.f32.mxu1 %vm8592_vm0, %v8591_v0 }
0x26f4   :  { %8138 = vmatprep.subr.mxu1 %v8591_v0  ;;  %8183 = vmatprep.mubr.msk.f32.mxu0 %vm8592_vm0, %v8591_v0 }
0x26f5   :  { %8139 = vmatpush3.msra.mxu1 %v10281_v25 }
0x26f6   :  { %8140 = vmatprep.subr.mxu1 %v8591_v0 }
0x26f7   :  { %8141 = vmatpush3.msra.mxu1 %v10288_v21 }
0x26f8   :  { %8142 = vmatprep.subr.mxu1 %v8591_v0 }
0x26f9   :  { %8143 = vmatpush3.msra.mxu1 %v10295_v29  ;;  %v5820_v29 = vld [vmem:[%s10885_s23 + $0x8] sm:$0xff] }
0x26fa   :  { %8158 = vmatprep.subr.mxu1 %v8591_v0 }
0x27b2   :  { %v5623_v28 = vpop.f32.mrf.mxu1  ;;  %v5815_v31 = vpop.f32.mrf.mxu0 }
0x27b3   :  { %v5624_v41 = vadd.f32 %v10302_v55, %v5623_v28  ;;  %5834 = vrot.lane.b32.xlu0 %v5815_v31, %s8593_s24  ;;  %8182 = vmatpush3.msra.mxu0 %v5815_v31  ;;  %v5821_v55 = vld [vmem:[%s10885_s23 + $0x10] sm:$0xff]  ;;  %v6925_v31 = vld [vmem:[%s10865_s7] ss:$0 sm:$0xff] }
0x27b4   :  { %v8135_v25 = vpop.f32.mrf.mxu1  ;;  %v8157_v42 = vpop.f32.mrf.mxu0  ;;  %8184 = vmatmul.mubr.msk.f32.vlgmr.msra.gmra.mxu0 %vm162_vm1, %v5819_v19  ;;  %8233 = vmatprep.subr.mxu0 %v8591_v0 }
0x27b5   :  { %v5627_v21 = vmax.f32 %v5624_v41, 0.0  ;;  %8186 = vmatprep.mubr.msk.f32.mxu0 %vm8592_vm0, %v8591_v0 }
0x27b7   :  { %8145 = vmatmul.mubr.msk.f32.vlgmr.msra.gmra.mxu1 %vm70_vm2, %v5627_v21  ;;  %6278 = vperm.xlu0 %8289, %v10309_v39   ;;  %v5822_v39 = vld [vmem:[%s10885_s23 + $0x18] sm:$0xff] }
0x27b8   :  { %8160 = vmatprep.mubr.msk.f32.mxu1 %vm8592_vm0, %v8591_v0  ;;  %8187 = vmatmul.mubr.msk.f32.gmra.mxu0 %vm162_vm1, %v5820_v29 }
0x27b9   :  { %8189 = vmatprep.mubr.msk.f32.mxu0 %vm8592_vm0, %v8591_v0 }
0x27bb   :  { %6273 = vperm.xlu0 %8289, %v10321_v53   ;;  %v5823_v53 = vld [vmem:[%s10885_s23 + $0x20] sm:$0xff] }
0x27bc   :  { %8190 = vmatmul.mubr.msk.f32.gmra.mxu0 %vm162_vm1, %v5821_v55 }
0x27bd   :  { %8192 = vmatprep.mubr.msk.f32.mxu0 %vm8592_vm0, %v8591_v0 }
0x27bf   :  { %6268 = vperm.xlu0 %8289, %v6243_v2  }
0x27c0   :  { %8193 = vmatmul.mubr.msk.f32.gmra.mxu0 %vm162_vm1, %v5822_v39 }
0x27c1   :  { %8195 = vmatprep.mubr.msk.f32.mxu0 %vm8592_vm0, %v8591_v0 }
0x27c3   :  { %6258 = vperm.xlu0 %8289, %v10343_v20   ;;  %v5825_v20 = vld [vmem:[%s10885_s23 + $0x30] sm:$0xff] }
0x27c4   :  { %8196 = vmatmul.mubr.msk.f32.gmra.mxu0 %vm162_vm1, %v5823_v53 }
0x27c5   :  { %8198 = vmatprep.mubr.msk.f32.mxu0 %vm8592_vm0, %v8591_v0 }
0x27c7   :  { %6253 = vperm.xlu0 %8289, %v10353_v22   ;;  %v5826_v22 = vld [vmem:[%s10886_s27] sm:$0xff] }
0x27c8   :  { %8199 = vmatmul.mubr.msk.f32.gmra.mxu0 %vm162_vm1, %v5824_v18 }
0x27c9   :  { %8201 = vmatprep.mubr.msk.f32.mxu0 %vm8592_vm0, %v8591_v0 }
0x27cb   :  { %6248 = vperm.xlu0 %8289, %v10363_v44   ;;  %v5827_v44 = vld [vmem:[%s10886_s27 + $0x8] sm:$0xff] }
0x27cc   :  { %8202 = vmatmul.mubr.msk.f32.gmra.mxu0 %vm162_vm1, %v5825_v20 }
0x27cd   :  { %8247 = vmatprep.mubr.msk.f32.mxu0 %vm8592_vm0, %v8591_v0 }
0x2825   :  { %v5835_v43 = vpop.permute.xlu0 %5834 }
0x2826   :  { %8159 = vmatpush3.msra.mxu1 %v5835_v43 }
0x2827   :  { %8161 = vmatmul.mubr.msk.f32.vlgmr.msra.gmra.mxu1 %vm162_vm1, %v5826_v22  ;;  %8204 = vmatprep.subr.mxu1 %v8591_v0 }
0x2828   :  { %8163 = vmatprep.mubr.msk.f32.mxu1 %vm8592_vm0, %v8591_v0  ;;  %8205 = vmatpush3.msra.mxu1 %v6103_v37 }
0x2829   :  { %8206 = vmatprep.subr.mxu1 %v8591_v0 }
0x282a   :  { %8207 = vmatpush3.msra.mxu1 %v6102_v63 }
0x282b   :  { %8164 = vmatmul.mubr.msk.f32.gmra.mxu1 %vm162_vm1, %v5827_v44  ;;  %8208 = vmatprep.subr.mxu1 %v8591_v0 }
0x282c   :  { %8166 = vmatprep.mubr.msk.f32.mxu1 %vm8592_vm0, %v8591_v0  ;;  %8209 = vmatpush3.msra.mxu1 %v6101_v5 }
0x282d   :  { %8210 = vmatprep.subr.mxu1 %v8591_v0 }
0x282e   :  { %8211 = vmatpush3.msra.mxu1 %v6100_v35 }
0x282f   :  { %8167 = vmatmul.mubr.msk.f32.gmra.mxu1 %vm162_vm1, %v5828_v48 }
0x2830   :  { %8169 = vmatprep.mubr.msk.f32.mxu1 %vm8592_vm0, %v8591_v0 }
0x2832   :  { %v10679_v19 = vpop.permute.xlu0 %6278 }
0x2833   :  { %8170 = vmatmul.mubr.msk.f32.gmra.mxu1 %vm162_vm1, %v5829_v34 }
0x2834   :  { %8172 = vmatprep.mubr.msk.f32.mxu1 %vm8592_vm0, %v8591_v0 }
0x2836   :  { %v10684_v29 = vpop.permute.xlu0 %6273 }
0x2837   :  { %8173 = vmatmul.mubr.msk.f32.gmra.mxu1 %vm162_vm1, %v5830_v4 }
0x2838   :  { %8175 = vmatprep.mubr.msk.f32.mxu1 %vm8592_vm0, %v8591_v0 }
0x283a   :  { %v10686_v22 = vpop.permute.xlu0 %6268 }
0x283b   :  { %8176 = vmatmul.mubr.msk.f32.gmra.mxu1 %vm162_vm1, %v5831_v23 }
0x283c   :  { %8178 = vmatprep.mubr.msk.f32.mxu1 %vm8592_vm0, %v8591_v0 }
0x283f   :  { %8179 = vmatmul.mubr.msk.f32.gmra.mxu1 %vm162_vm1, %v5832_v40  ;;  %v10688_v40 = vpop.permute.xlu0 %6258 }
0x2840   :  { %8212 = vmatprep.mubr.msk.f32.mxu1 %vm8592_vm0, %v8591_v0 }
0x2874   :  { %v6045_v49 = vpop.f32.mrf.mxu0 }
0x2876   :  { %v8185_v24 = vpop.f32.mrf.mxu0 }
0x2877   :  { %v5708_v46 = vpop.f32.mrf.mxu1 }
0x2878   :  { %v5709_v51 = vadd.f32 %v10414_v33, %v5708_v46  ;;  %v6050_v17 = vpop.f32.mrf.mxu0  ;;  %v6761_v33 = vld [vmem:[%s10875_s16] ss:$0 sm:$0xff] }
0x2879   :  { %v8146_v12 = vpop.f32.mrf.mxu1  ;;  %v1944_v58 = vmul.f32 %v6761_v33, %v1936_v8  ;;  %v2889_v62 = vmul.f32 %v6761_v33, %v2881_v59 }
0x287a   :  { %v5712_v14 = vmax.f32 %v5709_v51, 0.0  ;;  %v8188_v15 = vpop.f32.mrf.mxu0 }
0x287b   :  { %v1945_v60 = vsel %vm70_vm2, %v1944_v58, 0.0  ;;  %v2890_v26 = vsel %vm70_vm2, %v2889_v62, 0.0 }
0x287c   :  { %v5720_v1 = vmul.f32 %v10673_v36, %v5712_v14  ;;  %v6055_v38 = vpop.f32.mrf.mxu0 }
0x287e   :  { %v5721_v16 = vsel %vm70_vm2, %v5720_v1, 0.0  ;;  %v8191_v52 = vpop.f32.mrf.mxu0  ;;  %v10704_v1 = vld [vmem:[#allocation2] ss:$0 sm:$0xff] }
0x287f   :  { %5722 = vadd.xlane.f32.xlu0 %v5721_v16 }
0x2880   :  { %v6060_v27 = vpop.f32.mrf.mxu0 }
0x2882   :  { %v8194_v11 = vpop.f32.mrf.mxu0 }
0x2883   :  { %1946 = vadd.xlane.f32.xlu0 %v1945_v60 }
0x2884   :  { %v6065_v56 = vpop.f32.mrf.mxu0 }
0x2886   :  { %v8197_v6 = vpop.f32.mrf.mxu0 }
0x2887   :  { %2891 = vadd.xlane.f32.xlu0 %v2890_v26 }
0x2888   :  { %v6070_v13 = vpop.f32.mrf.mxu0 }
0x288a   :  { %v8200_v54 = vpop.f32.mrf.mxu0 }
0x288c   :  { %v6075_v30 = vpop.f32.mrf.mxu0 }
0x288e   :  { %v8203_v32 = vpop.f32.mrf.mxu0 }
0x28e7   :  { %v5924_v28 = vpop.f32.mrf.mxu1 }
0x28e8   :  { %v6046_v41 = vadd.f32 %v6045_v49, %v5924_v28 }
0x28e9   :  { %v8162_v25 = vpop.f32.mrf.mxu1 }
0x28ea   :  { %v6086_v42 = vadd.f32 %v6925_v31, %v6046_v41 }
0x28eb   :  { %v5929_v21 = vpop.f32.mrf.mxu1 }
0x28ec   :  { %8519 = vtanh.f32 %v6086_v42  ;;  %v6051_v55 = vadd.f32 %v6050_v17, %v5929_v21  ;;  %v10693_v17 = vpop.permute.xlu0 %6253 }
0x28ed   :  { %v8165_v2 = vpop.f32.mrf.mxu1 }
0x28ee   :  { %v6087_v39 = vadd.f32 %v6925_v31, %v6051_v55 }
0x28ef   :  { %v5934_v53 = vpop.f32.mrf.mxu1 }
0x28f0   :  { %8521 = vtanh.f32 %v6087_v39  ;;  %v6056_v18 = vadd.f32 %v6055_v38, %v5934_v53  ;;  %v10701_v15 = vpop.permute.xlu0 %6248 }
0x28f1   :  { %v8168_v20 = vpop.f32.mrf.mxu1 }
0x28f2   :  { %v6088_v43 = vadd.f32 %v6925_v31, %v6056_v18 }
0x28f3   :  { %v5939_v44 = vpop.f32.mrf.mxu1 }
0x28f4   :  { %8523 = vtanh.f32 %v6088_v43  ;;  %v6061_v48 = vadd.f32 %v6060_v27, %v5939_v44 }
0x28f5   :  { %v8171_v34 = vpop.f32.mrf.mxu1 }
0x28f6   :  { %v6089_v4 = vadd.f32 %v6925_v31, %v6061_v48 }
0x28f7   :  { %v5944_v23 = vpop.f32.mrf.mxu1 }
0x28f8   :  { %8525 = vtanh.f32 %v6089_v4  ;;  %v6066_v37 = vadd.f32 %v6065_v56, %v5944_v23 }
0x28f9   :  { %v8520_v49 = vpop.eup %8519  ;;  %v8174_v63 = vpop.f32.mrf.mxu1 }
0x28fa   :  { %v6090_v45 = vadd.f32 %v6925_v31, %v6066_v37  ;;  %8213 = vmatmul.mubr.msk.f32.vlgmr.msra.gmra.mxu1 %vm70_vm2, %v8520_v49 }
0x28fb   :  { %v5949_v24 = vpop.f32.mrf.mxu1  ;;  %8215 = vmatprep.mubr.msk.f32.mxu1 %vm8592_vm0, %v8591_v0 }
0x28fc   :  { %8527 = vtanh.f32 %v6090_v45  ;;  %v6071_v5 = vadd.f32 %v6070_v13, %v5949_v24 }
0x28fd   :  { %v8522_v46 = vpop.eup %8521  ;;  %v8177_v51 = vpop.f32.mrf.mxu1 }
0x28fe   :  { %v6091_v35 = vadd.f32 %v6925_v31, %v6071_v5  ;;  %8216 = vmatmul.mubr.msk.f32.gmra.mxu1 %vm70_vm2, %v8522_v46 }
0x28ff   :  { %v5954_v12 = vpop.f32.mrf.mxu1  ;;  %8218 = vmatprep.mubr.msk.f32.mxu1 %vm8592_vm0, %v8591_v0 }
0x2900   :  { %8529 = vtanh.f32 %v6091_v35  ;;  %v6076_v8 = vadd.f32 %v6075_v30, %v5954_v12  ;;  %v10721_v30 = vld [vmem:[%s10873_s1] ss:$0 sm:$0xff] }
0x2901   :  { %v8524_v7 = vpop.eup %8523  ;;  %v8180_v10 = vpop.f32.mrf.mxu1 }
0x2902   :  { %v6092_v14 = vadd.f32 %v6925_v31, %v6076_v8  ;;  %8219 = vmatmul.mubr.msk.f32.gmra.mxu1 %vm70_vm2, %v8524_v7 }
0x2903   :  { %8221 = vmatprep.mubr.msk.f32.mxu1 %vm8592_vm0, %v8591_v0 }
0x2904   :  { %8531 = vtanh.f32 %v6092_v14 }
0x2905   :  { %v8526_v33 = vpop.eup %8525 }
0x2906   :  { %8222 = vmatmul.mubr.msk.f32.gmra.mxu1 %vm70_vm2, %v8526_v33 }
0x2907   :  { %8224 = vmatprep.mubr.msk.f32.mxu1 %vm8592_vm0, %v8591_v0 }
0x2908   :  { %v5723_v38 = vpop.xlane.xlu0 %5722 }
0x2909   :  { %v8528_v58 = vpop.eup %8527  ;;  %v5731_v59 = vadd.f32 %v10704_v1, %v5723_v38 }
0x290a   :  { %8225 = vmatmul.mubr.msk.f32.gmra.mxu1 %vm70_vm2, %v8528_v58 }
0x290b   :  { %v5732_v16 = vmax.f32 %v5731_v59, 0.1  ;;  %8227 = vmatprep.mubr.msk.f32.mxu1 %vm8592_vm0, %v8591_v0 }
0x290c   :  { %v1947_v52 = vpop.xlane.xlu0 %1946 }
0x290d   :  { %v8530_v27 = vpop.eup %8529  ;;  %8533 = vlog2.f32 %v5732_v16  ;;  %v1955_v62 = vadd.f32 %v10704_v1, %v1947_v52 }
0x290e   :  { %8228 = vmatmul.mubr.msk.f32.gmra.mxu1 %vm70_vm2, %v8530_v27  ;;  %v6926_v27 = vld [vmem:[%s10866_s9] ss:$0 sm:$0xff] }
0x290f   :  { %v1956_v60 = vmax.f32 %v1955_v62, 0.1  ;;  %8230 = vmatprep.mubr.msk.f32.mxu1 %vm8592_vm0, %v8591_v0 }
0x2910   :  { %v2892_v11 = vpop.xlane.xlu0 %2891 }
0x2911   :  { %v8532_v56 = vpop.eup %8531  ;;  %8535 = vlog2.f32 %v1956_v60  ;;  %v2900_v26 = vadd.f32 %v10704_v1, %v2892_v11 }
0x2912   :  { %8231 = vmatmul.mubr.msk.f32.gmra.mxu1 %vm70_vm2, %v8532_v56 }
0x2913   :  { %v2901_v6 = vmax.f32 %v2900_v26, 0.1 }
0x2915   :  { %8537 = vlog2.f32 %v2901_v6 }
0x291a   :  { %v8534_v13 = vpop.eup %8533 }
0x291b   :  { %v5734_v54 = vmul.f32 0.6931472, %v8534_v13 }
0x291d   :  { %v5735_v32 = vmul.f32 %v10721_v30, %v5734_v54 }
0x291e   :  { %v8536_v28 = vpop.eup %8535 }
0x291f   :  { %v5736_v31 = vmul.f32 1.442695, %v5735_v32  ;;  %v1958_v41 = vmul.f32 0.6931472, %v8536_v28 }
0x2921   :  { %8539 = vpow2.f32 %v5736_v31  ;;  %v1959_v25 = vmul.f32 %v10721_v30, %v1958_v41 }
0x2922   :  { %v8538_v42 = vpop.eup %8537 }
0x2923   :  { %v1960_v21 = vmul.f32 1.442695, %v1959_v25  ;;  %v2903_v55 = vmul.f32 0.6931472, %v8538_v42 }
0x2925   :  { %8541 = vpow2.f32 %v1960_v21  ;;  %v2904_v2 = vmul.f32 %v10721_v30, %v2903_v55 }
0x2927   :  { %v2905_v39 = vmul.f32 1.442695, %v2904_v2 }
0x2929   :  { %8543 = vpow2.f32 %v2905_v39 }
0x292e   :  { %v8540_v53 = vpop.eup %8539 }
0x292f   :  { %v5738_v18 = vadd.f32 %v8540_v53, %v10152_v57 }
0x2931   :  { %8545 = vrcp.f32 %v5738_v18 }
0x2932   :  { %v8542_v20 = vpop.eup %8541 }
0x2933   :  { %v1962_v43 = vadd.f32 %v8542_v20, %v10152_v57 }
0x2935   :  { %8547 = vrcp.f32 %v1962_v43 }
0x2936   :  { %v8544_v44 = vpop.eup %8543 }
0x2937   :  { %v2907_v48 = vadd.f32 %v8544_v44, %v10152_v57 }
0x2939   :  { %8549 = vrcp.f32 %v2907_v48  ;;  %v6363_v48 = vld [vmem:[%s10868_s10] sm:$0xff] }
0x293e   :  { %v8546_v34 = vpop.eup %8545 }
0x293f   :  { %v5740_v4 = vmul.f32 %v8546_v34, %v8540_v53  ;;  %v6264_v53 = vpop.permute.xlu1 %6263 }
0x2941   :  { %v5741_v23 = vmul.f32 %v5740_v4, %v5731_v59 }
0x2942   :  { %v8548_v37 = vpop.eup %8547 }
0x2943   :  { %v1964_v49 = vmul.f32 %v8548_v37, %v8542_v20  ;;  %v5742_v63 = vsel %vm64_vm4, %v5741_v23, %v5731_v59 }
0x2944   :  { %6443 = vperm.xlu1 %8290, %v5742_v63   ;;  %6909 = vst.msk [vmem:[%s10877_s18 + $0x28] sm:$0xff] %vm1022_vm5, %v5742_v63 }
0x2945   :  { %v1965_v45 = vmul.f32 %v1964_v49, %v1955_v62 }
0x2946   :  { %v8550_v24 = vpop.eup %8549 }
0x2947   :  { %v1966_v5 = vsel %vm64_vm4, %v1965_v45, %v1955_v62  ;;  %v2909_v46 = vmul.f32 %v8550_v24, %v8544_v44  ;;  %v6288_v44 = vld [vmem:[%s10867_s5] sm:$0xff] }
0x2948   :  { %6763 = vst.msk [vmem:[%s10877_s18 + $0x8] sm:$0xff] %vm1022_vm5, %v1966_v5 }
0x2949   :  { %v2910_v51 = vmul.f32 %v2909_v46, %v2900_v26 }
0x294b   :  { %v2911_v35 = vsel %vm64_vm4, %v2910_v51, %v2900_v26 }
0x294c   :  { %6800 = vst.msk [vmem:[%s10877_s18 + $0x10] sm:$0xff] %vm1022_vm5, %v2911_v35 }
0x29ba   :  { %v6198_v12 = vpop.f32.mrf.mxu1 }
0x29bb   :  { %v6199_v28 = vadd.f32 %v6926_v27, %v6198_v12 }
0x29bc   :  { %v8214_v8 = vpop.f32.mrf.mxu1 }
0x29be   :  { %v6203_v7 = vpop.f32.mrf.mxu1 }
0x29bf   :  { %v6204_v32 = vadd.f32 %v6926_v27, %v6203_v7  ;;  %v6444_v63 = vpop.permute.xlu1 %6443 }
0x29c0   :  { %v8217_v10 = vpop.f32.mrf.mxu1  ;;  %v6452_v45 = vmul.f32 %v10501_v47, %v6444_v63  ;;  %v6487_v47 = vld [vmem:[%s10870_s12 + $0x18] sm:$0xff] }
0x29c2   :  { %v6208_v14 = vpop.f32.mrf.mxu1 }
0x29c3   :  { %v6209_v54 = vadd.f32 %v6926_v27, %v6208_v14 }
0x29c4   :  { %v8220_v33 = vpop.f32.mrf.mxu1 }
0x29c6   :  { %v6213_v38 = vpop.f32.mrf.mxu1 }
0x29c7   :  { %v6214_v13 = vadd.f32 %v6926_v27, %v6213_v38 }
0x29c8   :  { %v8223_v58 = vpop.f32.mrf.mxu1 }
0x29ca   :  { %v6218_v59 = vpop.f32.mrf.mxu1 }
0x29cb   :  { %v6219_v56 = vadd.f32 %v6926_v27, %v6218_v59  ;;  %v6486_v59 = vld [vmem:[%s10870_s12 + $0x10] sm:$0xff] }
0x29cc   :  { %v8226_v16 = vpop.f32.mrf.mxu1 }
0x29cd   :  { %v6485_v16 = vld [vmem:[%s10870_s12 + $0x8] sm:$0xff] }
0x29ce   :  { %v6223_v52 = vpop.f32.mrf.mxu1 }
0x29cf   :  { %v6224_v62 = vadd.f32 %v6926_v27, %v6223_v52  ;;  %v6484_v52 = vld [vmem:[%s10870_s12] sm:$0xff] }
0x29d0   :  { %v8229_v60 = vpop.f32.mrf.mxu1 }
0x29d1   :  { %8551 = vtanh.f32 %v6224_v62 }
0x29d2   :  { %v6228_v11 = vpop.f32.mrf.mxu1 }
0x29d3   :  { %v6229_v26 = vadd.f32 %v6926_v27, %v6228_v11 }
0x29d4   :  { %v8232_v6 = vpop.f32.mrf.mxu1 }
0x29d5   :  { %8553 = vtanh.f32 %v6229_v26  ;;  %v979_v26 = vadd.f32 %v10650_v61, %v9195_v9 }
0x29d6   :  { %8555 = vtanh.f32 %v6219_v56 }
0x29d7   :  { %8557 = vtanh.f32 %v6214_v13  ;;  %v982_v6 = vmax.f32 %v979_v26, 0.0 }
0x29d8   :  { %8559 = vtanh.f32 %v6209_v54 }
0x29d9   :  { %8561 = vtanh.f32 %v6204_v32  ;;  %v990_v13 = vmul.f32 %v10673_v36, %v982_v6  ;;  %v6574_v32 = vld [vmem:[%s10871_s14 + $0x18] sm:$0xff] }
0x29da   :  { %8563 = vtanh.f32 %v6199_v28 }
0x29db   :  { %v991_v54 = vsel %vm70_vm2, %v990_v13, 0.0 }
0x29de   :  { %v8552_v31 = vpop.eup %8551 }
0x29df   :  { %v6286_v21 = vmul.f32 %v8552_v31, %v10684_v29  ;;  %v6573_v31 = vld [vmem:[%s10871_s14 + $0x10] sm:$0xff] }
0x29e2   :  { %v8554_v41 = vpop.eup %8553 }
0x29e3   :  { %v6287_v25 = vmul.f32 %v8554_v41, %v10679_v19  ;;  %v8556_v42 = vpop.eup %8555  ;;  %v6572_v41 = vld [vmem:[%s10871_s14 + $0x8] sm:$0xff] }
0x29e4   :  { %v8558_v55 = vpop.eup %8557  ;;  %v6285_v2 = vmul.f32 %v8556_v42, %v10686_v22 }
0x29e5   :  { %8234 = vmatpush3.msra.mxu0 %v6287_v25  ;;  %v8560_v39 = vpop.eup %8559  ;;  %v6284_v18 = vmul.f32 %v8558_v55, %v6264_v53  ;;  %v6571_v25 = vld [vmem:[%s10871_s14] sm:$0xff] }
0x29e6   :  { %8235 = vmatprep.subr.mxu0 %v8591_v0  ;;  %v8562_v20 = vpop.eup %8561  ;;  %v6283_v19 = vmul.f32 %v8560_v39, %v10688_v40  ;;  %v6366_v40 = vld [vmem:[%s10868_s10 + $0x18] sm:$0xff] }
0x29e7   :  { %8236 = vmatpush3.msra.mxu0 %v6286_v21  ;;  %v8564_v43 = vpop.eup %8563  ;;  %v6282_v29 = vmul.f32 %v8562_v20, %v10693_v17  ;;  %v6365_v17 = vld [vmem:[%s10868_s10 + $0x10] sm:$0xff] }
0x29e8   :  { %8237 = vmatprep.subr.mxu0 %v8591_v0  ;;  %v6281_v22 = vmul.f32 %v8564_v43, %v10701_v15  ;;  %v6364_v15 = vld [vmem:[%s10868_s10 + $0x8] sm:$0xff]  ;;  %v6939_v43 = vld [vmem:[%s10872_s13] ss:$0 sm:$0xff] }
0x29e9   :  { %8238 = vmatpush3.msra.mxu0 %v6285_v2 }
0x29ea   :  { %8239 = vmatprep.subr.mxu0 %v8591_v0 }
0x29eb   :  { %8240 = vmatpush3.msra.mxu0 %v6284_v18 }
0x29ec   :  { %8241 = vmatprep.subr.mxu0 %v8591_v0 }
0x29ed   :  { %8242 = vmatpush3.msra.mxu0 %v6283_v19 }
0x29ee   :  { %8243 = vmatprep.subr.mxu0 %v8591_v0 }
0x29ef   :  { %8244 = vmatpush3.msra.mxu0 %v6282_v29 }
0x29f0   :  { %8245 = vmatprep.subr.mxu0 %v8591_v0 }
0x29f1   :  { %8246 = vmatpush3.msra.mxu0 %v6281_v22 }
0x29f2   :  { %8248 = vmatmul.mubr.msk.f32.vlgmr.msra.gmra.mxu0 %vm615_vm3, %v6288_v44  ;;  %8250 = vmatprep.subr.mxu0 %v8591_v0 }
0x29f3   :  { %8251 = vmatpush3.msra.mxu0 %v6366_v40  ;;  %8258 = vmatprep.mubr.msk.f32.mxu0 %vm8592_vm0, %v8591_v0 }
0x29f4   :  { %8252 = vmatprep.subr.mxu0 %v8591_v0 }
0x29f5   :  { %8253 = vmatpush3.msra.mxu0 %v6365_v17  ;;  %v6941_v17 = vld [vmem:[%s10874_s15] ss:$0 sm:$0xff] }
0x29f6   :  { %8254 = vmatprep.subr.mxu0 %v8591_v0 }
0x29f7   :  { %8255 = vmatpush3.msra.mxu0 %v6364_v15 }
0x29f8   :  { %8256 = vmatprep.subr.mxu0 %v8591_v0 }
0x29f9   :  { %8257 = vmatpush3.msra.mxu0 %v6363_v48 }
0x29fa   :  { %8261 = vmatprep.subr.mxu0 %v8591_v0 }
0x2ab2   :  { %v6358_v34 = vpop.f32.mrf.mxu0 }
0x2ab3   :  { %v6362_v4 = vmul.f32 0.125, %v6358_v34 }
0x2ab4   :  { %v8249_v23 = vpop.f32.mrf.mxu0 }
0x2ab5   :  { %8259 = vmatmul.mubr.msk.f32.vlgmr.msra.gmra.mxu0 %vm70_vm2, %v6362_v4 }
0x2ab6   :  { %8269 = vmatprep.mubr.msk.f32.mxu0 %vm8592_vm0, %v8591_v0  ;;  %8262 = vmatpush3.msra.mxu0 %v6487_v47 }
0x2ab7   :  { %8263 = vmatprep.subr.mxu0 %v8591_v0 }
0x2ab8   :  { %8264 = vmatpush3.msra.mxu0 %v6486_v59 }
0x2ab9   :  { %8265 = vmatprep.subr.mxu0 %v8591_v0 }
0x2aba   :  { %8266 = vmatpush3.msra.mxu0 %v6485_v16 }
0x2abb   :  { %8267 = vmatprep.subr.mxu0 %v8591_v0 }
0x2abc   :  { %8268 = vmatpush3.msra.mxu0 %v6484_v52 }
0x2abd   :  { %8272 = vmatprep.subr.mxu0 %v8591_v0 }
0x2b75   :  { %v6436_v37 = vpop.f32.mrf.mxu0 }
0x2b76   :  { %6461 = vrot.lane.b32.xlu1 %v6436_v37, %s8595_s21  ;;  %v6453_v24 = vadd.f32 %v6452_v45, %v6436_v37 }
0x2b77   :  { %v8260_v49 = vpop.f32.mrf.mxu0 }
0x2b78   :  { %v6937_v5 = vmul.f32 -1.442695, %v6453_v24 }
0x2b7a   :  { %8565 = vpow2.f32 %v6937_v5 }
0x2b87   :  { %v8566_v46 = vpop.eup %8565 }
0x2b88   :  { %v6457_v51 = vadd.f32 1.0, %v8566_v46 }
0x2b8a   :  { %8567 = vrcp.f32 %v6457_v51 }
0x2b97   :  { %v8568_v35 = vpop.eup %8567 }
0x2b98   :  { %v6476_v27 = vsub.f32 1.0, %v8568_v35  ;;  %v6482_v60 = vmul.f32 %v8568_v35, %v10523_v50 }
0x2be8   :  { %v6462_v12 = vpop.permute.xlu1 %6461 }
0x2be9   :  { %v6464_v8 = vmul.f32 %v8568_v35, %v6462_v12 }
0x2beb   :  { %6466 = vrot.lane.b32.xlu1 %v6464_v8, %s8595_s21 }
0x2c5d   :  { %v6467_v7 = vpop.permute.xlu1 %6466 }
0x2c5e   :  { %v6469_v10 = vadd.f32 %v6467_v7, %v6452_v45 }
0x2c60   :  { %v6938_v14 = vmul.f32 -1.442695, %v6469_v10 }
0x2c62   :  { %8569 = vpow2.f32 %v6938_v14 }
0x2c6f   :  { %v8570_v33 = vpop.eup %8569 }
0x2c70   :  { %v6473_v38 = vadd.f32 1.0, %v8570_v33 }
0x2c72   :  { %8571 = vrcp.f32 %v6473_v38 }
0x2c7f   :  { %v8572_v58 = vpop.eup %8571 }
0x2c80   :  { %6478 = vrot.lane.b32.xlu1 %v8572_v58, %s8593_s24 }
0x2cf2   :  { %v6479_v62 = vpop.permute.xlu1 %6478 }
0x2cf3   :  { %v6481_v11 = vmul.f32 %v6479_v62, %v6476_v27 }
0x2cf5   :  { %v6483_v56 = vadd.f32 %v6482_v60, %v6481_v11 }
0x2cf7   :  { %6496 = vrot.lane.b32.xlu1 %v6483_v56, %s8593_s24 }
0x2d1b   :  { %992 = vadd.xlane.f32.xlu1 %v991_v54 }
0x2d69   :  { %v6497_v28 = vpop.permute.xlu1 %6496 }
0x2d6a   :  { %8270 = vmatmul.mubr.msk.f32.vlgmr.msra.gmra.mxu0 %vm70_vm2, %v6497_v28 }
0x2d6b   :  { %8273 = vmatpush3.msra.mxu0 %v6574_v32  ;;  %8280 = vmatprep.mubr.msk.f32.mxu0 %vm8592_vm0, %v8591_v0 }
0x2d6c   :  { %8274 = vmatprep.subr.mxu0 %v8591_v0 }
0x2d6d   :  { %8275 = vmatpush3.msra.mxu0 %v6573_v31 }
0x2d6e   :  { %8276 = vmatprep.subr.mxu0 %v8591_v0 }
0x2d6f   :  { %8277 = vmatpush3.msra.mxu0 %v6572_v41 }
0x2d70   :  { %8278 = vmatprep.subr.mxu0 %v8591_v0 }
0x2d71   :  { %8279 = vmatpush3.msra.mxu0 %v6571_v25 }
0x2da4   :  { %v993_v9 = vpop.xlane.xlu1 %992 }
0x2da5   :  { %v1001_v50 = vadd.f32 %v10704_v1, %v993_v9 }
0x2da7   :  { %v1002_v61 = vmax.f32 %v1001_v50, 0.1 }
0x2da9   :  { %8573 = vlog2.f32 %v1002_v61 }
0x2db6   :  { %v8574_v42 = vpop.eup %8573 }
0x2db7   :  { %v1004_v21 = vmul.f32 0.6931472, %v8574_v42 }
0x2db9   :  { %v1011_v55 = vmul.f32 %v10721_v30, %v1004_v21 }
0x2dbb   :  { %v1012_v2 = vmul.f32 1.442695, %v1011_v55 }
0x2dbd   :  { %8575 = vpow2.f32 %v1012_v2 }
0x2dca   :  { %v8576_v39 = vpop.eup %8575 }
0x2dcb   :  { %v1017_v53 = vadd.f32 %v8576_v39, %v10152_v57 }
0x2dcd   :  { %8577 = vrcp.f32 %v1017_v53 }
0x2dda   :  { %v8578_v18 = vpop.eup %8577 }
0x2ddb   :  { %v1019_v20 = vmul.f32 %v8578_v18, %v8576_v39 }
0x2ddd   :  { %v1020_v19 = vmul.f32 %v1019_v20, %v1001_v50 }
0x2ddf   :  { %v1021_v0 = vsel %vm64_vm4, %v1020_v19, %v1001_v50 }
0x2de0   :  { %1023 = vst.msk [vmem:[%s10877_s18] sm:$0xff] %vm1022_vm5, %v1021_v0 }
0x2e2a   :  { %v6566_v29 = vpop.f32.mrf.mxu0 }
0x2e2b   :  { %v6567_v22 = vadd.f32 %v6939_v43, %v6566_v29 }
0x2e2c   :  { %v8271_v44 = vpop.f32.mrf.mxu0 }
0x2e2d   :  { %v6570_v40 = vmax.f32 %v6567_v22, 0.0 }
0x2e2f   :  { %8281 = vmatmul.mubr.msk.f32.vlgmr.msra.gmra.mxu0 %vm70_vm2, %v6570_v40 }
0x2eef   :  { %v6651_v15 = vpop.f32.mrf.mxu0 }
0x2ef0   :  { %v6652_v48 = vadd.f32 %v6941_v17, %v6651_v15 }
0x2ef1   :  { %v8282_v34 = vpop.f32.mrf.mxu0 }
0x2ef2   :  { %v6655_v4 = vmax.f32 %v6652_v48, 0.0 }
0x2ef4   :  { %v6663_v23 = vmul.f32 %v10673_v36, %v6655_v4 }
0x2ef6   :  { %v6664_v37 = vsel %vm70_vm2, %v6663_v23, 0.0 }
0x2ef7   :  { %6665 = vadd.xlane.f32.xlu0 %v6664_v37 }
0x2f80   :  { %v6666_v49 = vpop.xlane.xlu0 %6665 }
0x2f81   :  { %v6674_v63 = vadd.f32 %v10704_v1, %v6666_v49 }
0x2f83   :  { %v6675_v45 = vmax.f32 %v6674_v63, 0.1 }
0x2f85   :  { %8579 = vlog2.f32 %v6675_v45 }
0x2f92   :  { %v8580_v24 = vpop.eup %8579 }
0x2f93   :  { %v6677_v5 = vmul.f32 0.6931472, %v8580_v24 }
0x2f95   :  { %v6678_v46 = vmul.f32 %v10721_v30, %v6677_v5 }
0x2f97   :  { %v6679_v51 = vmul.f32 1.442695, %v6678_v46 }
0x2f99   :  { %8581 = vpow2.f32 %v6679_v51 }
0x2fa6   :  { %v8582_v35 = vpop.eup %8581 }
0x2fa7   :  { %v6681_v12 = vadd.f32 %v8582_v35, %v10152_v57 }
0x2fa9   :  { %8583 = vrcp.f32 %v6681_v12 }
0x2fb6   :  { %v8584_v8 = vpop.eup %8583 }
0x2fb7   :  { %v6683_v36 = vmul.f32 %v8584_v8, %v8582_v35 }
0x2fb9   :  { %v6684_v7 = vmul.f32 %v6683_v36, %v6674_v63 }
0x2fbb   :  { %v6685_v10 = vsel %vm64_vm4, %v6684_v7, %v6674_v63 }
0x2fbc   :  { %6945 = vst.msk [vmem:[%s10877_s18 + $0x30] sm:$0xff] %vm1022_vm5, %v6685_v10 }

</bundles_post_ra>
